<compile_context>
chip_gen: v5e
topology: v5e:2x2
jax: 0.10.0
libtpu: 0.0.40
codegen_flags: <defaults>
</compile_context>

<pallas_src>
import math
from functools import partial

import jax
import jax.numpy as jnp
from jax import lax
from jax.experimental import pallas as pl
from jax.experimental.pallas import tpu as pltpu


# ------------------------------- kernel ------------------------------------ #

def _layernorm(x, gamma, beta, eps):
    mu = jnp.mean(x, axis=-1, keepdims=True)
    xc = x - mu
    var = jnp.mean(xc * xc, axis=-1, keepdims=True)
    return xc * lax.rsqrt(var + eps) * gamma + beta


def _gelu_exact(x):
    # matches torch.nn.functional.gelu (erf form) / HF ACT2FN["gelu"]
    return 0.5 * x * (1.0 + lax.erf(x * (1.0 / math.sqrt(2.0))))


def bert_encoder_kernel(
    x_ref,
    wqkv_ref, bqkv_ref,
    wo_ref, bo_ref, g1_ref, be1_ref,
    wi_ref, bi_ref, wo2_ref, bo2_ref, g2_ref, be2_ref,
    out_ref,
    *, batch, seq, hidden, num_heads, head_dim, eps,
):
    """One grid step == one BertLayer, operating on the resident hidden state."""
    layer = pl.program_id(0)

    # Layer 0: seed the resident hidden-state buffer from the input.
    @pl.when(layer == 0)
    def _():
        out_ref[...] = x_ref[...]

    h = out_ref[...]                                   # (B*S, H) float32
    hb = h.astype(jnp.bfloat16)

    # ---- fused QKV projection: one MXU matmul against packed (H, 3H) -------
    qkv = jnp.dot(hb, wqkv_ref[...], preferred_element_type=jnp.float32)
    qkv = qkv + bqkv_ref[...]                          # (B*S, 3H) f32
    qkv = qkv.reshape(batch, seq, 3 * hidden)          # merge/split of leading dims only

    # ---- multi-head self-attention (per-head, batched over batch axis) -----
    scale = 1.0 / math.sqrt(head_dim)
    ctx_heads = []
    for n in range(num_heads):                         # small static unroll
        q_lo = n * head_dim
        k_lo = hidden + n * head_dim
        v_lo = 2 * hidden + n * head_dim
        qh = (qkv[:, :, q_lo:q_lo + head_dim] * scale).astype(jnp.bfloat16)
        kh = qkv[:, :, k_lo:k_lo + head_dim].astype(jnp.bfloat16)
        vh = qkv[:, :, v_lo:v_lo + head_dim].astype(jnp.bfloat16)

        s = jnp.einsum("bqd,bkd->bqk", qh, kh,
                       preferred_element_type=jnp.float32)          # (B, S, S)
        s = s - jnp.max(s, axis=-1, keepdims=True)
        p = jnp.exp(s)
        p = p * pl.reciprocal(jnp.sum(p, axis=-1, keepdims=True), approx=True)
        ctx_heads.append(
            jnp.einsum("bqk,bkd->bqd", p.astype(jnp.bfloat16), vh,
                       preferred_element_type=jnp.float32))         # (B, S, dh)
    ctx = jnp.concatenate(ctx_heads, axis=-1)          # (B, S, H)
    ctx = ctx.reshape(batch * seq, hidden)

    # ---- BertSelfOutput: dense + residual + LayerNorm (f32) ----------------
    attn = jnp.dot(ctx.astype(jnp.bfloat16), wo_ref[...],
                   preferred_element_type=jnp.float32) + bo_ref[...]
    ln1 = _layernorm(attn + h, g1_ref[...], be1_ref[...], eps)

    # ---- BertIntermediate (GELU) + BertOutput -------------------------------
    inter = jnp.dot(ln1.astype(jnp.bfloat16), wi_ref[...],
                    preferred_element_type=jnp.float32) + bi_ref[...]
    inter = _gelu_exact(inter)
    mlp = jnp.dot(inter.astype(jnp.bfloat16), wo2_ref[...],
                  preferred_element_type=jnp.float32) + bo2_ref[...]
    out_ref[...] = _layernorm(mlp + ln1, g2_ref[...], be2_ref[...], eps)


# ------------------------------- wrapper ------------------------------------ #

def bert_encoder_pallas(x, packed, *, num_heads, eps):
    """Full BertEncoder forward.  x: (B, S, H) float32; packed: stacked weights."""
    B, S, H = x.shape
    L, _, I = packed["wi"].shape
    BS = B * S
    head_dim = H // num_heads

    def wspec(r, c):
        # (L, r, c) array: pick layer `l`, squeeze the layer dim.
        return pl.BlockSpec((None, r, c), lambda l: (l, 0, 0))

    # Constant index_map -> block stays resident in VMEM across all layers.
    resident = pl.BlockSpec((BS, H), lambda l: (0, 0))

    in_specs = [
        resident,                              # hidden_states (loaded once)
        wspec(H, 3 * H), wspec(1, 3 * H),      # packed QKV weight / bias
        wspec(H, H), wspec(1, H),              # attention output dense
        wspec(1, H), wspec(1, H),              # LayerNorm1 gamma / beta
        wspec(H, I), wspec(1, I),              # intermediate dense
        wspec(I, H), wspec(1, H),              # output dense
        wspec(1, H), wspec(1, H),              # LayerNorm2 gamma / beta
    ]

    kernel = partial(bert_encoder_kernel, batch=B, seq=S, hidden=H,
                     num_heads=num_heads, head_dim=head_dim, eps=eps)

    out2d = pl.pallas_call(
        kernel,
        out_shape=jax.ShapeDtypeStruct((BS, H), jnp.float32),
        grid=(L,),
        in_specs=in_specs,
        out_specs=resident,
        compiler_params=pltpu.CompilerParams(
            dimension_semantics=("arbitrary",),        # layers are sequential
            vmem_limit_bytes=32 * 1024 * 1024),
    )(
        x.reshape(BS, H),
        packed["wqkv"], packed["bqkv"],
        packed["wo"], packed["bo"], packed["g1"], packed["be1"],
        packed["wi"], packed["bi"], packed["wo2"], packed["bo2"],
        packed["g2"], packed["be2"],
    )
    return out2d.reshape(B, S, H)


# --------------------------- pure-JAX reference ----------------------------- #

def bert_encoder_ref(x, layer_params, *, num_heads, eps):
    B, S, H = x.shape
    dh = H // num_heads

    def ln(t, g, b):
        mu = t.mean(-1, keepdims=True)
        var = ((t - mu) ** 2).mean(-1, keepdims=True)
        return (t - mu) / jnp.sqrt(var + eps) * g[0] + b[0]

    for p in layer_params:
        q = x @ p["wq"] + p["bq"][0]
        k = x @ p["wk"] + p["bk"][0]
        v = x @ p["wv"] + p["bv"][0]
        split = lambda t: t.reshape(B, S, num_heads, dh).transpose(0, 2, 1, 3)
        qh, kh, vh = split(q), split(k), split(v)
        scores = jnp.einsum("bhqd,bhkd->bhqk", qh, kh) / math.sqrt(dh)
        probs = jax.nn.softmax(scores, axis=-1)
        ctx = jnp.einsum("bhqk,bhkd->bhqd", probs, vh)
        ctx = ctx.transpose(0, 2, 1, 3).reshape(B, S, H)
        ln1 = ln(ctx @ p["wo"] + p["bo"][0] + x, p["g1"], p["be1"])
        inter = jax.nn.gelu(ln1 @ p["wi"] + p["bi"][0], approximate=False)
        x = ln(inter @ p["wo2"] + p["bo2"][0] + ln1, p["g2"], p["be2"])
    return x


# ------------------------------ parameters ---------------------------------- #

def init_layer_params(key, hidden, intermediate):
    ks = jax.random.split(key, 12)
    n = lambda k, shape: (0.02 * jax.random.normal(k, shape)).astype(jnp.float32)
    return {
        "wq": n(ks[0], (hidden, hidden)),  "bq": n(ks[1], (1, hidden)),
        "wk": n(ks[2], (hidden, hidden)),  "bk": n(ks[3], (1, hidden)),
        "wv": n(ks[4], (hidden, hidden)),  "bv": n(ks[5], (1, hidden)),
        "wo": n(ks[6], (hidden, hidden)),  "bo": n(ks[7], (1, hidden)),
        "g1": jnp.ones((1, hidden), jnp.float32),
        "be1": jnp.zeros((1, hidden), jnp.float32),
        "wi": n(ks[8], (hidden, intermediate)), "bi": n(ks[9], (1, intermediate)),
        "wo2": n(ks[10], (intermediate, hidden)), "bo2": n(ks[11], (1, hidden)),
        "g2": jnp.ones((1, hidden), jnp.float32),
        "be2": jnp.zeros((1, hidden), jnp.float32),
    }


def pack_layers_for_kernel(layer_params):
    """Stack per-layer params along a leading layer axis; matmul weights -> bf16."""
    bf16 = jnp.bfloat16
    stack = lambda name: jnp.stack([p[name] for p in layer_params], axis=0)
    wqkv = jnp.stack(
        [jnp.concatenate([p["wq"], p["wk"], p["wv"]], axis=1) for p in layer_params], axis=0)
    bqkv = jnp.stack(
        [jnp.concatenate([p["bq"], p["bk"], p["bv"]], axis=1) for p in layer_params], axis=0)
    return {
        "wqkv": wqkv.astype(bf16), "bqkv": bqkv,              # (L,H,3H) / (L,1,3H)
        "wo": stack("wo").astype(bf16), "bo": stack("bo"),
        "g1": stack("g1"), "be1": stack("be1"),
        "wi": stack("wi").astype(bf16), "bi": stack("bi"),
        "wo2": stack("wo2").astype(bf16), "bo2": stack("bo2"),
        "g2": stack("g2"), "be2": stack("be2"),
    }


# --------------------------------- main -------------------------------------- #

if __name__ == "__main__":
    # small synthetic BERT config (lane-dense: H is a multiple of 128)
    B, S, H = 2, 16, 128
    NUM_HEADS = 4            # head_dim = 32
    INTERMEDIATE = 512
    NUM_LAYERS = 3
    EPS = 1e-12
    # TODO(synk): dropout layers omitted (eval-mode identity); attention_mask /
    # head_mask / output_attentions use the module's default (None/False) path.

    key = jax.random.PRNGKey(0)
    key, xk = jax.random.split(key)
    x = jax.random.normal(xk, (B, S, H), dtype=jnp.float32)

    layer_keys = jax.random.split(key, NUM_LAYERS)
    layer_params = [init_layer_params(k, H, INTERMEDIATE) for k in layer_keys]
    packed = pack_layers_for_kernel(layer_params)

    out = bert_encoder_pallas(x, packed, num_heads=NUM_HEADS, eps=EPS)
    out = jax.block_until_ready(out)

    ref = bert_encoder_ref(x, layer_params, num_heads=NUM_HEADS, eps=EPS)
    assert out.shape == (B, S, H)
    max_err = float(jnp.max(jnp.abs(out - ref)))
    # bf16 matmul inputs -> loosened tolerance (precision change, not a bug)
    assert jnp.allclose(out, ref, atol=2e-2, rtol=2e-2), (
        f"mismatch vs reference (max abs err {max_err})")

    print("KERNEL_OK")
</pallas_src>

<mosaic_0001>
module attributes {stable_mosaic.version = 11 : i64} {
  func.func @bert_encoder_kernel(%arg0: i32, %arg1: memref<32x128xf32, #tpu.memory_space<vmem>>, %arg2: memref<1x128x384xbf16, #tpu.memory_space<vmem>>, %arg3: memref<1x1x384xf32, #tpu.memory_space<vmem>>, %arg4: memref<1x128x128xbf16, #tpu.memory_space<vmem>>, %arg5: memref<1x1x128xf32, #tpu.memory_space<vmem>>, %arg6: memref<1x1x128xf32, #tpu.memory_space<vmem>>, %arg7: memref<1x1x128xf32, #tpu.memory_space<vmem>>, %arg8: memref<1x128x512xbf16, #tpu.memory_space<vmem>>, %arg9: memref<1x1x512xf32, #tpu.memory_space<vmem>>, %arg10: memref<1x512x128xbf16, #tpu.memory_space<vmem>>, %arg11: memref<1x1x128xf32, #tpu.memory_space<vmem>>, %arg12: memref<1x1x128xf32, #tpu.memory_space<vmem>>, %arg13: memref<1x1x128xf32, #tpu.memory_space<vmem>>, %arg14: memref<32x128xf32, #tpu.memory_space<vmem>>) attributes {dimension_semantics = [#tpu.dimension_semantics<arbitrary>], iteration_bounds = array<i64: 3>, scalar_prefetch = 0 : i64, scratch_operands = 0 : i64, tpu.core_type = #tpu.core_type<tc>, window_params = [{pipeline_mode = #tpu.pipeline_mode<synchronous>, transform_indices = @transform_0, window_bounds = array<i64: 32, 128>}, {transform_indices = @transform_1, window_bounds = array<i64: 1, 128, 384>}, {transform_indices = @transform_2, window_bounds = array<i64: 1, 1, 384>}, {transform_indices = @transform_3, window_bounds = array<i64: 1, 128, 128>}, {transform_indices = @transform_4, window_bounds = array<i64: 1, 1, 128>}, {transform_indices = @transform_5, window_bounds = array<i64: 1, 1, 128>}, {transform_indices = @transform_6, window_bounds = array<i64: 1, 1, 128>}, {transform_indices = @transform_7, window_bounds = array<i64: 1, 128, 512>}, {transform_indices = @transform_8, window_bounds = array<i64: 1, 1, 512>}, {transform_indices = @transform_9, window_bounds = array<i64: 1, 512, 128>}, {transform_indices = @transform_10, window_bounds = array<i64: 1, 1, 128>}, {transform_indices = @transform_11, window_bounds = array<i64: 1, 1, 128>}, {transform_indices = @transform_12, window_bounds = array<i64: 1, 1, 128>}, {pipeline_mode = #tpu.pipeline_mode<synchronous>, transform_indices = @transform_13, window_bounds = array<i64: 32, 128>}]} {
    %c0_i32 = arith.constant 0 : i32
    %0 = arith.cmpi eq, %arg0, %c0_i32 : i32
    %1 = arith.extui %0 : i1 to i32
    %c0_i32_0 = arith.constant 0 : i32
    %2 = arith.cmpi ne, %1, %c0_i32_0 : i32
    scf.if %2 {
      %c0_76 = arith.constant 0 : index
      %c0_77 = arith.constant 0 : index
      %182 = vector.load %arg1[%c0_76, %c0_77] : memref<32x128xf32, #tpu.memory_space<vmem>>, vector<32x128xf32>
      %c0_78 = arith.constant 0 : index
      %c0_79 = arith.constant 0 : index
      %183 = vector.load %arg14[%c0_78, %c0_79] : memref<32x128xf32, #tpu.memory_space<vmem>>, vector<32x128xf32>
      tpu.vector_store %arg14[%c0_78, %c0_79], %182 {strides = array<i32>} : memref<32x128xf32, #tpu.memory_space<vmem>>, vector<32x128xf32>,
    } else {
    }
    %c0 = arith.constant 0 : index
    %c0_1 = arith.constant 0 : index
    %3 = vector.load %arg14[%c0, %c0_1] : memref<32x128xf32, #tpu.memory_space<vmem>>, vector<32x128xf32>
    %4 = arith.truncf %3 : vector<32x128xf32> to vector<32x128xbf16>
    %c0_2 = arith.constant 0 : index
    %c0_3 = arith.constant 0 : index
    %c0_4 = arith.constant 0 : index
    %5 = vector.load %arg2[%c0_2, %c0_3, %c0_4] : memref<1x128x384xbf16, #tpu.memory_space<vmem>>, vector<1x128x384xbf16>
    %6 = vector.shape_cast %5 : vector<1x128x384xbf16> to vector<128x384xbf16>
    %cst = arith.constant dense<0.000000e+00> : vector<32x384xf32>
    %7 = tpu.matmul %4, %6, %cst {dimension_numbers = #tpu.dot_dimension_numbers<[1], [0], [0], [1], [0, 0, 1, 1], [], []>} : vector<32x128xbf16>, vector<128x384xbf16>, vector<32x384xf32> -> vector<32x384xf32>
    %c0_5 = arith.constant 0 : index
    %c0_6 = arith.constant 0 : index
    %c0_7 = arith.constant 0 : index
    %8 = vector.load %arg3[%c0_5, %c0_6, %c0_7] : memref<1x1x384xf32, #tpu.memory_space<vmem>>, vector<1x1x384xf32>
    %9 = vector.shape_cast %8 : vector<1x1x384xf32> to vector<1x384xf32>
    %10 = vector.broadcast %9 : vector<1x384xf32> to vector<32x384xf32>
    %11 = arith.addf %7, %10 : vector<32x384xf32>
    %12 = vector.shape_cast %11 : vector<32x384xf32> to vector<2x16x384xf32>
    %13 = vector.extract_strided_slice %12 {offsets = [0, 0, 0], sizes = [2, 16, 32], strides = [1, 1, 1]} : vector<2x16x384xf32> to vector<2x16x32xf32>
    %cst_8 = arith.constant 0.176776692 : f32
    %14 = vector.broadcast %cst_8 : f32 to vector<2x16x32xf32>
    %15 = arith.mulf %13, %14 : vector<2x16x32xf32>
    %16 = arith.truncf %15 : vector<2x16x32xf32> to vector<2x16x32xbf16>
    %17 = vector.extract_strided_slice %12 {offsets = [0, 0, 128], sizes = [2, 16, 32], strides = [1, 1, 1]} : vector<2x16x384xf32> to vector<2x16x32xf32>
    %18 = arith.truncf %17 : vector<2x16x32xf32> to vector<2x16x32xbf16>
    %19 = vector.extract_strided_slice %12 {offsets = [0, 0, 256], sizes = [2, 16, 32], strides = [1, 1, 1]} : vector<2x16x384xf32> to vector<2x16x32xf32>
    %20 = arith.truncf %19 : vector<2x16x32xf32> to vector<2x16x32xbf16>
    "tpu.trace_start"() <{level = 10 : i32, message = "bqd,bkd->bqk"}> : () -> ()
    %cst_9 = arith.constant dense<0.000000e+00> : vector<2x16x16xf32>
    %21 = tpu.matmul %16, %18, %cst_9 {dimension_numbers = #tpu.dot_dimension_numbers<[2], [2], [1], [1], [0, 0, 0, 1, 1, 1], [0], [0]>} : vector<2x16x32xbf16>, vector<2x16x32xbf16>, vector<2x16x16xf32> -> vector<2x16x16xf32>
    "tpu.trace_stop"() : () -> ()
    %cst_10 = arith.constant dense<0xFF800000> : vector<2x16xf32>
    %22 = vector.multi_reduction <maximumf>, %21, %cst_10 [2] : vector<2x16x16xf32> to vector<2x16xf32>
    %23 = vector.shape_cast %22 : vector<2x16xf32> to vector<2x16x1xf32>
    %24 = vector.broadcast %23 : vector<2x16x1xf32> to vector<2x16x16xf32>
    %25 = arith.subf %21, %24 : vector<2x16x16xf32>
    %26 = math.exp %25 : vector<2x16x16xf32>
    %cst_11 = arith.constant dense<0.000000e+00> : vector<2x16xf32>
    %27 = vector.multi_reduction <add>, %26, %cst_11 [2] : vector<2x16x16xf32> to vector<2x16xf32>
    %28 = vector.shape_cast %27 : vector<2x16xf32> to vector<2x16x1xf32>
    %29 = tpu.reciprocal %28 {approx = true} : vector<2x16x1xf32> -> vector<2x16x1xf32>
    %30 = vector.broadcast %29 : vector<2x16x1xf32> to vector<2x16x16xf32>
    %31 = arith.mulf %26, %30 : vector<2x16x16xf32>
    %32 = arith.truncf %31 : vector<2x16x16xf32> to vector<2x16x16xbf16>
    "tpu.trace_start"() <{level = 10 : i32, message = "bqk,bkd->bqd"}> : () -> ()
    %cst_12 = arith.constant dense<0.000000e+00> : vector<2x16x32xf32>
    %33 = tpu.matmul %32, %20, %cst_12 {dimension_numbers = #tpu.dot_dimension_numbers<[2], [1], [1], [2], [0, 0, 0, 1, 1, 2], [0], [0]>} : vector<2x16x16xbf16>, vector<2x16x32xbf16>, vector<2x16x32xf32> -> vector<2x16x32xf32>
    "tpu.trace_stop"() : () -> ()
    %34 = vector.extract_strided_slice %12 {offsets = [0, 0, 32], sizes = [2, 16, 32], strides = [1, 1, 1]} : vector<2x16x384xf32> to vector<2x16x32xf32>
    %cst_13 = arith.constant 0.176776692 : f32
    %35 = vector.broadcast %cst_13 : f32 to vector<2x16x32xf32>
    %36 = arith.mulf %34, %35 : vector<2x16x32xf32>
    %37 = arith.truncf %36 : vector<2x16x32xf32> to vector<2x16x32xbf16>
    %38 = vector.extract_strided_slice %12 {offsets = [0, 0, 160], sizes = [2, 16, 32], strides = [1, 1, 1]} : vector<2x16x384xf32> to vector<2x16x32xf32>
    %39 = arith.truncf %38 : vector<2x16x32xf32> to vector<2x16x32xbf16>
    %40 = vector.extract_strided_slice %12 {offsets = [0, 0, 288], sizes = [2, 16, 32], strides = [1, 1, 1]} : vector<2x16x384xf32> to vector<2x16x32xf32>
    %41 = arith.truncf %40 : vector<2x16x32xf32> to vector<2x16x32xbf16>
    "tpu.trace_start"() <{level = 10 : i32, message = "bqd,bkd->bqk"}> : () -> ()
    %cst_14 = arith.constant dense<0.000000e+00> : vector<2x16x16xf32>
    %42 = tpu.matmul %37, %39, %cst_14 {dimension_numbers = #tpu.dot_dimension_numbers<[2], [2], [1], [1], [0, 0, 0, 1, 1, 1], [0], [0]>} : vector<2x16x32xbf16>, vector<2x16x32xbf16>, vector<2x16x16xf32> -> vector<2x16x16xf32>
    "tpu.trace_stop"() : () -> ()
    %cst_15 = arith.constant dense<0xFF800000> : vector<2x16xf32>
    %43 = vector.multi_reduction <maximumf>, %42, %cst_15 [2] : vector<2x16x16xf32> to vector<2x16xf32>
    %44 = vector.shape_cast %43 : vector<2x16xf32> to vector<2x16x1xf32>
    %45 = vector.broadcast %44 : vector<2x16x1xf32> to vector<2x16x16xf32>
    %46 = arith.subf %42, %45 : vector<2x16x16xf32>
    %47 = math.exp %46 : vector<2x16x16xf32>
    %cst_16 = arith.constant dense<0.000000e+00> : vector<2x16xf32>
    %48 = vector.multi_reduction <add>, %47, %cst_16 [2] : vector<2x16x16xf32> to vector<2x16xf32>
    %49 = vector.shape_cast %48 : vector<2x16xf32> to vector<2x16x1xf32>
    %50 = tpu.reciprocal %49 {approx = true} : vector<2x16x1xf32> -> vector<2x16x1xf32>
    %51 = vector.broadcast %50 : vector<2x16x1xf32> to vector<2x16x16xf32>
    %52 = arith.mulf %47, %51 : vector<2x16x16xf32>
    %53 = arith.truncf %52 : vector<2x16x16xf32> to vector<2x16x16xbf16>
    "tpu.trace_start"() <{level = 10 : i32, message = "bqk,bkd->bqd"}> : () -> ()
    %cst_17 = arith.constant dense<0.000000e+00> : vector<2x16x32xf32>
    %54 = tpu.matmul %53, %41, %cst_17 {dimension_numbers = #tpu.dot_dimension_numbers<[2], [1], [1], [2], [0, 0, 0, 1, 1, 2], [0], [0]>} : vector<2x16x16xbf16>, vector<2x16x32xbf16>, vector<2x16x32xf32> -> vector<2x16x32xf32>
    "tpu.trace_stop"() : () -> ()
    %55 = vector.extract_strided_slice %12 {offsets = [0, 0, 64], sizes = [2, 16, 32], strides = [1, 1, 1]} : vector<2x16x384xf32> to vector<2x16x32xf32>
    %cst_18 = arith.constant 0.176776692 : f32
    %56 = vector.broadcast %cst_18 : f32 to vector<2x16x32xf32>
    %57 = arith.mulf %55, %56 : vector<2x16x32xf32>
    %58 = arith.truncf %57 : vector<2x16x32xf32> to vector<2x16x32xbf16>
    %59 = vector.extract_strided_slice %12 {offsets = [0, 0, 192], sizes = [2, 16, 32], strides = [1, 1, 1]} : vector<2x16x384xf32> to vector<2x16x32xf32>
    %60 = arith.truncf %59 : vector<2x16x32xf32> to vector<2x16x32xbf16>
    %61 = vector.extract_strided_slice %12 {offsets = [0, 0, 320], sizes = [2, 16, 32], strides = [1, 1, 1]} : vector<2x16x384xf32> to vector<2x16x32xf32>
    %62 = arith.truncf %61 : vector<2x16x32xf32> to vector<2x16x32xbf16>
    "tpu.trace_start"() <{level = 10 : i32, message = "bqd,bkd->bqk"}> : () -> ()
    %cst_19 = arith.constant dense<0.000000e+00> : vector<2x16x16xf32>
    %63 = tpu.matmul %58, %60, %cst_19 {dimension_numbers = #tpu.dot_dimension_numbers<[2], [2], [1], [1], [0, 0, 0, 1, 1, 1], [0], [0]>} : vector<2x16x32xbf16>, vector<2x16x32xbf16>, vector<2x16x16xf32> -> vector<2x16x16xf32>
    "tpu.trace_stop"() : () -> ()
    %cst_20 = arith.constant dense<0xFF800000> : vector<2x16xf32>
    %64 = vector.multi_reduction <maximumf>, %63, %cst_20 [2] : vector<2x16x16xf32> to vector<2x16xf32>
    %65 = vector.shape_cast %64 : vector<2x16xf32> to vector<2x16x1xf32>
    %66 = vector.broadcast %65 : vector<2x16x1xf32> to vector<2x16x16xf32>
    %67 = arith.subf %63, %66 : vector<2x16x16xf32>
    %68 = math.exp %67 : vector<2x16x16xf32>
    %cst_21 = arith.constant dense<0.000000e+00> : vector<2x16xf32>
    %69 = vector.multi_reduction <add>, %68, %cst_21 [2] : vector<2x16x16xf32> to vector<2x16xf32>
    %70 = vector.shape_cast %69 : vector<2x16xf32> to vector<2x16x1xf32>
    %71 = tpu.reciprocal %70 {approx = true} : vector<2x16x1xf32> -> vector<2x16x1xf32>
    %72 = vector.broadcast %71 : vector<2x16x1xf32> to vector<2x16x16xf32>
    %73 = arith.mulf %68, %72 : vector<2x16x16xf32>
    %74 = arith.truncf %73 : vector<2x16x16xf32> to vector<2x16x16xbf16>
    "tpu.trace_start"() <{level = 10 : i32, message = "bqk,bkd->bqd"}> : () -> ()
    %cst_22 = arith.constant dense<0.000000e+00> : vector<2x16x32xf32>
    %75 = tpu.matmul %74, %62, %cst_22 {dimension_numbers = #tpu.dot_dimension_numbers<[2], [1], [1], [2], [0, 0, 0, 1, 1, 2], [0], [0]>} : vector<2x16x16xbf16>, vector<2x16x32xbf16>, vector<2x16x32xf32> -> vector<2x16x32xf32>
    "tpu.trace_stop"() : () -> ()
    %76 = vector.extract_strided_slice %12 {offsets = [0, 0, 96], sizes = [2, 16, 32], strides = [1, 1, 1]} : vector<2x16x384xf32> to vector<2x16x32xf32>
    %cst_23 = arith.constant 0.176776692 : f32
    %77 = vector.broadcast %cst_23 : f32 to vector<2x16x32xf32>
    %78 = arith.mulf %76, %77 : vector<2x16x32xf32>
    %79 = arith.truncf %78 : vector<2x16x32xf32> to vector<2x16x32xbf16>
    %80 = vector.extract_strided_slice %12 {offsets = [0, 0, 224], sizes = [2, 16, 32], strides = [1, 1, 1]} : vector<2x16x384xf32> to vector<2x16x32xf32>
    %81 = arith.truncf %80 : vector<2x16x32xf32> to vector<2x16x32xbf16>
    %82 = vector.extract_strided_slice %12 {offsets = [0, 0, 352], sizes = [2, 16, 32], strides = [1, 1, 1]} : vector<2x16x384xf32> to vector<2x16x32xf32>
    %83 = arith.truncf %82 : vector<2x16x32xf32> to vector<2x16x32xbf16>
    "tpu.trace_start"() <{level = 10 : i32, message = "bqd,bkd->bqk"}> : () -> ()
    %cst_24 = arith.constant dense<0.000000e+00> : vector<2x16x16xf32>
    %84 = tpu.matmul %79, %81, %cst_24 {dimension_numbers = #tpu.dot_dimension_numbers<[2], [2], [1], [1], [0, 0, 0, 1, 1, 1], [0], [0]>} : vector<2x16x32xbf16>, vector<2x16x32xbf16>, vector<2x16x16xf32> -> vector<2x16x16xf32>
    "tpu.trace_stop"() : () -> ()
    %cst_25 = arith.constant dense<0xFF800000> : vector<2x16xf32>
    %85 = vector.multi_reduction <maximumf>, %84, %cst_25 [2] : vector<2x16x16xf32> to vector<2x16xf32>
    %86 = vector.shape_cast %85 : vector<2x16xf32> to vector<2x16x1xf32>
    %87 = vector.broadcast %86 : vector<2x16x1xf32> to vector<2x16x16xf32>
    %88 = arith.subf %84, %87 : vector<2x16x16xf32>
    %89 = math.exp %88 : vector<2x16x16xf32>
    %cst_26 = arith.constant dense<0.000000e+00> : vector<2x16xf32>
    %90 = vector.multi_reduction <add>, %89, %cst_26 [2] : vector<2x16x16xf32> to vector<2x16xf32>
    %91 = vector.shape_cast %90 : vector<2x16xf32> to vector<2x16x1xf32>
    %92 = tpu.reciprocal %91 {approx = true} : vector<2x16x1xf32> -> vector<2x16x1xf32>
    %93 = vector.broadcast %92 : vector<2x16x1xf32> to vector<2x16x16xf32>
    %94 = arith.mulf %89, %93 : vector<2x16x16xf32>
    %95 = arith.truncf %94 : vector<2x16x16xf32> to vector<2x16x16xbf16>
    "tpu.trace_start"() <{level = 10 : i32, message = "bqk,bkd->bqd"}> : () -> ()
    %cst_27 = arith.constant dense<0.000000e+00> : vector<2x16x32xf32>
    %96 = tpu.matmul %95, %83, %cst_27 {dimension_numbers = #tpu.dot_dimension_numbers<[2], [1], [1], [2], [0, 0, 0, 1, 1, 2], [0], [0]>} : vector<2x16x16xbf16>, vector<2x16x32xbf16>, vector<2x16x32xf32> -> vector<2x16x32xf32>
    "tpu.trace_stop"() : () -> ()
    %97 = tpu.concatenate %33, %54, %75, %96 in 2 : vector<2x16x32xf32>, vector<2x16x32xf32>, vector<2x16x32xf32>, vector<2x16x32xf32> -> vector<2x16x128xf32>
    %98 = vector.shape_cast %97 : vector<2x16x128xf32> to vector<32x128xf32>
    %99 = arith.truncf %98 : vector<32x128xf32> to vector<32x128xbf16>
    %c0_28 = arith.constant 0 : index
    %c0_29 = arith.constant 0 : index
    %c0_30 = arith.constant 0 : index
    %100 = vector.load %arg4[%c0_28, %c0_29, %c0_30] : memref<1x128x128xbf16, #tpu.memory_space<vmem>>, vector<1x128x128xbf16>
    %101 = vector.shape_cast %100 : vector<1x128x128xbf16> to vector<128x128xbf16>
    %cst_31 = arith.constant dense<0.000000e+00> : vector<32x128xf32>
    %102 = tpu.matmul %99, %101, %cst_31 {dimension_numbers = #tpu.dot_dimension_numbers<[1], [0], [0], [1], [0, 0, 1, 1], [], []>} : vector<32x128xbf16>, vector<128x128xbf16>, vector<32x128xf32> -> vector<32x128xf32>
    %c0_32 = arith.constant 0 : index
    %c0_33 = arith.constant 0 : index
    %c0_34 = arith.constant 0 : index
    %103 = vector.load %arg5[%c0_32, %c0_33, %c0_34] : memref<1x1x128xf32, #tpu.memory_space<vmem>>, vector<1x1x128xf32>
    %104 = vector.shape_cast %103 : vector<1x1x128xf32> to vector<1x128xf32>
    %105 = vector.broadcast %104 : vector<1x128xf32> to vector<32x128xf32>
    %106 = arith.addf %102, %105 : vector<32x128xf32>
    %107 = arith.addf %106, %3 : vector<32x128xf32>
    %c0_35 = arith.constant 0 : index
    %c0_36 = arith.constant 0 : index
    %c0_37 = arith.constant 0 : index
    %108 = vector.load %arg6[%c0_35, %c0_36, %c0_37] : memref<1x1x128xf32, #tpu.memory_space<vmem>>, vector<1x1x128xf32>
    %109 = vector.shape_cast %108 : vector<1x1x128xf32> to vector<1x128xf32>
    %c0_38 = arith.constant 0 : index
    %c0_39 = arith.constant 0 : index
    %c0_40 = arith.constant 0 : index
    %110 = vector.load %arg7[%c0_38, %c0_39, %c0_40] : memref<1x1x128xf32, #tpu.memory_space<vmem>>, vector<1x1x128xf32>
    %111 = vector.shape_cast %110 : vector<1x1x128xf32> to vector<1x128xf32>
    %cst_41 = arith.constant dense<0.000000e+00> : vector<32xf32>
    %112 = vector.multi_reduction <add>, %107, %cst_41 [1] : vector<32x128xf32> to vector<32xf32>
    %113 = vector.shape_cast %112 : vector<32xf32> to vector<32x1xf32>
    %cst_42 = arith.constant 1.280000e+02 : f32
    %114 = vector.broadcast %cst_42 : f32 to vector<32x1xf32>
    %115 = arith.divf %113, %114 : vector<32x1xf32>
    %116 = vector.broadcast %115 : vector<32x1xf32> to vector<32x128xf32>
    %117 = arith.subf %107, %116 : vector<32x128xf32>
    %118 = arith.mulf %117, %117 : vector<32x128xf32>
    %cst_43 = arith.constant dense<0.000000e+00> : vector<32xf32>
    %119 = vector.multi_reduction <add>, %118, %cst_43 [1] : vector<32x128xf32> to vector<32xf32>
    %120 = vector.shape_cast %119 : vector<32xf32> to vector<32x1xf32>
    %cst_44 = arith.constant 1.280000e+02 : f32
    %121 = vector.broadcast %cst_44 : f32 to vector<32x1xf32>
    %122 = arith.divf %120, %121 : vector<32x1xf32>
    %cst_45 = arith.constant 9.99999996E-13 : f32
    %123 = vector.broadcast %cst_45 : f32 to vector<32x1xf32>
    %124 = arith.addf %122, %123 : vector<32x1xf32>
    %125 = math.rsqrt %124 : vector<32x1xf32>
    %126 = vector.broadcast %125 : vector<32x1xf32> to vector<32x128xf32>
    %127 = arith.mulf %117, %126 : vector<32x128xf32>
    %128 = vector.broadcast %109 : vector<1x128xf32> to vector<32x128xf32>
    %129 = arith.mulf %127, %128 : vector<32x128xf32>
    %130 = vector.broadcast %111 : vector<1x128xf32> to vector<32x128xf32>
    %131 = arith.addf %129, %130 : vector<32x128xf32>
    %132 = arith.truncf %131 : vector<32x128xf32> to vector<32x128xbf16>
    %c0_46 = arith.constant 0 : index
    %c0_47 = arith.constant 0 : index
    %c0_48 = arith.constant 0 : index
    %133 = vector.load %arg8[%c0_46, %c0_47, %c0_48] : memref<1x128x512xbf16, #tpu.memory_space<vmem>>, vector<1x128x512xbf16>
    %134 = vector.shape_cast %133 : vector<1x128x512xbf16> to vector<128x512xbf16>
    %cst_49 = arith.constant dense<0.000000e+00> : vector<32x512xf32>
    %135 = tpu.matmul %132, %134, %cst_49 {dimension_numbers = #tpu.dot_dimension_numbers<[1], [0], [0], [1], [0, 0, 1, 1], [], []>} : vector<32x128xbf16>, vector<128x512xbf16>, vector<32x512xf32> -> vector<32x512xf32>
    %c0_50 = arith.constant 0 : index
    %c0_51 = arith.constant 0 : index
    %c0_52 = arith.constant 0 : index
    %136 = vector.load %arg9[%c0_50, %c0_51, %c0_52] : memref<1x1x512xf32, #tpu.memory_space<vmem>>, vector<1x1x512xf32>
    %137 = vector.shape_cast %136 : vector<1x1x512xf32> to vector<1x512xf32>
    %138 = vector.broadcast %137 : vector<1x512xf32> to vector<32x512xf32>
    %139 = arith.addf %135, %138 : vector<32x512xf32>
    %cst_53 = arith.constant 5.000000e-01 : f32
    %140 = vector.broadcast %cst_53 : f32 to vector<32x512xf32>
    %141 = arith.mulf %140, %139 : vector<32x512xf32>
    %cst_54 = arith.constant 0.707106769 : f32
    %142 = vector.broadcast %cst_54 : f32 to vector<32x512xf32>
    %143 = arith.mulf %139, %142 : vector<32x512xf32>
    %144 = math.erf %143 : vector<32x512xf32>
    %cst_55 = arith.constant 1.000000e+00 : f32
    %145 = vector.broadcast %cst_55 : f32 to vector<32x512xf32>
    %146 = arith.addf %145, %144 : vector<32x512xf32>
    %147 = arith.mulf %141, %146 : vector<32x512xf32>
    %148 = arith.truncf %147 : vector<32x512xf32> to vector<32x512xbf16>
    %c0_56 = arith.constant 0 : index
    %c0_57 = arith.constant 0 : index
    %c0_58 = arith.constant 0 : index
    %149 = vector.load %arg10[%c0_56, %c0_57, %c0_58] : memref<1x512x128xbf16, #tpu.memory_space<vmem>>, vector<1x512x128xbf16>
    %150 = vector.shape_cast %149 : vector<1x512x128xbf16> to vector<512x128xbf16>
    %cst_59 = arith.constant dense<0.000000e+00> : vector<32x128xf32>
    %151 = tpu.matmul %148, %150, %cst_59 {dimension_numbers = #tpu.dot_dimension_numbers<[1], [0], [0], [1], [0, 0, 1, 1], [], []>} : vector<32x512xbf16>, vector<512x128xbf16>, vector<32x128xf32> -> vector<32x128xf32>
    %c0_60 = arith.constant 0 : index
    %c0_61 = arith.constant 0 : index
    %c0_62 = arith.constant 0 : index
    %152 = vector.load %arg11[%c0_60, %c0_61, %c0_62] : memref<1x1x128xf32, #tpu.memory_space<vmem>>, vector<1x1x128xf32>
    %153 = vector.shape_cast %152 : vector<1x1x128xf32> to vector<1x128xf32>
    %154 = vector.broadcast %153 : vector<1x128xf32> to vector<32x128xf32>
    %155 = arith.addf %151, %154 : vector<32x128xf32>
    %156 = arith.addf %155, %131 : vector<32x128xf32>
    %c0_63 = arith.constant 0 : index
    %c0_64 = arith.constant 0 : index
    %c0_65 = arith.constant 0 : index
    %157 = vector.load %arg12[%c0_63, %c0_64, %c0_65] : memref<1x1x128xf32, #tpu.memory_space<vmem>>, vector<1x1x128xf32>
    %158 = vector.shape_cast %157 : vector<1x1x128xf32> to vector<1x128xf32>
    %c0_66 = arith.constant 0 : index
    %c0_67 = arith.constant 0 : index
    %c0_68 = arith.constant 0 : index
    %159 = vector.load %arg13[%c0_66, %c0_67, %c0_68] : memref<1x1x128xf32, #tpu.memory_space<vmem>>, vector<1x1x128xf32>
    %160 = vector.shape_cast %159 : vector<1x1x128xf32> to vector<1x128xf32>
    %cst_69 = arith.constant dense<0.000000e+00> : vector<32xf32>
    %161 = vector.multi_reduction <add>, %156, %cst_69 [1] : vector<32x128xf32> to vector<32xf32>
    %162 = vector.shape_cast %161 : vector<32xf32> to vector<32x1xf32>
    %cst_70 = arith.constant 1.280000e+02 : f32
    %163 = vector.broadcast %cst_70 : f32 to vector<32x1xf32>
    %164 = arith.divf %162, %163 : vector<32x1xf32>
    %165 = vector.broadcast %164 : vector<32x1xf32> to vector<32x128xf32>
    %166 = arith.subf %156, %165 : vector<32x128xf32>
    %167 = arith.mulf %166, %166 : vector<32x128xf32>
    %cst_71 = arith.constant dense<0.000000e+00> : vector<32xf32>
    %168 = vector.multi_reduction <add>, %167, %cst_71 [1] : vector<32x128xf32> to vector<32xf32>
    %169 = vector.shape_cast %168 : vector<32xf32> to vector<32x1xf32>
    %cst_72 = arith.constant 1.280000e+02 : f32
    %170 = vector.broadcast %cst_72 : f32 to vector<32x1xf32>
    %171 = arith.divf %169, %170 : vector<32x1xf32>
    %cst_73 = arith.constant 9.99999996E-13 : f32
    %172 = vector.broadcast %cst_73 : f32 to vector<32x1xf32>
    %173 = arith.addf %171, %172 : vector<32x1xf32>
    %174 = math.rsqrt %173 : vector<32x1xf32>
    %175 = vector.broadcast %174 : vector<32x1xf32> to vector<32x128xf32>
    %176 = arith.mulf %166, %175 : vector<32x128xf32>
    %177 = vector.broadcast %158 : vector<1x128xf32> to vector<32x128xf32>
    %178 = arith.mulf %176, %177 : vector<32x128xf32>
    %179 = vector.broadcast %160 : vector<1x128xf32> to vector<32x128xf32>
    %180 = arith.addf %178, %179 : vector<32x128xf32>
    %c0_74 = arith.constant 0 : index
    %c0_75 = arith.constant 0 : index
    %181 = vector.load %arg14[%c0_74, %c0_75] : memref<32x128xf32, #tpu.memory_space<vmem>>, vector<32x128xf32>
    tpu.vector_store %arg14[%c0_74, %c0_75], %180 {strides = array<i32>} : memref<32x128xf32, #tpu.memory_space<vmem>>, vector<32x128xf32>,
    return
  }
  func.func @transform_0(%arg0: i32) -> (i32, i32) {
    %c0_i32 = arith.constant 0 : i32
    %c0_i32_0 = arith.constant 0 : i32
    %c0_i32_1 = arith.constant 0 : i32
    return %c0_i32, %c0_i32_0 : i32, i32
  }
  func.func @transform_1(%arg0: i32) -> (i32, i32, i32) {
    %c0_i32 = arith.constant 0 : i32
    %c0_i32_0 = arith.constant 0 : i32
    %c0_i32_1 = arith.constant 0 : i32
    return %arg0, %c0_i32, %c0_i32_0 : i32, i32, i32
  }
  func.func @transform_2(%arg0: i32) -> (i32, i32, i32) {
    %c0_i32 = arith.constant 0 : i32
    %c0_i32_0 = arith.constant 0 : i32
    %c0_i32_1 = arith.constant 0 : i32
    return %arg0, %c0_i32, %c0_i32_0 : i32, i32, i32
  }
  func.func @transform_3(%arg0: i32) -> (i32, i32, i32) {
    %c0_i32 = arith.constant 0 : i32
    %c0_i32_0 = arith.constant 0 : i32
    %c0_i32_1 = arith.constant 0 : i32
    return %arg0, %c0_i32, %c0_i32_0 : i32, i32, i32
  }
  func.func @transform_4(%arg0: i32) -> (i32, i32, i32) {
    %c0_i32 = arith.constant 0 : i32
    %c0_i32_0 = arith.constant 0 : i32
    %c0_i32_1 = arith.constant 0 : i32
    return %arg0, %c0_i32, %c0_i32_0 : i32, i32, i32
  }
  func.func @transform_5(%arg0: i32) -> (i32, i32, i32) {
    %c0_i32 = arith.constant 0 : i32
    %c0_i32_0 = arith.constant 0 : i32
    %c0_i32_1 = arith.constant 0 : i32
    return %arg0, %c0_i32, %c0_i32_0 : i32, i32, i32
  }
  func.func @transform_6(%arg0: i32) -> (i32, i32, i32) {
    %c0_i32 = arith.constant 0 : i32
    %c0_i32_0 = arith.constant 0 : i32
    %c0_i32_1 = arith.constant 0 : i32
    return %arg0, %c0_i32, %c0_i32_0 : i32, i32, i32
  }
  func.func @transform_7(%arg0: i32) -> (i32, i32, i32) {
    %c0_i32 = arith.constant 0 : i32
    %c0_i32_0 = arith.constant 0 : i32
    %c0_i32_1 = arith.constant 0 : i32
    return %arg0, %c0_i32, %c0_i32_0 : i32, i32, i32
  }
  func.func @transform_8(%arg0: i32) -> (i32, i32, i32) {
    %c0_i32 = arith.constant 0 : i32
    %c0_i32_0 = arith.constant 0 : i32
    %c0_i32_1 = arith.constant 0 : i32
    return %arg0, %c0_i32, %c0_i32_0 : i32, i32, i32
  }
  func.func @transform_9(%arg0: i32) -> (i32, i32, i32) {
    %c0_i32 = arith.constant 0 : i32
    %c0_i32_0 = arith.constant 0 : i32
    %c0_i32_1 = arith.constant 0 : i32
    return %arg0, %c0_i32, %c0_i32_0 : i32, i32, i32
  }
  func.func @transform_10(%arg0: i32) -> (i32, i32, i32) {
    %c0_i32 = arith.constant 0 : i32
    %c0_i32_0 = arith.constant 0 : i32
    %c0_i32_1 = arith.constant 0 : i32
    return %arg0, %c0_i32, %c0_i32_0 : i32, i32, i32
  }
  func.func @transform_11(%arg0: i32) -> (i32, i32, i32) {
    %c0_i32 = arith.constant 0 : i32
    %c0_i32_0 = arith.constant 0 : i32
    %c0_i32_1 = arith.constant 0 : i32
    return %arg0, %c0_i32, %c0_i32_0 : i32, i32, i32
  }
  func.func @transform_12(%arg0: i32) -> (i32, i32, i32) {
    %c0_i32 = arith.constant 0 : i32
    %c0_i32_0 = arith.constant 0 : i32
    %c0_i32_1 = arith.constant 0 : i32
    return %arg0, %c0_i32, %c0_i32_0 : i32, i32, i32
  }
  func.func @transform_13(%arg0: i32) -> (i32, i32) {
    %c0_i32 = arith.constant 0 : i32
    %c0_i32_0 = arith.constant 0 : i32
    %c0_i32_1 = arith.constant 0 : i32
    return %c0_i32, %c0_i32_0 : i32, i32
  }
}

</mosaic_0001>

<bundles_post_ra>
// kernel: tpu_custom_call.1
= control target key start
LH: loop header
LB: loop body
LE: loop exit
PB: predicated region body
PF: predicated region fallthrough
CT: control target
= control target key end

     0   :  { %s6358_s0 = inlined_call_operand.hbm [shape: f32[32,128], index: 0, kind: input, shape index: {}]   ;;  %s6359_s1 = inlined_call_operand.hbm [shape: bf16[3,128,384], index: 1, kind: input, shape index: {}]   ;;  %s6360_s2 = inlined_call_operand.hbm [shape: f32[3,1,384], index: 2, kind: input, shape index: {}]   ;;  %s6361_s3 = inlined_call_operand.hbm [shape: bf16[3,128,128], index: 3, kind: input, shape index: {}]   ;;  %s6362_s4 = inlined_call_operand.vmem [shape: f32[3,1,128], index: 4, kind: input, shape index: {}]   ;;  %s6363_s5 = inlined_call_operand.hbm [shape: f32[3,1,128], index: 5, kind: input, shape index: {}]   ;;  %s6364_s6 = inlined_call_operand.hbm [shape: f32[3,1,128], index: 6, kind: input, shape index: {}]   ;;  %s6365_s7 = inlined_call_operand.hbm [shape: bf16[3,128,512], index: 7, kind: input, shape index: {}]   ;;  %s6366_s8 = inlined_call_operand.hbm [shape: f32[3,1,512], index: 8, kind: input, shape index: {}]   ;;  %s6367_s9 = inlined_call_operand.hbm [shape: bf16[3,512,128], index: 9, kind: input, shape index: {}]   ;;  %s6368_s10 = inlined_call_operand.vmem [shape: f32[3,1,128], index: 10, kind: input, shape index: {}]   ;;  %s6369_s11 = inlined_call_operand.vmem [shape: f32[3,1,128], index: 11, kind: input, shape index: {}]   ;;  %s6370_s12 = inlined_call_operand.hbm [shape: f32[3,1,128], index: 12, kind: input, shape index: {}]   ;;  %s6371_s13 = inlined_call_operand.hbm [shape: f32[32,128], index: 13, kind: output, shape index: {}]  }
   0x1   :  { %6381 = sst [smem:[#allocation30_spill]] %s6358_s0 }
   0x2   :  { %6382 = sst [smem:[#allocation31_spill]] %s6359_s1 }
   0x3   :  { %6383 = sst [smem:[#allocation32_spill]] %s6360_s2 }
   0x4   :  { %6384 = sst [smem:[#allocation33_spill]] %s6361_s3 }
   0x5   :  { %6385 = sst [smem:[#allocation34_spill]] %s6362_s4 }
   0x6   :  { %6386 = sst [smem:[#allocation35_spill]] %s6368_s10 }
   0x7   :  { %6387 = sst [smem:[#allocation36_spill]] %s6369_s11 }
   0x8   :  { %6388 = sst [smem:[#allocation37_spill]] %s6370_s12 }
   0x9   :  { %6389 = sst [smem:[#allocation38_spill]] %s6371_s13 }
   0xa   :  { %18 = vsyncpa [#allocation3], 0 }
   0xb   :  { %19 = vsyncpa [#allocation6], 0 }
   0xc   :  { %21 = vsyncpa [#allocation6 + $0x1], 0 }
   0xd   :  { %22 = vsyncpa [#allocation9], 0 }
   0xe   :  { %24 = vsyncpa [#allocation9 + $0x1], 0 }
   0xf   :  { %25 = vsyncpa [#allocation12], 0 }
  0x10   :  { %27 = vsyncpa [#allocation12 + $0x1], 0 }
  0x11   :  { %28 = vsyncpa [#allocation15], 0 }
  0x12   :  { %30 = vsyncpa [#allocation15 + $0x1], 0 }
  0x13   :  { %31 = vsyncpa [#allocation18], 0 }
  0x14   :  { %33 = vsyncpa [#allocation18 + $0x1], 0 }
  0x15   :  { %34 = vsyncpa [#allocation4], 0  ;;  %s4906_s25 = smov 0   ;;  %s4908_s26 = smov 0  }
  0x16   :  { %s4910_s27 = smov 0   ;;  %s4912_s28 = smov 0  }
  0x17 LB: > { %6390 = sst [smem:[#allocation27_spill]] %s4814_s27  ;;  %s4927_s29 = sadd.s32 1, %s4818_s28   ;;  %s4818_s28 = sphi %s4912_s28, %s6436_s28   ;;  %s4814_s27 = sphi %s4910_s27, %s6441_s27   ;;  %s4810_s26 = sphi %s4908_s26, %s6440_s26   ;;  %s4806_s25 = sphi %s4906_s25, %s6439_s25  }
  0x18   : > { %6391 = sst [smem:[#allocation28_spill]] %s4927_s29  ;;  %s68_s30 = sadd.s32 1, %s4814_s27 }
  0x19   : > { %s65_s14 = ssub.s32 %s4818_s28, %s4927_s29  ;;  %p75_p0 = scmp.ne.s32.totalorder %s4814_s27, %s4810_s26 }
  0x1a   : > { %p66_p1 = scmp.eq.s32.totalorder %s65_s14, 0  ;;  %p76_p2 = scmp.eq.s32.totalorder %s4818_s28, 0 }
  0x1b   : > { %p4226_p3 = scmp.lt.s32.totalorder %s4818_s28, 3  ;;  %s4940_s16 = sand.u32 1, %s4818_s28  }
  0x1c   : > { %s4937_s15 = scalar_select %p66_p1, %s4814_s27, %s68_s30  }
  0x1d   : > { %p77_p4 = por %p76_p2, %p75_p0  ;;  %s4943_s17 = sand.u32 1, %s4814_s27  }
  0x1e   : > { %6392 = sst [smem:[#allocation29_spill]] %s4937_s15  ;;  %s4161_s18 = smul.u32 192, %s4943_s17 }
  0x1f   : > { %p4946_p5 = pnand %p4226_p3, %p77_p4  ;;  %s4162_s20 = smul.u32 192, %s4818_s28 }
  0x20   : > { %s6394_s1 = sld [smem:[#allocation31_spill]]  ;;  %s430_s24 = scalar_lea.vmem [#allocation5], %s4161_s18 }
  0x21   : > { %s438_s30 = sshll.u32 %s430_s24, 4  ;;  %p4957_p7 = pneg %p4946_p5  ;;  %s439_s30 = int_to_ptr.vmem [resolvable:$true] %s438_s30 }
  0x26   : > { %s435_s23 = scalar_lea.hbm %s6394_s1, %s4162_s20  ;;  %s4439_s21 = scalar_lea.hbm %s6394_s1, 576 }
  0x27   : > { %s436_s14 = sshll.u32 %s435_s23, 4  ;;  %s437_s14 = int_to_ptr.hbm [resolvable:$true] %s436_s14 }
  0x28   : > { %s4432_s27 = sshra.s32 %s437_s14, 4  ;;  %s4433_s27 = int_to_ptr.hbm [resolvable:$true] %s4432_s27 }
  0x29   : > { %s4434_s29 = scalar_lea.hbm %s4433_s27, 192  ;;  %p4440_p10 = scmp.lt.s32.totalorder %s4433_s27, %s6394_s1 }
  0x2a   : > { %p4435_p6 = scmp.ne.s32.totalorder %s4433_s27, %s4434_s29  ;;  %p4441_p11 = scmp.lt.s32.totalorder %s4439_s21, %s4434_s29 }
  0x2c   : > { %p4437_p8 = pnand %p4957_p7, %p4435_p6  ;;  %p4442_p12 = por %p4441_p11, %p4440_p10 }
  0x2e   : > { %p4438_p9 = pneg %p4437_p8 }
  0x30   : > { %p4443_p13 = pnand %p4442_p12, %p4438_p9 }
  0x32   : > { %4446 = shalt.err (!%p4443_p13)
}
  0x33   : > { %s4820_s24 = smov 192   ;;  %s4821_s15 = smov 12  }
  0x34   : > { %s6396_s11 = scalar_lea.sflag [#allocation6], %s4940_s16  ;;  %s3624_s20 = sshll.u32 %s4943_s17, 6 }
  0x35   : > { %4200 = dma.hbm_to_vmem [thread:$0]  (!%p4946_p5), %s437_s14, 3072, %s439_s30, %s6396_s11, %s4820_s24, %s4820_s24, %s4821_s15  }
  0x36   : > { %s4062_s18 = sshll.u32 %s4818_s28, 6  ;;  %s6397_s3 = sld [smem:[#allocation33_spill]] }
  0x37   : > { %s471_s29 = scalar_lea.vmem [#allocation8], %s3624_s20  ;;  %s6380_s1 = scalar_lea.sflag [#allocation9], %s4940_s16 }
  0x38   : > { %s479_s21 = sshll.u32 %s471_s29, 4  ;;  %s480_s21 = int_to_ptr.vmem [resolvable:$true] %s479_s21 }
  0x3c   : > { %s476_s27 = scalar_lea.hbm %s6397_s3, %s4062_s18  ;;  %s4469_s30 = scalar_lea.hbm %s6397_s3, 192 }
  0x3d   : > { %s477_s23 = sshll.u32 %s476_s27, 4  ;;  %s478_s23 = int_to_ptr.hbm [resolvable:$true] %s477_s23 }
  0x3e   : > { %s4462_s4 = sshra.s32 %s478_s23, 4  ;;  %s4463_s4 = int_to_ptr.hbm [resolvable:$true] %s4462_s4 }
  0x3f   : > { %s4464_s12 = scalar_lea.hbm %s4463_s4, 64  ;;  %p4470_p3 = scmp.lt.s32.totalorder %s4463_s4, %s6397_s3 }
  0x40   : > { %p4465_p0 = scmp.ne.s32.totalorder %s4463_s4, %s4464_s12  ;;  %p4471_p4 = scmp.lt.s32.totalorder %s4469_s30, %s4464_s12 }
  0x42   : > { %p4467_p1 = pnand %p4465_p0, %p4957_p7  ;;  %p4472_p6 = por %p4471_p4, %p4470_p3 }
  0x44   : > { %p4468_p2 = pneg %p4467_p1 }
  0x46   : > { %p4473_p8 = pnand %p4472_p6, %p4468_p2 }
  0x48   : > { %4476 = shalt.err (!%p4473_p8)
}
  0x49   : > { %s6376_s24 = smov 64   ;;  %s6377_s20 = smov 4  }
  0x4a   : > { %4206 = dma.hbm_to_vmem [thread:$0]  (!%p4946_p5), %s478_s23, 1024, %s480_s21, %s6380_s1, %s6376_s24, %s6376_s24, %s6377_s20  }
  0x4b   : > { %s518_s12 = scalar_lea.hbm %s6364_s6, %s4818_s28  ;;  %s515_s27 = scalar_lea.vmem [#allocation11], %s4943_s17 }
  0x4c   : > { %s520_s22 = sshll.u32 %s518_s12, 4  ;;  %s522_s29 = sshll.u32 %s515_s27, 4  ;;  %s521_s22 = int_to_ptr.hbm [resolvable:$true] %s520_s22  ;;  %s523_s29 = int_to_ptr.vmem [resolvable:$true] %s522_s29 }
  0x4d   : > { %s6378_s11 = scalar_lea.sflag [#allocation12], %s4940_s16  ;;  %s4492_s15 = sshra.s32 %s521_s22, 4  ;;  %s4493_s15 = int_to_ptr.hbm [resolvable:$true] %s4492_s15 }
  0x4e   : > { %s4494_s30 = scalar_lea.hbm %s4493_s15, 1  ;;  %s4499_s21 = scalar_lea.hbm %s6364_s6, 3 }
  0x4f   : > { %p4495_p9 = scmp.ne.s32.totalorder %s4493_s15, %s4494_s30  ;;  %p4500_p12 = scmp.lt.s32.totalorder %s4493_s15, %s6364_s6 }
  0x50   : > { %p4501_p13 = scmp.lt.s32.totalorder %s4499_s21, %s4494_s30 }
  0x51   : > { %p4497_p10 = pnand %p4495_p9, %p4957_p7 }
  0x52   : > { %p4502_p0 = por %p4501_p13, %p4500_p12 }
  0x53   : > { %p4498_p11 = pneg %p4497_p10 }
  0x55   : > { %p4503_p1 = pnand %p4502_p0, %p4498_p11 }
  0x57   : > { %4506 = shalt.err (!%p4503_p1)
}
  0x58   : > { %4212 = dma.hbm_to_vmem [thread:$0]  (!%p4946_p5), %s521_s22, 16, %s523_s29, %s6378_s11  }
  0x59   : > { %s3630_s4 = sshll.u32 %s4943_s17, 2  ;;  %s3631_s12 = sshll.u32 %s4818_s28, 2 }
  0x5a   : > { %s559_s10 = scalar_lea.hbm %s6366_s8, %s3631_s12  ;;  %s555_s15 = scalar_lea.vmem [#allocation14], %s3630_s4 }
  0x5b   : > { %s563_s30 = sshll.u32 %s555_s15, 4  ;;  %s561_s21 = sshll.u32 %s559_s10, 4  ;;  %s564_s30 = int_to_ptr.vmem [resolvable:$true] %s563_s30  ;;  %s562_s21 = int_to_ptr.hbm [resolvable:$true] %s561_s21 }
  0x5c   : > { %s6379_s23 = scalar_lea.sflag [#allocation15], %s4940_s16  ;;  %s4522_s18 = sshra.s32 %s562_s21, 4  ;;  %s4523_s18 = int_to_ptr.hbm [resolvable:$true] %s4522_s18 }
  0x5d   : > { %s4524_s24 = scalar_lea.hbm %s4523_s18, 4  ;;  %s4529_s20 = scalar_lea.hbm %s6366_s8, 12 }
  0x5e   : > { %p4525_p2 = scmp.ne.s32.totalorder %s4523_s18, %s4524_s24  ;;  %p4530_p6 = scmp.lt.s32.totalorder %s4523_s18, %s6366_s8 }
  0x5f   : > { %p4531_p8 = scmp.lt.s32.totalorder %s4529_s20, %s4524_s24 }
  0x60   : > { %p4527_p3 = pnand %p4525_p2, %p4957_p7 }
  0x61   : > { %p4532_p9 = por %p4531_p8, %p4530_p6 }
  0x62   : > { %p4528_p4 = pneg %p4527_p3 }
  0x64   : > { %p4533_p10 = pnand %p4532_p9, %p4528_p4 }
  0x66   : > { %4536 = shalt.err (!%p4533_p10)
}
  0x67   : > { %4218 = dma.hbm_to_vmem [thread:$0]  (!%p4946_p5), %s562_s21, 64, %s564_s30, %s6379_s23  }
  0x68   : > { %s5031_s4 = sadd.s32 4294967295, %s4818_s28   ;;  %p81_p11 = scmp.ne.s32.totalorder %s4810_s26, %s4806_s25 }
  0x69   : > { %p82_p12 = scmp.eq.s32.totalorder %s5031_s4, 0  ;;  %p3620_p13 = scmp.ge.s32.totalorder %s4818_s28, 1 }
  0x6a   : > { %p399_p0 = scmp.lt.s32.totalorder %s4818_s28, 4  ;;  %p3621_p2 = scmp.ne.s32.totalorder %s5031_s4, 0 }
  0x6b   : > { %p5040_p1 = por %p82_p12, %p81_p11  ;;  %s6400_s0 = sld [smem:[#allocation30_spill]] }
  0x6c   : > { %p5045_p3 = pnand %p3620_p13, %p399_p0  ;;  %s4824_s25 = smov [#allocation2]  }
  0x6d   : > { %s412_s10 = sshll.u32 %s4824_s25, 4  ;;  %s4163_s15 = smul.u32 3, %s4943_s17  ;;  %s413_s10 = int_to_ptr.vmem [resolvable:$true] %s412_s10 }
  0x6e   : > { %p4193_p4 = pneg %p5045_p3  ;;  %s4164_s30 = smul.u32 3, %s4818_s28 }
  0x6f   : > { %s4825_s21 = smov 128   ;;  %s4826_s18 = smov 8  }
  0x70   : > { %p4194_p6 = pnand %p4193_p4, %p82_p12  ;;  %s6401_s2 = sld [smem:[#allocation32_spill]] }
  0x71   : > { %s410_s14 = sshll.u32 %s6400_s0, 4  ;;  %s452_s12 = scalar_lea.vmem [#allocation7], %s4163_s15  ;;  %s411_s14 = int_to_ptr.hbm [resolvable:$true] %s410_s14 }
  0x72   : > { %4196 = dma.hbm_to_vmem [thread:$0]  (!%p4194_p6), %s411_s14, 512, %s413_s10, [#allocation3], %s4825_s21, %s4825_s21, %s4826_s18  }
  0x73   : > { %s460_s23 = sshll.u32 %s452_s12, 4  ;;  %s461_s23 = int_to_ptr.vmem [resolvable:$true] %s460_s23 }
  0x76   : > { %s456_s27 = scalar_lea.hbm %s6401_s2, %s4164_s30  ;;  %s4589_s14 = scalar_lea.hbm %s6401_s2, 9 }
  0x77   : > { %s458_s11 = sshll.u32 %s456_s27, 4  ;;  %s459_s11 = int_to_ptr.hbm [resolvable:$true] %s458_s11 }
  0x78   : > { %s4582_s1 = sshra.s32 %s459_s11, 4  ;;  %s4583_s1 = int_to_ptr.hbm [resolvable:$true] %s4582_s1 }
  0x79   : > { %s4584_s25 = scalar_lea.hbm %s4583_s1, 3  ;;  %p4590_p11 = scmp.lt.s32.totalorder %s4583_s1, %s6401_s2 }
  0x7a   : > { %p4585_p8 = scmp.ne.s32.totalorder %s4583_s1, %s4584_s25  ;;  %p4591_p13 = scmp.lt.s32.totalorder %s4589_s14, %s4584_s25 }
  0x7c   : > { %p4587_p9 = pnand %p4585_p8, %p4957_p7  ;;  %p4592_p0 = por %p4591_p13, %p4590_p11 }
  0x7e   : > { %p4588_p10 = pneg %p4587_p9 }
  0x80   : > { %p4593_p4 = pnand %p4592_p0, %p4588_p10 }
  0x82   : > { %4596 = shalt.err (!%p4593_p4)
}
  0x83   : > { %s6402_s15 = scalar_lea.sflag [#allocation6], %s4940_s16  ;;  %s501_s3 = scalar_lea.hbm %s6363_s5, %s4818_s28 }
  0x84   : > { %4203 = dma.hbm_to_vmem [thread:$0]  (!%p4946_p5), %s459_s11, 48, %s461_s23, %s6402_s15  }
  0x85   : > { %s498_s18 = scalar_lea.vmem [#allocation10], %s4943_s17  ;;  %s503_s1 = sshll.u32 %s501_s3, 4  ;;  %s504_s1 = int_to_ptr.hbm [resolvable:$true] %s503_s1 }
  0x86   : > { %s505_s22 = sshll.u32 %s498_s18, 4  ;;  %s3627_s29 = sshll.u32 %s4943_s17, 8  ;;  %s506_s22 = int_to_ptr.vmem [resolvable:$true] %s505_s22 }
  0x87   : > { %s4612_s27 = sshra.s32 %s504_s1, 4  ;;  %s4619_s23 = scalar_lea.hbm %s6363_s5, 3  ;;  %s4613_s27 = int_to_ptr.hbm [resolvable:$true] %s4612_s27 }
  0x88   : > { %s4614_s12 = scalar_lea.hbm %s4613_s27, 1  ;;  %p4620_p10 = scmp.lt.s32.totalorder %s4613_s27, %s6363_s5 }
  0x89   : > { %p4615_p6 = scmp.ne.s32.totalorder %s4613_s27, %s4614_s12  ;;  %p4621_p11 = scmp.lt.s32.totalorder %s4619_s23, %s4614_s12 }
  0x8b   : > { %p4617_p8 = pnand %p4615_p6, %p4957_p7  ;;  %p4622_p13 = por %p4621_p11, %p4620_p10 }
  0x8d   : > { %p4618_p9 = pneg %p4617_p8 }
  0x8f   : > { %p4623_p0 = pnand %p4622_p13, %p4618_p9 }
  0x91   : > { %4626 = shalt.err (!%p4623_p0)
}
  0x92   : > { %s6403_s21 = scalar_lea.sflag [#allocation9], %s4940_s16  ;;  %s4063_s15 = sshll.u32 %s4818_s28, 8 }
  0x93   : > { %4209 = dma.hbm_to_vmem [thread:$0]  (!%p4946_p5), %s504_s1, 16, %s506_s22, %s6403_s21  }
  0x94   : > { %s538_s3 = scalar_lea.hbm %s6365_s7, %s4063_s15  ;;  %s533_s18 = scalar_lea.vmem [#allocation13], %s3627_s29 }
  0x95   : > { %s541_s27 = sshll.u32 %s533_s18, 4  ;;  %s539_s12 = sshll.u32 %s538_s3, 4  ;;  %s542_s27 = int_to_ptr.vmem [resolvable:$true] %s541_s27  ;;  %s540_s12 = int_to_ptr.hbm [resolvable:$true] %s539_s12 }
  0x96   : > { %s4642_s25 = sshra.s32 %s540_s12, 4  ;;  %s4649_s1 = scalar_lea.hbm %s6365_s7, 768  ;;  %s4643_s25 = int_to_ptr.hbm [resolvable:$true] %s4642_s25 }
  0x97   : > { %s4644_s14 = scalar_lea.hbm %s4643_s25, 256  ;;  %p4650_p9 = scmp.lt.s32.totalorder %s4643_s25, %s6365_s7 }
  0x98   : > { %p4645_p4 = scmp.ne.s32.totalorder %s4643_s25, %s4644_s14  ;;  %p4651_p10 = scmp.lt.s32.totalorder %s4649_s1, %s4644_s14 }
  0x9a   : > { %p4647_p6 = pnand %p4645_p4, %p4957_p7  ;;  %p4652_p11 = por %p4651_p10, %p4650_p9 }
  0x9c   : > { %p4648_p8 = pneg %p4647_p6 }
  0x9e   : > { %p4653_p13 = pnand %p4652_p11, %p4648_p8 }
  0xa0   : > { %4656 = shalt.err (!%p4653_p13)
}
  0xa1   : > { %s4827_s21 = smov 256   ;;  %s4828_s30 = smov 16  }
  0xa2   : > { %s6404_s0 = scalar_lea.sflag [#allocation12], %s4940_s16  ;;  %s579_s23 = scalar_lea.hbm %s6367_s9, %s4063_s15 }
  0xa3   : > { %4215 = dma.hbm_to_vmem [thread:$0]  (!%p4946_p5), %s540_s12, 4096, %s542_s27, %s6404_s0, %s4827_s21, %s4827_s21, %s4828_s30  }
  0xa4   : > { %s574_s22 = scalar_lea.vmem [#allocation16], %s3627_s29  ;;  %s580_s14 = sshll.u32 %s579_s23, 4  ;;  %s581_s14 = int_to_ptr.hbm [resolvable:$true] %s580_s14 }
  0xa5   : > { %s582_s25 = sshll.u32 %s574_s22, 4  ;;  %s4672_s1 = sshra.s32 %s581_s14, 4  ;;  %s583_s25 = int_to_ptr.vmem [resolvable:$true] %s582_s25  ;;  %s4673_s1 = int_to_ptr.hbm [resolvable:$true] %s4672_s1 }
  0xa6   : > { %s4674_s11 = scalar_lea.hbm %s4673_s1, 256  ;;  %s4679_s27 = scalar_lea.hbm %s6367_s9, 768 }
  0xa7   : > { %p4675_p0 = scmp.ne.s32.totalorder %s4673_s1, %s4674_s11  ;;  %p4680_p8 = scmp.lt.s32.totalorder %s4673_s1, %s6367_s9 }
  0xa8   : > { %p4681_p9 = scmp.lt.s32.totalorder %s4679_s27, %s4674_s11 }
  0xa9   : > { %p4677_p4 = pnand %p4675_p0, %p4957_p7 }
  0xaa   : > { %p4682_p10 = por %p4681_p9, %p4680_p8 }
  0xab   : > { %p4678_p6 = pneg %p4677_p4 }
  0xad   : > { %p4683_p11 = pnand %p4682_p10, %p4678_p6 }
  0xaf   : > { %4686 = shalt.err (!%p4683_p11)
}
  0xb0   : > { %s6405_s29 = smov 4   ;;  %s6406_s15 = smov 64  }
  0xb1   : > { %s6407_s30 = scalar_lea.sflag [#allocation15], %s4940_s16  ;;  %s6408_s3 = sld [smem:[#allocation37_spill]] }
  0xb2   : > { %4221 = dma.hbm_to_vmem [thread:$0]  (!%p4946_p5), %s581_s14, 4096, %s583_s25, %s6407_s30, %s6406_s15, %s6406_s15, %s6405_s29  }
  0xb3   : > { %s607_s22 = scalar_lea.vmem [#allocation17], %s4943_s17  ;;  %s605_s11 = scalar_lea.sflag [#allocation18], %s4943_s17 }
  0xb4   : > { %s614_s1 = sshll.u32 %s607_s22, 4  ;;  %s615_s1 = int_to_ptr.vmem [resolvable:$true] %s614_s1 }
  0xb7   : > { %s610_s18 = scalar_lea.hbm %s6408_s3, %s4818_s28  ;;  %s4709_s25 = scalar_lea.hbm %s6408_s3, 3 }
  0xb8   : > { %s612_s23 = sshll.u32 %s610_s18, 4  ;;  %s613_s23 = int_to_ptr.hbm [resolvable:$true] %s612_s23 }
  0xb9   : > { %s4702_s10 = sshra.s32 %s613_s23, 4  ;;  %s4703_s10 = int_to_ptr.hbm [resolvable:$true] %s4702_s10 }
  0xba   : > { %s4704_s27 = scalar_lea.hbm %s4703_s10, 1  ;;  %p4710_p6 = scmp.lt.s32.totalorder %s4703_s10, %s6408_s3 }
  0xbb   : > { %p4705_p13 = scmp.ne.s32.totalorder %s4703_s10, %s4704_s27  ;;  %p4711_p8 = scmp.lt.s32.totalorder %s4709_s25, %s4704_s27 }
  0xbd   : > { %p4707_p0 = pnand %p4705_p13, %p4957_p7  ;;  %p4712_p9 = por %p4711_p8, %p4710_p6 }
  0xbf   : > { %p4708_p4 = pneg %p4707_p0 }
  0xc1   : > { %p4713_p10 = pnand %p4712_p9, %p4708_p4 }
  0xc3   : > { %4716 = shalt.err (!%p4713_p10)
}
  0xc4   : > { %4224 = dma.hbm_to_vmem [thread:$0]  (!%p4946_p5), %s613_s23, 16, %s615_s1, %s605_s11  }
  0xc5   : > { %623 = sbr.rel (%p5045_p3) target bundleno = 2376 (0x948), region = 72 }
  0xca   : > { %4777 = dma.done.wait (%p82_p12), [#allocation3], 512  }
  0xcb   : > { %4779 = vsyncadd (%p82_p12), [#allocation3], 4294966784  ;;  %s630_s13 = sand.u32 1, %s5031_s4   ;;  %s5153_s28 = sand.u32 1, %s4810_s26  }
  0xcc   : > { %s4165_s17 = smul.u32 192, %s5153_s28  ;;  %s631_s29 = scalar_lea.sflag [#allocation6], %s630_s13 }
  0xce   : > { %s5156_s19 = scalar_lea.vmem [#allocation5], %s4165_s17 }
  0xcf   : > { %4781 = dma.done.wait (%p5040_p1), %s631_s29, 3120  }
  0xd0   : > { %4783 = vsyncadd (%p5040_p1), %s631_s29, 4294964176  ;;  %s4166_s20 = smul.u32 3, %s5153_s28  ;;  %s3637_s15 = sshll.u32 %s5153_s28, 6 }
  0xd1   : > { %s651_s2 = scalar_lea.sflag [#allocation9], %s630_s13  ;;  %s5166_s0 = scalar_lea.vmem [#allocation8], %s3637_s15 }
  0xd2   : > { %s5164_s30 = scalar_lea.vmem [#allocation7], %s4166_s20 }
  0xd3   : > { %4785 = dma.done.wait (%p5040_p1), %s651_s2, 1040  }
  0xd4   : > { %4787 = vsyncadd (%p5040_p1), %s651_s2, 4294966256  ;;  %s663_s18 = scalar_lea.vmem [#allocation10], %s5153_s28  ;;  %s670_s23 = scalar_lea.sflag [#allocation12], %s630_s13 }
  0xd5   : > { %s672_s22 = scalar_lea.vmem [#allocation11], %s5153_s28 }
  0xd6   : > { %4789 = dma.done.wait (%p5040_p1), %s670_s23, 4112  }
  0xd7   : > { %4791 = vsyncadd (%p5040_p1), %s670_s23, 4294963184  ;;  %s3638_s1 = sshll.u32 %s5153_s28, 8  ;;  %s3639_s11 = sshll.u32 %s5153_s28, 2 }
  0xd8   : > { %s5180_s10 = scalar_lea.vmem [#allocation13], %s3638_s1  ;;  %s689_s27 = scalar_lea.sflag [#allocation15], %s630_s13 }
  0xd9   : > { %s5182_s16 = scalar_lea.vmem [#allocation14], %s3639_s11 }
  0xda   : > { %4793 = dma.done.wait (%p5040_p1), %s689_s27, 4160  }
  0xdb   : > { %4795 = vsyncadd (%p5040_p1), %s689_s27, 4294963136  ;;  %s5188_s12 = scalar_lea.vmem [#allocation16], %s3638_s1  ;;  %s709_s25 = scalar_lea.sflag [#allocation18], %s5153_s28 }
  0xdc   : > { %s711_s14 = scalar_lea.vmem [#allocation17], %s5153_s28 }
  0xdd   : > { %4797 = dma.done.wait (%p5040_p1), %s709_s25, 16  }
  0xde   : > { %4799 = vsyncadd (%p5040_p1), %s709_s25, 4294967280  ;;  %p796_p5 = scmp.lt.s32.totalorder %s5031_s4, 2  ;;  %s6409_s29 = sld [smem:[#allocation34_spill]] }
  0xdf   : > { %s6410_s23 = sld [smem:[#allocation35_spill]] }
  0xe0   : > { %s5198_s21 = scalar_select %p796_p5, %s5031_s4, 2 }
  0xe1   : > { %s6411_s24 = sld [smem:[#allocation36_spill]] }
  0xe3   : > { %809 = sbr.rel (%p3621_p2) target bundleno = 237 (0xed), region = 116 }
  0xe4   : > { %s798_s20 = scalar_lea.vmem %s6409_s29, %s5198_s21 }
  0xe5   : > { %s801_s1 = scalar_lea.vmem %s6410_s23, %s5198_s21 }
  0xe7   : > { %s804_s25 = scalar_lea.vmem %s6411_s24, %s5198_s21 }
  0xe8   : > { %v810_v0 = vld [vmem:[#allocation2] sm:$0xff]  ;;  %v811_v1 = vld [vmem:[#allocation2 + $0x8] sm:$0xff]  ;;  %v812_v2 = vld [vmem:[#allocation2 + $0x10] sm:$0xff] }
  0xe9   : > { %814 = vst [vmem:[#allocation19] sm:$0xff] %v810_v0  ;;  %v813_v3 = vld [vmem:[#allocation2 + $0x18] sm:$0xff] }
  0xea   : > { %815 = vst [vmem:[#allocation19 + $0x8] sm:$0xff] %v811_v1 }
  0xeb   : > { %816 = vst [vmem:[#allocation19 + $0x10] sm:$0xff] %v812_v2 }
  0xec   : > { %817 = vst [vmem:[#allocation19 + $0x18] sm:$0xff] %v813_v3 }
  0xed PF: > { %v4086_v4 = vld [vmem:[%s5156_s19 + $0xac] sm:$0xf]  ;;  %v3730_v5 = vld [vmem:[%s5156_s19 + $0xb4] sm:$0xf0]  ;;  %v4083_v6 = vld [vmem:[%s5156_s19 + $0x94] sm:$0xf] }
  0xee   : > { %v3733_v7 = vor.u32 %v4086_v4, %v3730_v5  ;;  %v3718_v8 = vld [vmem:[%s5156_s19 + $0x9c] sm:$0xf0]  ;;  %v3728_v9 = vld [vmem:[%s5156_s19 + $0xa8] sm:$0xf]  ;;  %v4087_v10 = vld [vmem:[%s5156_s19 + $0xb0] sm:$0xf0] }
  0xef   : > { %v3729_v11 = vor.u32 %v4087_v10, %v3728_v9  ;;  %v3716_v12 = vld [vmem:[%s5156_s19 + $0x90] sm:$0xf]  ;;  %v3721_v13 = vor.u32 %v4083_v6, %v3718_v8  ;;  %v4084_v14 = vld [vmem:[%s5156_s19 + $0x98] sm:$0xf0]  ;;  %v3706_v16 = vld [vmem:[%s5156_s19 + $0x84] sm:$0xf0] }
  0xf0   : > { %1011 = vmatpush.bf16.msra.mxu1 %v3733_v7  ;;  %v4080_v15 = vld [vmem:[%s5156_s19 + $0x7c] sm:$0xf]  ;;  %v3717_v17 = vor.u32 %v4084_v14, %v3716_v12  ;;  %v3704_v18 = vld [vmem:[%s5156_s19 + $0x78] sm:$0xf]  ;;  %v4081_v19 = vld [vmem:[%s5156_s19 + $0x80] sm:$0xf0] }
  0xf1   : > { %992 = vmatpush.bf16.msra.mxu0 %v3729_v11  ;;  %v3709_v20 = vor.u32 %v4080_v15, %v3706_v16  ;;  %v4077_v21 = vld [vmem:[%s5156_s19 + $0x64] sm:$0xf]  ;;  %v3694_v22 = vld [vmem:[%s5156_s19 + $0x6c] sm:$0xf0]  ;;  %v3705_v23 = vor.u32 %v4081_v19, %v3704_v18  ;;  %v3692_v24 = vld [vmem:[%s5156_s19 + $0x60] sm:$0xf] }
  0xf2   : > { %v4078_v25 = vld [vmem:[%s5156_s19 + $0x68] sm:$0xf0]  ;;  %v3697_v27 = vor.u32 %v4077_v21, %v3694_v22  ;;  %v3682_v28 = vld [vmem:[%s5156_s19 + $0x54] sm:$0xf0]  ;;  %v3680_v29 = vld [vmem:[%s5156_s19 + $0x48] sm:$0xf] }
  0xf3   : > { %v4074_v26 = vld [vmem:[%s5156_s19 + $0x4c] sm:$0xf]  ;;  %v4075_v30 = vld [vmem:[%s5156_s19 + $0x50] sm:$0xf0]  ;;  %v3693_v31 = vor.u32 %v4078_v25, %v3692_v24  ;;  %v3670_v34 = vld [vmem:[%s5156_s19 + $0x3c] sm:$0xf0] }
  0xf4   : > { %1012 = vmatpush.bf16.msra.mxu1 %v3721_v13  ;;  %v3685_v32 = vor.u32 %v4074_v26, %v3682_v28  ;;  %v4071_v33 = vld [vmem:[%s5156_s19 + $0x34] sm:$0xf]  ;;  %v3681_v35 = vor.u32 %v4075_v30, %v3680_v29  ;;  %v3668_v36 = vld [vmem:[%s5156_s19 + $0x30] sm:$0xf]  ;;  %v4072_v37 = vld [vmem:[%s5156_s19 + $0x38] sm:$0xf0] }
  0xf5   : > { %993 = vmatpush.bf16.msra.mxu0 %v3717_v17  ;;  %v3673_v38 = vor.u32 %v4071_v33, %v3670_v34  ;;  %v3736_v39 = vld [vmem:[%s5156_s19 + $0xb0] sm:$0xf]  ;;  %v4088_v40 = vld [vmem:[%s5156_s19 + $0xb8] sm:$0xf0]  ;;  %v3724_v41 = vld [vmem:[%s5156_s19 + $0x98] sm:$0xf]  ;;  %v3669_v44 = vor.u32 %v4072_v37, %v3668_v36 }
  0xf6   : > { %v4068_v42 = vld [vmem:[%s5156_s19 + $0x1c] sm:$0xf]  ;;  %v3658_v43 = vld [vmem:[%s5156_s19 + $0x24] sm:$0xf0]  ;;  %v3737_v45 = vor.u32 %v4088_v40, %v3736_v39  ;;  %v4085_v46 = vld [vmem:[%s5156_s19 + $0xa0] sm:$0xf0] }
  0xf7   : > { %v3656_v47 = vld [vmem:[%s5156_s19 + $0x18] sm:$0xf]  ;;  %v4069_v48 = vld [vmem:[%s5156_s19 + $0x20] sm:$0xf0]  ;;  %v3725_v49 = vor.u32 %v4085_v46, %v3724_v41  ;;  %v3661_v50 = vor.u32 %v4068_v42, %v3658_v43  ;;  %v3712_v51 = vld [vmem:[%s5156_s19 + $0x80] sm:$0xf] }
  0xf8   : > { %1013 = vmatpush.bf16.msra.mxu1 %v3709_v20  ;;  %1030 = vmatpush.bf16.msra.mxu2 %v3737_v45  ;;  %v4082_v52 = vld [vmem:[%s5156_s19 + $0x88] sm:$0xf0]  ;;  %v4065_v53 = vld [vmem:[%s5156_s19 + $0x4] sm:$0xf]  ;;  %v3646_v54 = vld [vmem:[%s5156_s19 + $0xc] sm:$0xf0]  ;;  %v3657_v55 = vor.u32 %v4069_v48, %v3656_v47 }
  0xf9   : > { %994 = vmatpush.bf16.msra.mxu0 %v3705_v23  ;;  %v3644_v56 = vld [vmem:[%s5156_s19] sm:$0xf]  ;;  %v4066_v57 = vld [vmem:[%s5156_s19 + $0x8] sm:$0xf0]  ;;  %v818_v58 = vld [vmem:[#allocation19] sm:$0xff]  ;;  %v3713_v59 = vor.u32 %v4082_v52, %v3712_v51  ;;  %v3649_v60 = vor.u32 %v4065_v53, %v3646_v54  ;;  %vm1075_vm0 = vcmask 261120  }
  0xfa   : > { %v819_v61 = vld [vmem:[#allocation19 + $0x8] sm:$0xff]  ;;  %v3700_v62 = vld [vmem:[%s5156_s19 + $0x68] sm:$0xf]  ;;  %v4079_v63 = vld [vmem:[%s5156_s19 + $0x70] sm:$0xf0]  ;;  %v3645_v0 = vor.u32 %v4066_v57, %v3644_v56  ;;  %s4831_s13 = smov 32  }
  0xfb   : > { %v822_v1 = vpack.c.bf16 %v819_v61, %v818_v58  ;;  %v3701_v2 = vor.u32 %v4079_v63, %v3700_v62  ;;  %v3688_v3 = vld [vmem:[%s5156_s19 + $0x50] sm:$0xf]  ;;  %v4076_v4 = vld [vmem:[%s5156_s19 + $0x58] sm:$0xf0]  ;;  %v3676_v6 = vld [vmem:[%s5156_s19 + $0x38] sm:$0xf] }
  0xfc   : > { %1014 = vmatpush.bf16.msra.mxu1 %v3697_v27  ;;  %1031 = vmatpush.bf16.msra.mxu2 %v3725_v49  ;;  %v3689_v5 = vor.u32 %v4076_v4, %v3688_v3  ;;  %v4073_v7 = vld [vmem:[%s5156_s19 + $0x40] sm:$0xf0]  ;;  %v3664_v9 = vld [vmem:[%s5156_s19 + $0x20] sm:$0xf]  ;;  %v4070_v10 = vld [vmem:[%s5156_s19 + $0x28] sm:$0xf0] }
  0xfd   : > { %995 = vmatpush.bf16.msra.mxu0 %v3693_v31  ;;  %v3677_v8 = vor.u32 %v4073_v7, %v3676_v6  ;;  %v820_v11 = vld [vmem:[#allocation19 + $0x10] sm:$0xff]  ;;  %v3665_v12 = vor.u32 %v4070_v10, %v3664_v9  ;;  %v821_v13 = vld [vmem:[#allocation19 + $0x18] sm:$0xff]  ;;  %v4067_v15 = vld [vmem:[%s5156_s19 + $0x10] sm:$0xf0]  ;;  %vm1126_vm1 = vcmask 130048   ;;  %vm1721_vm2 = vcmask 523264  }
  0xfe   : > { %v3652_v14 = vld [vmem:[%s5156_s19 + $0x8] sm:$0xf]  ;;  %v823_v16 = vpack.c.bf16 %v821_v13, %v820_v11  ;;  %v856_v18 = vld [vmem:[%s5164_s30] sm:$0x7]  ;;  %s4829_s19 = smov 96   ;;  %s4830_s30 = smov 64  }
  0xff   : > { %v3653_v17 = vor.u32 %v4067_v15, %v3652_v14  ;;  %v859_v20 = vperm.slane %v856_v18, 1  ;;  %v858_v21 = vperm.slane %v856_v18, 0  ;;  %vm1726_vm3 = vcmask 785408   ;;  %s4833_s28 = smov [#allocation19]   ;;  %s6435_s2 = sld [smem:[#allocation38_spill]] }
 0x100   : > { %1015 = vmatpush.bf16.msra.mxu1 %v3685_v32  ;;  %1032 = vmatpush.bf16.msra.mxu2 %v3713_v59  ;;  %p4228_p7 = scmp.eq.s32.totalorder %s5031_s4, 2  ;;  %s4835_s11 = smov 8  }
 0x101   : > { %996 = vmatpush.bf16.msra.mxu0 %v3681_v35 }
 0x104   : > { %1016 = vmatpush.bf16.msra.mxu1 %v3673_v38  ;;  %1033 = vmatpush.bf16.msra.mxu2 %v3701_v2 }
 0x105   : > { %997 = vmatpush.bf16.msra.mxu0 %v3669_v44  ;;  %s3366_s23 = sshll.u32 %s6435_s2, 4  ;;  %s3367_s23 = int_to_ptr.hbm [resolvable:$true] %s3366_s23 }
 0x108   : > { %1017 = vmatpush.bf16.msra.mxu1 %v3661_v50  ;;  %1034 = vmatpush.bf16.msra.mxu2 %v3689_v5 }
 0x109   : > { %998 = vmatpush.bf16.msra.mxu0 %v3657_v55  ;;  %v860_v55 = vperm.slane %v856_v18, 2 }
 0x10c   : > { %1018 = vmatpush.bf16.msra.mxu1 %v3649_v60  ;;  %1035 = vmatpush.bf16.msra.mxu2 %v3677_v8 }
 0x10d   : > { %999 = vmatpush.bf16.msra.mxu0 %v3645_v0 }
 0x10f   : > { %1019 = vmatmul.bf16.vlgmr.msra.gmra.mxu1 %v822_v1 }
 0x110   : > { %1000 = vmatmul.bf16.vlgmr.msra.gmra.mxu0 %v822_v1  ;;  %1036 = vmatpush.bf16.msra.mxu2 %v3665_v12 }
 0x114   : > { %1037 = vmatpush.bf16.msra.mxu2 %v3653_v17 }
 0x117   : > { %1038 = vmatmul.bf16.vlgmr.msra.gmra.mxu2 %v822_v1 }
 0x11f   : > { %1024 = vmatmul.bf16.gmra.mxu1 %v823_v16 }
 0x120   : > { %1005 = vmatmul.bf16.gmra.mxu0 %v823_v16 }
 0x127   : > { %1043 = vmatmul.bf16.gmra.mxu2 %v823_v16 }
 0x18c   : > { %v1020_v19 = vpop.f32.mrf.mxu1 }
 0x18d   : > { %v1001_v22 = vpop.f32.mrf.mxu0  ;;  %v1021_v23 = vadd.f32 %v1020_v19, %v859_v20 }
 0x18e   : > { %v1002_v24 = vadd.f32 %v1001_v22, %v858_v21 }
 0x18f   : > { %v1057_v26 = vpack.c.bf16 %v1021_v23, %v1021_v23 }
 0x190   : > { %v1049_v27 = vmul.f32 0.17677669, %v1002_v24 }
 0x191   : > { %v1072_v33 = vunpack.c.l.b16 %v1057_v26 }
 0x192   : > { %v1053_v34 = vpack.c.bf16 %v1049_v27, %v1049_v27 }
 0x194   : > { %v1022_v25 = vpop.f32.mrf.mxu1  ;;  %v1067_v39 = vunpack.c.l.b16 %v1053_v34 }
 0x195   : > { %v1023_v28 = vadd.f32 %v1022_v25, %v859_v20  ;;  %v1003_v29 = vpop.f32.mrf.mxu0 }
 0x196   : > { %v1004_v30 = vadd.f32 %v1003_v29, %v858_v21 }
 0x197   : > { %v1058_v31 = vpack.c.bf16 %v1023_v28, %v1023_v28 }
 0x198   : > { %v1050_v32 = vmul.f32 0.17677669, %v1004_v30 }
 0x199   : > { %v1073_v35 = vunpack.c.l.b16 %v1058_v31 }
 0x19a   : > { %v1054_v36 = vpack.c.bf16 %v1050_v32, %v1050_v32  ;;  %v1039_v56 = vpop.f32.mrf.mxu2 }
 0x19b   : > { %v1074_v37 = vpack.c.b16 %v1073_v35, %v1072_v33  ;;  %v1040_v62 = vadd.f32 %v1039_v56, %v860_v55 }
 0x19c   : > { %v1025_v38 = vpop.f32.mrf.mxu1  ;;  %v1068_v40 = vunpack.c.l.b16 %v1054_v36 }
 0x19d   : > { %1233 = vrot.lane.b32.xlu0 %v1074_v37, %s4829_s19  ;;  %v1080_v41 = vsel %vm1075_vm0, %v1074_v37, 0  ;;  %v1006_v42 = vpop.f32.mrf.mxu0  ;;  %v1026_v45 = vadd.f32 %v1025_v38, %v859_v20  ;;  %v1061_v2 = vpack.c.bf16 %v1040_v62, %v1040_v62 }
 0x19e   : > { %1089 = vmatpush.bf16.xpose.msra.mxu3 %v1080_v41  ;;  %v1007_v43 = vadd.f32 %v1006_v42, %v858_v21  ;;  %v1069_v44 = vpack.c.b16 %v1068_v40, %v1067_v39 }
 0x19f   : > { %v1059_v48 = vpack.c.bf16 %v1026_v45, %v1026_v45  ;;  %v1182_v5 = vunpack.c.l.b16 %v1061_v2 }
 0x1a0   : > { %v1051_v46 = vmul.f32 0.17677669, %v1007_v43 }
 0x1a1   : > { %v1103_v57 = vunpack.c.l.b16 %v1059_v48 }
 0x1a2   : > { %v1055_v51 = vpack.c.bf16 %v1051_v46, %v1051_v46  ;;  %v1041_v3 = vpop.f32.mrf.mxu2 }
 0x1a3   : > { %v1042_v4 = vadd.f32 %v1041_v3, %v860_v55 }
 0x1a4   : > { %v1027_v47 = vpop.f32.mrf.mxu1  ;;  %v1098_v59 = vunpack.c.l.b16 %v1055_v51 }
 0x1a5   : > { %v1028_v49 = vadd.f32 %v1027_v47, %v859_v20  ;;  %1231 = vrot.lane.b32.xlu0 %v1069_v44, %s4829_s19  ;;  %3738 = vmatmul.msk.bf16.vlgmr.msra.gmra.mxu3 %vm1075_vm0, %v1069_v44  ;;  %v1008_v50 = vpop.f32.mrf.mxu0  ;;  %v1062_v6 = vpack.c.bf16 %v1042_v4, %v1042_v4 }
 0x1a6   : > { %v1009_v52 = vadd.f32 %v1008_v50, %v858_v21 }
 0x1a7   : > { %v1060_v53 = vpack.c.bf16 %v1028_v49, %v1028_v49  ;;  %v1183_v7 = vunpack.c.l.b16 %v1062_v6 }
 0x1a8   : > { %v1052_v54 = vmul.f32 0.17677669, %v1009_v52 }
 0x1a9   : > { %v1104_v58 = vunpack.c.l.b16 %v1060_v53  ;;  %v5274_v8 = vpack.c.b16 %v1183_v7, %v1182_v5 }
 0x1aa   : > { %v1056_v60 = vpack.c.bf16 %v1052_v54, %v1052_v54  ;;  %v1044_v9 = vpop.f32.mrf.mxu2 }
 0x1ab   : > { %v1105_v61 = vpack.c.b16 %v1104_v58, %v1103_v57  ;;  %v1045_v10 = vadd.f32 %v1044_v9, %v860_v55 }
 0x1ac   : > { %v1099_v63 = vunpack.c.l.b16 %v1056_v60 }
 0x1ad   : > { %1257 = vrot.lane.b32.xlu1 %v1105_v61, %s4829_s19  ;;  %1403 = vrot.lane.b32.xlu0 %v1105_v61, %s4830_s30  ;;  %v1110_v0 = vsel %vm1075_vm0, %v1105_v61, 0  ;;  %v1063_v11 = vpack.c.bf16 %v1045_v10, %v1045_v10 }
 0x1ae   : > { %v1100_v1 = vpack.c.b16 %v1099_v63, %v1098_v59  ;;  %1119 = vmatpush.bf16.xpose.msrb.mxu3 %v1110_v0 }
 0x1af   : > { %v1210_v14 = vunpack.c.l.b16 %v1063_v11 }
 0x1b0   : > { %1255 = vrot.lane.b32.xlu2 %v1100_v1, %s4829_s19 }
 0x1b2   : > { %v1046_v12 = vpop.f32.mrf.mxu2 }
 0x1b3   : > { %v1047_v13 = vadd.f32 %v1046_v12, %v860_v55 }
 0x1b5   : > { %1379 = vrot.lane.b32.xlu1 %v1074_v37, %s4830_s30  ;;  %3739 = vmatmul.msk.bf16.vlgmr.msrb.gmra.mxu3 %vm1075_vm0, %v1100_v1  ;;  %v1064_v15 = vpack.c.bf16 %v1047_v13, %v1047_v13 }
 0x1b6   : > { %1523 = vrot.lane.b32.xlu0 %v1069_v44, %s4831_s13  ;;  %1196 = vmatpush.bf16.msra.mxu3 %v5274_v8 }
 0x1b7   : > { %v1211_v16 = vunpack.c.l.b16 %v1064_v15 }
 0x1b8   : > { %1377 = vrot.lane.b32.xlu2 %v1069_v44, %s4830_s30 }
 0x1b9   : > { %v5283_v17 = vpack.c.b16 %v1211_v16, %v1210_v14 }
 0x1bb   : > { %1224 = vmatpush.bf16.msrb.mxu3 %v5283_v17 }
 0x1bd   : > { %1525 = vrot.lane.b32.xlu1 %v1074_v37, %s4831_s13 }
 0x1be   : > { %1332 = vrot.lane.b32.xlu0 %v5274_v8, %s4829_s19 }
 0x1c0   : > { %1401 = vrot.lane.b32.xlu2 %v1100_v1, %s4830_s30 }
 0x1c5   : > { %1549 = vrot.lane.b32.xlu1 %v1105_v61, %s4831_s13 }
 0x1c8   : > { %1547 = vrot.lane.b32.xlu2 %v1100_v1, %s4831_s13 }
 0x1cd   : > { %1357 = vrot.lane.b32.xlu1 %v5283_v17, %s4829_s19 }
 0x20a   : > { %v1256_v25 = vpop.permute.xlu2 %1255 }
 0x20f   : > { %v1234_v18 = vpop.permute.xlu0 %1233 }
 0x210   : > { %v1239_v19 = vsel %vm1075_vm0, %v1234_v18, 0 }
 0x211   : > { %1248 = vmatpush.bf16.xpose.msrb.mxu1 %v1239_v19 }
 0x212   : > { %v1378_v30 = vpop.permute.xlu2 %1377 }
 0x217   : > { %v1232_v20 = vpop.permute.xlu0 %1231 }
 0x218   : > { %3742 = vmatmul.msk.bf16.vlgmr.msrb.gmra.mxu1 %vm1075_vm0, %v1232_v20 }
 0x21a   : > { %v1402_v35 = vpop.permute.xlu2 %1401 }
 0x21f   : > { %v1258_v21 = vpop.permute.xlu1 %1257  ;;  %v1404_v22 = vpop.permute.xlu0 %1403 }
 0x220   : > { %v1263_v23 = vsel %vm1075_vm0, %v1258_v21, 0  ;;  %v1409_v24 = vsel %vm1075_vm0, %v1404_v22, 0 }
 0x221   : > { %1272 = vmatpush.bf16.xpose.msra.mxu1 %v1263_v23 }
 0x222   : > { %v1548_v43 = vpop.permute.xlu2 %1547 }
 0x227   : > { %v1380_v26 = vpop.permute.xlu1 %1379 }
 0x228   : > { %v1091_v27 = vpop.f32.mrf.mxu3  ;;  %3743 = vmatmul.msk.bf16.vlgmr.msra.gmra.mxu1 %vm1075_vm0, %v1256_v25  ;;  %v1385_v28 = vsel %vm1075_vm0, %v1380_v26, 0  ;;  %v1524_v40 = vpop.permute.xlu0 %1523 }
 0x229   : > { %1418 = vmatpush.bf16.xpose.msrb.mxu1 %v1409_v24  ;;  %1394 = vmatpush.bf16.xpose.msrb.mxu0 %v1385_v28  ;;  %v1127_v29 = vsel %vm1126_vm1, %v1091_v27, -inf }
 0x22a   : > { %1128 = vmax.xlane.f32.xlu0 %v1127_v29 }
 0x22f   : > { %v1526_v31 = vpop.permute.xlu1 %1525 }
 0x230   : > { %v1531_v32 = vsel %vm1075_vm0, %v1526_v31, 0  ;;  %3746 = vmatmul.msk.bf16.vlgmr.msrb.gmra.mxu0 %vm1075_vm0, %v1378_v30  ;;  %v1093_v33 = vpop.f32.mrf.mxu3  ;;  %v1333_v44 = vpop.permute.xlu0 %1332 }
 0x231   : > { %1540 = vmatpush.bf16.xpose.msra.mxu0 %v1531_v32  ;;  %v1130_v34 = vsel %vm1126_vm1, %v1093_v33, -inf  ;;  %1345 = vmatpush.bf16.msrb.mxu2 %v1333_v44 }
 0x232   : > { %1131 = vmax.xlane.f32.xlu1 %v1130_v34 }
 0x237   : > { %v1550_v36 = vpop.permute.xlu1 %1549 }
 0x238   : > { %v1555_v37 = vsel %vm1075_vm0, %v1550_v36, 0  ;;  %v1121_v38 = vpop.f32.mrf.mxu3  ;;  %3747 = vmatmul.msk.bf16.vlgmr.msrb.gmra.mxu1 %vm1075_vm0, %v1402_v35 }
 0x239   : > { %1564 = vmatpush.bf16.xpose.msra.mxu1 %v1555_v37  ;;  %v1133_v39 = vsel %vm1126_vm1, %v1121_v38, -inf }
 0x23a   : > { %1134 = vmax.xlane.f32.xlu2 %v1133_v39 }
 0x23f   : > { %v5321_v55 = vpop.permute.xlu1 %1357 }
 0x240   : > { %v1123_v41 = vpop.f32.mrf.mxu3  ;;  %3750 = vmatmul.msk.bf16.vlgmr.msra.gmra.mxu0 %vm1075_vm0, %v1524_v40 }
 0x241   : > { %v1136_v42 = vsel %vm1126_vm1, %v1123_v41, -inf }
 0x242   : > { %1137 = vmax.xlane.f32.xlu2 %v1136_v42 }
 0x248   : > { %3751 = vmatmul.msk.bf16.vlgmr.msra.gmra.mxu1 %vm1075_vm0, %v1548_v43 }
 0x295   : > { %v5305_v45 = vpop.f32.mrf.mxu1 }
 0x296   : > { %v1279_v46 = vsel %vm1126_vm1, %v5305_v45, -inf }
 0x297   : > { %1280 = vmax.xlane.f32.xlu0 %v1279_v46 }
 0x29d   : > { %v5309_v47 = vpop.f32.mrf.mxu1  ;;  %v1129_v49 = vpop.xlane.xlu0 %1128 }
 0x29e   : > { %v1139_v50 = vsub.f32 %v1091_v27, %v1129_v49  ;;  %v1282_v59 = vsel %vm1126_vm1, %v5309_v47, -inf }
 0x2a0   : > { %v1143_v56 = vmul.f32 1.442695, %v1139_v50 }
 0x2a2   : > { %4314 = vpow2.f32 %v1143_v56 }
 0x2a5   : > { %v5311_v48 = vpop.f32.mrf.mxu1  ;;  %v1132_v63 = vpop.xlane.xlu1 %1131 }
 0x2a6   : > { %v1140_v2 = vsub.f32 %v1093_v33, %v1132_v63  ;;  %v1285_v4 = vsel %vm1126_vm1, %v5311_v48, -inf }
 0x2a8   : > { %v5331_v62 = vpop.eup %4314  ;;  %v1145_v5 = vmul.f32 1.442695, %v1140_v2 }
 0x2a9   : > { %v1151_v3 = vsel %vm1126_vm1, %v5331_v62, 0.0 }
 0x2aa   : > { %4316 = vpow2.f32 %v1145_v5 }
 0x2ad   : > { %v5313_v51 = vpop.f32.mrf.mxu1  ;;  %v5315_v52 = vpop.f32.mrf.mxu0 }
 0x2ae   : > { %v1288_v53 = vsel %vm1126_vm1, %v5313_v51, -inf  ;;  %v1425_v54 = vsel %vm1126_vm1, %v5315_v52, -inf  ;;  %v1135_v61 = vpop.xlane.xlu2 %1134 }
 0x2af   : > { %1289 = vmax.xlane.f32.xlu0 %v1288_v53  ;;  %1426 = vmax.xlane.f32.xlu1 %v1425_v54  ;;  %v1141_v11 = vsub.f32 %v1121_v38, %v1135_v61 }
 0x2b0   : > { %v5351_v18 = vpop.eup %4316 }
 0x2b1   : > { %v1147_v16 = vmul.f32 1.442695, %v1141_v11  ;;  %v1154_v22 = vsel %vm1126_vm1, %v5351_v18, 0.0 }
 0x2b5   : > { %v5323_v57 = vpop.f32.mrf.mxu0  ;;  %v5325_v58 = vpop.f32.mrf.mxu1 }
 0x2b6   : > { %v1428_v60 = vsel %vm1126_vm1, %v5323_v57, -inf  ;;  %v1138_v6 = vpop.xlane.xlu2 %1137  ;;  %v1431_v20 = vsel %vm1126_vm1, %v5325_v58, -inf }
 0x2b7   : > { %1283 = vmax.xlane.f32.xlu1 %v1282_v59  ;;  %1429 = vmax.xlane.f32.xlu2 %v1428_v60  ;;  %v1142_v7 = vsub.f32 %v1123_v41, %v1138_v6 }
 0x2b9   : > { %v1149_v15 = vmul.f32 1.442695, %v1142_v7 }
 0x2bb   : > { %4318 = vpow2.f32 %v1149_v15 }
 0x2bc   : > { %4320 = vpow2.f32 %v1147_v16 }
 0x2bd   : > { %v5333_v0 = vpop.f32.mrf.mxu1  ;;  %v5335_v1 = vpop.f32.mrf.mxu0 }
 0x2be   : > { %v1434_v13 = vsel %vm1126_vm1, %v5333_v0, -inf  ;;  %v1571_v14 = vsel %vm1126_vm1, %v5335_v1, -inf }
 0x2bf   : > { %1152 = vadd.xlane.f32.xlu1 %v1151_v3  ;;  %1286 = vmax.xlane.f32.xlu2 %v1285_v4 }
 0x2c1   : > { %v5361_v23 = vpop.eup %4318 }
 0x2c2   : > { %v5363_v24 = vpop.eup %4320  ;;  %v1160_v25 = vsel %vm1126_vm1, %v5361_v23, 0.0 }
 0x2c3   : > { %v1157_v26 = vsel %vm1126_vm1, %v5363_v24, 0.0 }
 0x2c5   : > { %v5341_v9 = vpop.f32.mrf.mxu0  ;;  %v5343_v10 = vpop.f32.mrf.mxu1 }
 0x2c6   : > { %v1574_v12 = vsel %vm1126_vm1, %v5341_v9, -inf  ;;  %v1577_v27 = vsel %vm1126_vm1, %v5343_v10, -inf }
 0x2c7   : > { %1575 = vmax.xlane.f32.xlu0 %v1574_v12  ;;  %1435 = vmax.xlane.f32.xlu1 %v1434_v13 }
 0x2c8   : > { %1572 = vmax.xlane.f32.xlu2 %v1571_v14 }
 0x2cd   : > { %v5353_v19 = vpop.f32.mrf.mxu1 }
 0x2ce   : > { %v1580_v21 = vsel %vm1126_vm1, %v5353_v19, -inf }
 0x2cf   : > { %1432 = vmax.xlane.f32.xlu0 %v1431_v20  ;;  %1581 = vmax.xlane.f32.xlu1 %v1580_v21 }
 0x2d0   : > { %1155 = vadd.xlane.f32.xlu2 %v1154_v22 }
 0x2d7   : > { %1161 = vadd.xlane.f32.xlu0 %v1160_v25 }
 0x2d8   : > { %1158 = vadd.xlane.f32.xlu2 %v1157_v26 }
 0x2df   : > { %1578 = vmax.xlane.f32.xlu0 %v1577_v27 }
 0x2f3   : > { %1478 = vrot.lane.b32.xlu0 %v5274_v8, %s4830_s30 }
 0x30a   : > { %v1281_v28 = vpop.xlane.xlu0 %1280 }
 0x30b   : > { %v1291_v29 = vsub.f32 %v5305_v45, %v1281_v28 }
 0x30d   : > { %v1295_v30 = vmul.f32 1.442695, %v1291_v29 }
 0x30f   : > { %4322 = vpow2.f32 %v1295_v30 }
 0x315   : > { %v5374_v31 = vpop.eup %4322 }
 0x316   : > { %v1303_v32 = vsel %vm1126_vm1, %v5374_v31, 0.0 }
 0x317   : > { %1304 = vadd.xlane.f32.xlu1 %v1303_v32 }
 0x322   : > { %v1427_v33 = vpop.xlane.xlu1 %1426  ;;  %v1290_v43 = vpop.xlane.xlu0 %1289 }
 0x323   : > { %v1437_v34 = vsub.f32 %v5315_v52, %v1427_v33 }
 0x325   : > { %v1441_v35 = vmul.f32 1.442695, %v1437_v34 }
 0x327   : > { %4324 = vpow2.f32 %v1441_v35 }
 0x32a   : > { %v1284_v36 = vpop.xlane.xlu1 %1283  ;;  %v1430_v37 = vpop.xlane.xlu2 %1429 }
 0x32b   : > { %v1292_v38 = vsub.f32 %v5309_v47, %v1284_v36  ;;  %v1438_v40 = vsub.f32 %v5323_v57, %v1430_v37  ;;  %v1294_v47 = vsub.f32 %v5313_v51, %v1290_v43 }
 0x32d   : > { %v1297_v39 = vmul.f32 1.442695, %v1292_v38  ;;  %v5381_v41 = vpop.eup %4324  ;;  %v1443_v44 = vmul.f32 1.442695, %v1438_v40  ;;  %v1301_v54 = vmul.f32 1.442695, %v1294_v47 }
 0x32e   : > { %v1449_v42 = vsel %vm1126_vm1, %v5381_v41, 0.0 }
 0x32f   : > { %4326 = vpow2.f32 %v1297_v39  ;;  %1450 = vadd.xlane.f32.xlu1 %v1449_v42 }
 0x330   : > { %4328 = vpow2.f32 %v1443_v44 }
 0x332   : > { %v1153_v45 = vpop.xlane.xlu1 %1152  ;;  %v1287_v46 = vpop.xlane.xlu2 %1286 }
 0x333   : > { %v1293_v49 = vsub.f32 %v5311_v48, %v1287_v46 }
 0x335   : > { %v5386_v50 = vpop.eup %4326  ;;  %v1299_v52 = vmul.f32 1.442695, %v1293_v49 }
 0x336   : > { %v1306_v53 = vsel %vm1126_vm1, %v5386_v50, 0.0  ;;  %v5391_v59 = vpop.eup %4328 }
 0x337   : > { %4330 = vpow2.f32 %v1299_v52  ;;  %1307 = vadd.xlane.f32.xlu2 %v1306_v53  ;;  %v1452_v51 = vsel %vm1126_vm1, %v5391_v59, 0.0 }
 0x338   : > { %4332 = vpow2.f32 %v1301_v54 }
 0x339   : > { %4334 = vrcp.f32 %v1153_v45 }
 0x33a   : > { %v1576_v56 = vpop.xlane.xlu0 %1575  ;;  %v1436_v57 = vpop.xlane.xlu1 %1435 }
 0x33b   : > { %v1440_v60 = vsub.f32 %v5333_v0, %v1436_v57  ;;  %v1573_v61 = vpop.xlane.xlu2 %1572 }
 0x33c   : > { %v1583_v12 = vsub.f32 %v5335_v1, %v1573_v61 }
 0x33d   : > { %v5394_v48 = vpop.eup %4330  ;;  %v1447_v63 = vmul.f32 1.442695, %v1440_v60 }
 0x33e   : > { %v1309_v2 = vsel %vm1126_vm1, %v5394_v48, 0.0  ;;  %v5400_v5 = vpop.eup %4332 }
 0x33f   : > { %1453 = vadd.xlane.f32.xlu2 %v1452_v51  ;;  %1310 = vadd.xlane.f32.xlu1 %v1309_v2  ;;  %4336 = vpow2.f32 %v1447_v63  ;;  %v4335_v11 = vpop.eup %4334  ;;  %v1312_v16 = vsel %vm1126_vm1, %v5400_v5, 0.0 }
 0x340   : > { %v1167_v20 = vmul.f32 %v4335_v11, %v5331_v62  ;;  %v1584_v62 = vsub.f32 %v5341_v9, %v1576_v56 }
 0x342   : > { %v1433_v3 = vpop.xlane.xlu0 %1432  ;;  %v1582_v4 = vpop.xlane.xlu1 %1581  ;;  %v1171_v1 = vpack.c.bf16 %v1167_v20, %v1167_v20  ;;  %v1589_v35 = vmul.f32 1.442695, %v1584_v62 }
 0x343   : > { %v1439_v0 = vsub.f32 %v5325_v58, %v1433_v3  ;;  %v1586_v6 = vsub.f32 %v5353_v19, %v1582_v4  ;;  %v1156_v7 = vpop.xlane.xlu2 %1155  ;;  %v1587_v19 = vmul.f32 1.442695, %v1583_v12 }
 0x344   : > { %4338 = vrcp.f32 %v1156_v7  ;;  %v1177_v32 = vunpack.c.l.b16 %v1171_v1 }
 0x345   : > { %v1445_v13 = vmul.f32 1.442695, %v1439_v0  ;;  %v1593_v14 = vmul.f32 1.442695, %v1586_v6  ;;  %v5405_v15 = vpop.eup %4336 }
 0x346   : > { %v1458_v58 = vsel %vm1126_vm1, %v5405_v15, 0.0 }
 0x347   : > { %4340 = vpow2.f32 %v1445_v13  ;;  %1313 = vadd.xlane.f32.xlu2 %v1312_v16  ;;  %1459 = vadd.xlane.f32.xlu0 %v1458_v58 }
 0x348   : > { %4342 = vpow2.f32 %v1593_v14 }
 0x34a   : > { %v4339_v21 = vpop.eup %4338  ;;  %v1162_v22 = vpop.xlane.xlu0 %1161 }
 0x34b   : > { %v1168_v25 = vmul.f32 %v4339_v21, %v5351_v18  ;;  %4344 = vrcp.f32 %v1162_v22  ;;  %v1159_v26 = vpop.xlane.xlu2 %1158 }
 0x34c   : > { %4346 = vrcp.f32 %v1159_v26 }
 0x34d   : > { %v5413_v27 = vpop.eup %4340  ;;  %4348 = vpow2.f32 %v1587_v19  ;;  %v1172_v28 = vpack.c.bf16 %v1168_v25, %v1168_v25 }
 0x34e   : > { %v5416_v29 = vpop.eup %4342  ;;  %v1455_v30 = vsel %vm1126_vm1, %v5413_v27, 0.0  ;;  %4350 = vpow2.f32 %v1589_v35 }
 0x34f   : > { %v1178_v33 = vunpack.c.l.b16 %v1172_v28  ;;  %v1604_v34 = vsel %vm1126_vm1, %v5416_v29, 0.0  ;;  %1456 = vadd.xlane.f32.xlu2 %v1455_v30 }
 0x350   : > { %1605 = vadd.xlane.f32.xlu0 %v1604_v34 }
 0x351   : > { %v4345_v18 = vpop.eup %4344  ;;  %v1179_v36 = vpack.c.b16 %v1178_v33, %v1177_v32 }
 0x352   : > { %v4347_v37 = vpop.eup %4346  ;;  %v1170_v9 = vmul.f32 %v4345_v18, %v5361_v23  ;;  %v1579_v49 = vpop.xlane.xlu0 %1578 }
 0x353   : > { %v5422_v38 = vpop.eup %4348  ;;  %3740 = vmatmul.msk.bf16.vlgmr.msra.gmra.mxu3 %vm1126_vm1, %v1179_v36  ;;  %v1169_v39 = vmul.f32 %v4347_v37, %v5363_v24  ;;  %v1585_v47 = vsub.f32 %v5343_v10, %v1579_v49 }
 0x354   : > { %1370 = vmatpush.bf16.msra.mxu3 %v5321_v55  ;;  %v1595_v40 = vsel %vm1126_vm1, %v5422_v38, 0.0  ;;  %v1174_v42 = vpack.c.bf16 %v1170_v9, %v1170_v9  ;;  %v5432_v44 = vpop.eup %4350 }
 0x355   : > { %v1173_v43 = vpack.c.bf16 %v1169_v39, %v1169_v39  ;;  %v1598_v55 = vsel %vm1126_vm1, %v5432_v44, 0.0  ;;  %v1591_v52 = vmul.f32 1.442695, %v1585_v47 }
 0x356   : > { %v1206_v45 = vunpack.c.l.b16 %v1174_v42 }
 0x357   : > { %1596 = vadd.xlane.f32.xlu2 %v1595_v40  ;;  %v1205_v46 = vunpack.c.l.b16 %v1173_v43  ;;  %4352 = vpow2.f32 %v1591_v52 }
 0x358   : > { %1503 = vrot.lane.b32.xlu1 %v5283_v17, %s4830_s30 }
 0x359   : > { %v1207_v23 = vpack.c.b16 %v1206_v45, %v1205_v46 }
 0x35d   : > { %v5440_v53 = vpop.eup %4352 }
 0x35e   : > { %v1601_v54 = vsel %vm1126_vm1, %v5440_v53, 0.0 }
 0x35f   : > { %1599 = vadd.xlane.f32.xlu2 %v1598_v55 }
 0x363   : > { %3741 = vmatmul.msk.bf16.vlgmr.msrb.gmra.mxu3 %vm1126_vm1, %v1207_v23 }
 0x365   : > { %v1479_v24 = vpop.permute.xlu0 %1478 }
 0x366   : > { %1491 = vmatpush.bf16.msra.mxu2 %v1479_v24 }
 0x377   : > { %1624 = vrot.lane.b32.xlu2 %v5274_v8, %s4831_s13 }
 0x37f   : > { %1649 = vrot.lane.b32.xlu2 %v5283_v17, %s4831_s13 }
 0x382   : > { %1602 = vadd.xlane.f32.xlu1 %v1601_v54 }
 0x38a   : > { %v1305_v56 = vpop.xlane.xlu1 %1304 }
 0x38b   : > { %4354 = vrcp.f32 %v1305_v56 }
 0x391   : > { %v4355_v61 = vpop.eup %4354 }
 0x392   : > { %v1319_v10 = vmul.f32 %v4355_v61, %v5374_v31 }
 0x394   : > { %v1323_v8 = vpack.c.bf16 %v1319_v10, %v1319_v10 }
 0x396   : > { %v1329_v4 = vunpack.c.l.b16 %v1323_v8 }
 0x3a2   : > { %v1451_v57 = vpop.xlane.xlu1 %1450 }
 0x3aa   : > { %v1308_v60 = vpop.xlane.xlu2 %1307 }
 0x3ab   : > { %4356 = vrcp.f32 %v1308_v60 }
 0x3ac   : > { %4358 = vrcp.f32 %v1451_v57 }
 0x3b1   : > { %v4357_v63 = vpop.eup %4356 }
 0x3b2   : > { %v1320_v51 = vmul.f32 %v4357_v63, %v5386_v50  ;;  %v1311_v2 = vpop.xlane.xlu1 %1310  ;;  %v1454_v3 = vpop.xlane.xlu2 %1453 }
 0x3b3   : > { %4360 = vrcp.f32 %v1454_v3  ;;  %v4359_v7 = vpop.eup %4358 }
 0x3b4   : > { %v1324_v17 = vpack.c.bf16 %v1320_v51, %v1320_v51  ;;  %4362 = vrcp.f32 %v1311_v2  ;;  %v1465_v50 = vmul.f32 %v4359_v7, %v5381_v41 }
 0x3b6   : > { %v1330_v0 = vunpack.c.l.b16 %v1324_v17  ;;  %v1469_v58 = vpack.c.bf16 %v1465_v50, %v1465_v50 }
 0x3b8   : > { %v1331_v6 = vpack.c.b16 %v1330_v0, %v1329_v4  ;;  %v1475_v62 = vunpack.c.l.b16 %v1469_v58  ;;  %v4096_v58 = vld [vmem:[%s5166_s0 + $0x38] sm:$0xff] }
 0x3b9   : > { %v4361_v11 = vpop.eup %4360  ;;  %1801 = vmatpush.bf16.msrb.mxu0 %v4096_v58 }
 0x3ba   : > { %3744 = vmatmul.msk.bf16.vlgmr.msrb.gmra.mxu2 %vm1126_vm1, %v1331_v6  ;;  %v1314_v12 = vpop.xlane.xlu2 %1313  ;;  %v4363_v13 = vpop.eup %4362  ;;  %v1466_v31 = vmul.f32 %v4361_v11, %v5391_v59 }
 0x3bb   : > { %4364 = vrcp.f32 %v1314_v12  ;;  %v1321_v14 = vmul.f32 %v4363_v13, %v5394_v48  ;;  %v1460_v21 = vpop.xlane.xlu0 %1459 }
 0x3bc   : > { %v1470_v16 = vpack.c.bf16 %v1466_v31, %v1466_v31 }
 0x3bd   : > { %v1325_v19 = vpack.c.bf16 %v1321_v14, %v1321_v14 }
 0x3be   : > { %v1476_v25 = vunpack.c.l.b16 %v1470_v16 }
 0x3bf   : > { %v1354_v28 = vunpack.c.l.b16 %v1325_v19 }
 0x3c0   : > { %v1477_v59 = vpack.c.b16 %v1476_v25, %v1475_v62  ;;  %v4095_v25 = vld [vmem:[%s5166_s0 + $0x30] sm:$0xff]  ;;  %v4093_v62 = vld [vmem:[%s5166_s0 + $0x20] sm:$0xff] }
 0x3c1   : > { %v4365_v20 = vpop.eup %4364  ;;  %1802 = vmatpush.bf16.msrb.mxu0 %v4095_v25 }
 0x3c2   : > { %v1322_v22 = vmul.f32 %v4365_v20, %v5400_v5  ;;  %v1457_v1 = vpop.xlane.xlu2 %1456 }
 0x3c3   : > { %4366 = vrcp.f32 %v1457_v1  ;;  %v1606_v52 = vpop.xlane.xlu0 %1605 }
 0x3c4   : > { %v1326_v26 = vpack.c.bf16 %v1322_v22, %v1322_v22  ;;  %4368 = vrcp.f32 %v1460_v21 }
 0x3c6   : > { %v1355_v30 = vunpack.c.l.b16 %v1326_v26  ;;  %v4094_v26 = vld [vmem:[%s5166_s0 + $0x28] sm:$0xff] }
 0x3c7   : > { %1803 = vmatpush.bf16.msrb.mxu0 %v4094_v26 }
 0x3c8   : > { %v1356_v32 = vpack.c.b16 %v1355_v30, %v1354_v28  ;;  %v4092_v28 = vld [vmem:[%s5166_s0 + $0x18] sm:$0xff]  ;;  %v4091_v30 = vld [vmem:[%s5166_s0 + $0x10] sm:$0xff] }
 0x3c9   : > { %v4367_v41 = vpop.eup %4366 }
 0x3ca   : > { %v1504_v33 = vpop.permute.xlu1 %1503  ;;  %3745 = vmatmul.msk.bf16.vlgmr.msra.gmra.mxu3 %vm1126_vm1, %v1356_v32  ;;  %3748 = vmatmul.msk.bf16.vlgmr.msra.gmra.mxu2 %vm1126_vm1, %v1477_v59  ;;  %v1597_v48 = vpop.xlane.xlu2 %1596  ;;  %v1467_v5 = vmul.f32 %v4367_v41, %v5413_v27  ;;  %v4090_v59 = vld [vmem:[%s5166_s0 + $0x8] sm:$0xff]  ;;  %v4089_v32 = vld [vmem:[%s5166_s0] sm:$0xff] }
 0x3cb   : > { %v4369_v34 = vpop.eup %4368  ;;  %1516 = vmatpush.bf16.msrb.mxu3 %v1504_v33  ;;  %4370 = vrcp.f32 %v1597_v48  ;;  %1804 = vmatpush.bf16.msrb.mxu0 %v4093_v62 }
 0x3cc   : > { %v1468_v18 = vmul.f32 %v4369_v34, %v5405_v15  ;;  %v1471_v35 = vpack.c.bf16 %v1467_v5, %v1467_v5 }
 0x3ce   : > { %v1472_v36 = vpack.c.bf16 %v1468_v18, %v1468_v18  ;;  %v1500_v39 = vunpack.c.l.b16 %v1471_v35 }
 0x3cf   : > { %1805 = vmatpush.bf16.msrb.mxu0 %v4092_v28 }
 0x3d0   : > { %v1501_v40 = vunpack.c.l.b16 %v1472_v36 }
 0x3d1   : > { %v4371_v9 = vpop.eup %4370 }
 0x3d2   : > { %v1600_v37 = vpop.xlane.xlu2 %1599  ;;  %v1611_v42 = vmul.f32 %v4371_v9, %v5422_v38  ;;  %v1502_v43 = vpack.c.b16 %v1501_v40, %v1500_v39 }
 0x3d3   : > { %4372 = vrcp.f32 %v1600_v37  ;;  %1806 = vmatpush.bf16.msrb.mxu0 %v4091_v30 }
 0x3d4   : > { %v1615_v46 = vpack.c.bf16 %v1611_v42, %v1611_v42  ;;  %4374 = vrcp.f32 %v1606_v52 }
 0x3d6   : > { %v1621_v15 = vunpack.c.l.b16 %v1615_v46  ;;  %v1198_v51 = vpop.f32.mrf.mxu3 }
 0x3d7   : > { %1807 = vmatpush.bf16.msrb.mxu0 %v4090_v59 }
 0x3d9   : > { %v4373_v45 = vpop.eup %4372 }
 0x3da   : > { %v1612_v49 = vmul.f32 %v4373_v45, %v5432_v44  ;;  %3749 = vmatmul.msk.bf16.vlgmr.msrb.gmra.mxu3 %vm1126_vm1, %v1502_v43  ;;  %v1625_v27 = vpop.permute.xlu2 %1624  ;;  %v4375_v54 = vpop.eup %4374 }
 0x3db   : > { %1637 = vmatpush.bf16.msrb.mxu2 %v1625_v27  ;;  %v1614_v56 = vmul.f32 %v4375_v54, %v5416_v29  ;;  %1808 = vmatpush.bf16.msrb.mxu0 %v4089_v32 }
 0x3dc   : > { %v1616_v55 = vpack.c.bf16 %v1612_v49, %v1612_v49 }
 0x3dd   : > { %v1618_v57 = vpack.c.bf16 %v1614_v56, %v1614_v56 }
 0x3de   : > { %v1622_v23 = vunpack.c.l.b16 %v1616_v55  ;;  %v1200_v2 = vpop.f32.mrf.mxu3 }
 0x3df   : > { %v1647_v10 = vunpack.c.l.b16 %v1618_v57 }
 0x3e0   : > { %v1623_v24 = vpack.c.b16 %v1622_v23, %v1621_v15 }
 0x3e2   : > { %3752 = vmatmul.msk.bf16.vlgmr.msrb.gmra.mxu2 %vm1126_vm1, %v1623_v24  ;;  %v1650_v47 = vpop.permute.xlu2 %1649 }
 0x3e3   : > { %1662 = vmatpush.bf16.msra.mxu3 %v1650_v47 }
 0x3e6   : > { %v5464_v3 = vpop.f32.mrf.mxu3 }
 0x3ee   : > { %v5466_v4 = vpop.f32.mrf.mxu3 }
 0x3f5   : > { %v1603_v38 = vpop.xlane.xlu1 %1602 }
 0x3f6   : > { %4376 = vrcp.f32 %v1603_v38 }
 0x3fc   : > { %v4377_v44 = vpop.eup %4376 }
 0x3fd   : > { %v1613_v60 = vmul.f32 %v4377_v44, %v5440_v53 }
 0x3ff   : > { %v1617_v61 = vpack.c.bf16 %v1613_v60, %v1613_v60 }
 0x401   : > { %v1646_v63 = vunpack.c.l.b16 %v1617_v61 }
 0x403   : > { %v1648_v8 = vpack.c.b16 %v1647_v10, %v1646_v63  ;;  %v4308_v63 = vld [vmem:[%s798_s20] ss:$0 sm:$0xff] }
 0x405   : > { %3753 = vmatmul.msk.bf16.vlgmr.msra.gmra.mxu3 %vm1126_vm1, %v1648_v8 }
 0x43d   : > { %v1347_v17 = vpop.f32.mrf.mxu2 }
 0x445   : > { %v1349_v0 = vpop.f32.mrf.mxu2 }
 0x446   : > { %v4278_v6 = vpack.i.bf16 %v1349_v0, %v1347_v17  ;;  %v4429_v0 = vld [vmem:[#allocation19 + $0x8] sm:$0xff] }
 0x448   : > { %4279 = vrot.lane.b32.xlu0 %v4278_v6, %s4831_s13 }
 0x44d   : > { %v1372_v29 = vpop.f32.mrf.mxu3  ;;  %v1493_v53 = vpop.f32.mrf.mxu2 }
 0x455   : > { %v1374_v7 = vpop.f32.mrf.mxu3  ;;  %v1495_v11 = vpop.f32.mrf.mxu2 }
 0x456   : > { %v4293_v12 = vpack.i.bf16 %v1374_v7, %v1372_v29  ;;  %v4283_v13 = vpack.i.bf16 %v1495_v11, %v1493_v53  ;;  %v4430_v7 = vld [vmem:[#allocation19 + $0x10] sm:$0xff] }
 0x458   : > { %4284 = vrot.lane.b32.xlu2 %v4283_v13, %s4830_s30  ;;  %4294 = vrot.lane.b32.xlu1 %v4293_v12, %s4831_s13 }
 0x45d   : > { %v1518_v50 = vpop.f32.mrf.mxu3 }
 0x465   : > { %v1639_v31 = vpop.f32.mrf.mxu2  ;;  %v1520_v20 = vpop.f32.mrf.mxu3 }
 0x466   : > { %v4298_v19 = vpack.i.bf16 %v1520_v20, %v1518_v50 }
 0x46d   : > { %v1641_v14 = vpop.f32.mrf.mxu2 }
 0x46e   : > { %v4288_v16 = vpack.i.bf16 %v1641_v14, %v1639_v31  ;;  %v4431_v31 = vld [vmem:[#allocation19 + $0x18] sm:$0xff]  ;;  %v4832_v14 = vmov 128.0  }
 0x46f   : > { %4378 = vrcp.f32 %v4832_v14  ;;  %v3860_v14 = vld [vmem:[%s5180_s10 + $0x88] sm:$0xf] }
 0x470   : > { %4289 = vrot.lane.b32.xlu2 %v4288_v16, %s4829_s19 }
 0x475   : > { %v4379_v16 = vpop.eup %4378 }
 0x476   : > { %v1835_v20 = vmul.f32 128.0, %v4379_v16  ;;  %vm1839_vm4 = vweird.f32 %v4379_v16 }
 0x478   : > { %4299 = vrot.lane.b32.xlu2 %v4298_v19, %s4830_s30  ;;  %v1836_v58 = vsub.f32 1.0, %v1835_v20 }
 0x47a   : > { %v1837_v19 = vmul.f32 %v4379_v16, %v1836_v58 }
 0x488   : > { %v1664_v21 = vpop.f32.mrf.mxu3 }
 0x490   : > { %v1666_v22 = vpop.f32.mrf.mxu3 }
 0x491   : > { %v4303_v1 = vpack.i.bf16 %v1666_v22, %v1664_v21  ;;  %v1838_v21 = vadd.f32 %v4379_v16, %v1837_v19  ;;  %v4114_v19 = vld [vmem:[%s5180_s10 + $0x8c] sm:$0xf] }
 0x493   : > { %4304 = vrot.lane.b32.xlu0 %v4303_v1, %s4829_s19  ;;  %v5501_v22 = vsel %vm1839_vm4, %v4379_v16, %v1838_v21  ;;  %v4116_v16 = vld [vmem:[%s5180_s10 + $0x94] sm:$0xf0]  ;;  %v3862_v21 = vld [vmem:[%s5180_s10 + $0x98] sm:$0xf0] }
 0x494   : > { %v3861_v58 = vor.u32 %v4116_v16, %v3860_v14 }
 0x4b2   : > { %v4285_v41 = vpop.permute.xlu2 %4284 }
 0x4b3   : > { %v4287_v35 = vunpack.i.h.bf16 %v4285_v41  ;;  %v4286_v36 = vunpack.i.l.bf16 %v4285_v41 }
 0x4ba   : > { %v4280_v33 = vpop.permute.xlu0 %4279 }
 0x4bb   : > { %v4282_v48 = vunpack.i.h.bf16 %v4280_v33  ;;  %v4281_v34 = vunpack.i.l.bf16 %v4280_v33 }
 0x4bd   : > { %v1718_v5 = vsel %vm1075_vm0, %v1200_v2, %v4282_v48  ;;  %v1717_v18 = vsel %vm1075_vm0, %v1198_v51, %v4281_v34  ;;  %v4428_v2 = vld [vmem:[#allocation19] sm:$0xff] }
 0x4be   : > { %v1722_v40 = vsel %vm1721_vm2, %v1717_v18, %v4286_v36  ;;  %v1723_v42 = vsel %vm1721_vm2, %v1718_v5, %v4287_v35 }
 0x4ca   : > { %v4290_v37 = vpop.permute.xlu2 %4289  ;;  %v4295_v49 = vpop.permute.xlu1 %4294 }
 0x4cb   : > { %v4292_v9 = vunpack.i.h.bf16 %v4290_v37  ;;  %v4291_v39 = vunpack.i.l.bf16 %v4290_v37  ;;  %v4297_v55 = vunpack.i.h.bf16 %v4295_v49  ;;  %v4296_v15 = vunpack.i.l.bf16 %v4295_v49  ;;  %v3900_v37 = vld [vmem:[%s5180_s10 + $0xe0] sm:$0xf] }
 0x4cd   : > { %v1727_v43 = vsel %vm1726_vm3, %v1722_v40, %v4291_v39  ;;  %v1728_v45 = vsel %vm1726_vm3, %v1723_v42, %v4292_v9  ;;  %v1720_v52 = vsel %vm1075_vm0, %v5466_v4, %v4297_v55  ;;  %v1719_v38 = vsel %vm1075_vm0, %v5464_v3, %v4296_v15  ;;  %v4127_v9 = vld [vmem:[%s5180_s10 + $0xec] sm:$0xf0]  ;;  %v4125_v39 = vld [vmem:[%s5180_s10 + $0xe4] sm:$0xf]  ;;  %v3902_v42 = vld [vmem:[%s5180_s10 + $0xf0] sm:$0xf0] }
 0x4ce   : > { %v1731_v46 = vpack.c.bf16 %v1728_v45, %v1727_v43  ;;  %v3901_v40 = vor.u32 %v4127_v9, %v3900_v37  ;;  %v3908_v43 = vld [vmem:[%s5180_s10 + $0xe8] sm:$0xf]  ;;  %v4128_v45 = vld [vmem:[%s5180_s10 + $0xf4] sm:$0xf0]  ;;  %v3910_v55 = vld [vmem:[%s5180_s10 + $0xf8] sm:$0xf0] }
 0x4cf   : > { %v3909_v49 = vor.u32 %v4128_v45, %v3908_v43  ;;  %v3820_v9 = vld [vmem:[%s5180_s10 + $0x40] sm:$0xf]  ;;  %v3822_v43 = vld [vmem:[%s5180_s10 + $0x50] sm:$0xf0]  ;;  %v3828_v45 = vld [vmem:[%s5180_s10 + $0x48] sm:$0xf] }
 0x4d0   : > { %1809 = vmatmul.bf16.vlgmr.msrb.gmra.mxu0 %v1731_v46  ;;  %v3905_v46 = vor.u32 %v4125_v39, %v3902_v42  ;;  %2131 = vmatpush.bf16.msrb.mxu1 %v3901_v40  ;;  %v4107_v39 = vld [vmem:[%s5180_s10 + $0x4c] sm:$0xf0]  ;;  %v4105_v40 = vld [vmem:[%s5180_s10 + $0x44] sm:$0xf] }
 0x4d1   : > { %2169 = vmatpush.bf16.msrb.mxu3 %v3909_v49  ;;  %v3821_v42 = vor.u32 %v4107_v39, %v3820_v9  ;;  %v3825_v49 = vor.u32 %v4105_v40, %v3822_v43  ;;  %v4310_v39 = vld [vmem:[%s672_s22] ss:$0 sm:$0xff] }
 0x4d2   : > { %v4300_v27 = vpop.permute.xlu2 %4299  ;;  %2150 = vmatpush.bf16.msra.mxu2 %v3905_v46  ;;  %v4108_v46 = vld [vmem:[%s5180_s10 + $0x54] sm:$0xf0] }
 0x4d3   : > { %v4302_v23 = vunpack.i.h.bf16 %v4300_v27  ;;  %v4301_v24 = vunpack.i.l.bf16 %v4300_v27  ;;  %v4126_v27 = vld [vmem:[%s5180_s10 + $0xec] sm:$0xf] }
 0x4d4   : > { %v3913_v15 = vor.u32 %v4126_v27, %v3910_v55  ;;  %v3829_v27 = vor.u32 %v4108_v46, %v3828_v45  ;;  %v4106_v55 = vld [vmem:[%s5180_s10 + $0x4c] sm:$0xf] }
 0x4d5   : > { %v1724_v44 = vsel %vm1721_vm2, %v1719_v38, %v4301_v24  ;;  %v1725_v57 = vsel %vm1721_vm2, %v1720_v52, %v4302_v23  ;;  %v3884_v23 = vld [vmem:[%s5180_s10 + $0xc0] sm:$0xf]  ;;  %v4123_v24 = vld [vmem:[%s5180_s10 + $0xcc] sm:$0xf0]  ;;  %v3886_v38 = vld [vmem:[%s5180_s10 + $0xd0] sm:$0xf0] }
 0x4d6   : > { %2188 = vmatpush.bf16.msra.mxu0 %v3913_v15  ;;  %v3885_v52 = vor.u32 %v4123_v24, %v3884_v23  ;;  %v3830_v15 = vld [vmem:[%s5180_s10 + $0x58] sm:$0xf0]  ;;  %v3804_v24 = vld [vmem:[%s5180_s10 + $0x20] sm:$0xf] }
 0x4d7   : > { %v3833_v23 = vor.u32 %v4106_v55, %v3830_v15 }
 0x4d8   : > { %2132 = vmatpush.bf16.msrb.mxu1 %v3885_v52  ;;  %v4101_v52 = vld [vmem:[%s5180_s10 + $0x24] sm:$0xf] }
 0x505   : > { %v4305_v47 = vpop.permute.xlu0 %4304 }
 0x506   : > { %v4307_v54 = vunpack.i.h.bf16 %v4305_v47  ;;  %v4306_v56 = vunpack.i.l.bf16 %v4305_v47  ;;  %v4121_v47 = vld [vmem:[%s5180_s10 + $0xc4] sm:$0xf] }
 0x508   : > { %v1729_v60 = vsel %vm1726_vm3, %v1724_v44, %v4306_v56  ;;  %v1730_v61 = vsel %vm1726_vm3, %v1725_v57, %v4307_v54  ;;  %v3892_v54 = vld [vmem:[%s5180_s10 + $0xc8] sm:$0xf]  ;;  %v4124_v56 = vld [vmem:[%s5180_s10 + $0xd4] sm:$0xf0]  ;;  %v3889_v44 = vor.u32 %v4121_v47, %v3886_v38  ;;  %v4103_v47 = vld [vmem:[%s5180_s10 + $0x2c] sm:$0xf0] }
 0x509   : > { %v1732_v10 = vpack.c.bf16 %v1730_v61, %v1729_v60  ;;  %v3893_v57 = vor.u32 %v4124_v56, %v3892_v54  ;;  %v4122_v60 = vld [vmem:[%s5180_s10 + $0xcc] sm:$0xf]  ;;  %v3894_v61 = vld [vmem:[%s5180_s10 + $0xd8] sm:$0xf0]  ;;  %v3805_v54 = vor.u32 %v4103_v47, %v3804_v24  ;;  %v3806_v56 = vld [vmem:[%s5180_s10 + $0x30] sm:$0xf0] }
 0x50a   : > { %2151 = vmatpush.bf16.msra.mxu2 %v3889_v44  ;;  %v3812_v44 = vld [vmem:[%s5180_s10 + $0x28] sm:$0xf] }
 0x50b   : > { %1814 = vmatmul.bf16.gmra.mxu0 %v1732_v10  ;;  %v3897_v10 = vor.u32 %v4122_v60, %v3894_v61  ;;  %2170 = vmatpush.bf16.msrb.mxu3 %v3893_v57  ;;  %v4104_v57 = vld [vmem:[%s5180_s10 + $0x34] sm:$0xf0]  ;;  %v3809_v61 = vor.u32 %v4101_v52, %v3806_v56 }
 0x50d   : > { %2189 = vmatpush.bf16.msra.mxu0 %v3897_v10  ;;  %v3813_v10 = vor.u32 %v4104_v57, %v3812_v44 }
 0x54d   : > { %v1810_v8 = vpop.f32.mrf.mxu0 }
 0x54e   : > { %v1811_v51 = vadd.f32 %v4308_v63, %v1810_v8  ;;  %v4119_v8 = vld [vmem:[%s5180_s10 + $0xac] sm:$0xf0] }
 0x550   : > { %v1820_v3 = vadd.f32 %v4428_v2, %v1811_v51  ;;  %v4117_v51 = vld [vmem:[%s5180_s10 + $0xa4] sm:$0xf] }
 0x552   : > { %1826 = vadd.xlane.f32.xlu2 %v1820_v3 }
 0x555   : > { %v1812_v17 = vpop.f32.mrf.mxu0 }
 0x556   : > { %v1813_v4 = vadd.f32 %v4308_v63, %v1812_v17  ;;  %v3876_v17 = vld [vmem:[%s5180_s10 + $0xa8] sm:$0xf] }
 0x558   : > { %v1821_v6 = vadd.f32 %v4429_v0, %v1813_v4  ;;  %v4120_v4 = vld [vmem:[%s5180_s10 + $0xb4] sm:$0xf0] }
 0x55a   : > { %1828 = vadd.xlane.f32.xlu0 %v1821_v6 }
 0x588   : > { %v1815_v29 = vpop.f32.mrf.mxu0 }
 0x589   : > { %v1816_v53 = vadd.f32 %v4308_v63, %v1815_v29  ;;  %v4118_v29 = vld [vmem:[%s5180_s10 + $0xac] sm:$0xf] }
 0x58b   : > { %v1822_v11 = vadd.f32 %v4430_v7, %v1816_v53  ;;  %v3878_v53 = vld [vmem:[%s5180_s10 + $0xb8] sm:$0xf0] }
 0x58c   : > { %v3881_v7 = vor.u32 %v4118_v29, %v3878_v53  ;;  %v3796_v53 = vld [vmem:[%s5180_s10 + $0x8] sm:$0xf] }
 0x58d   : > { %1830 = vadd.xlane.f32.xlu1 %v1822_v11 }
 0x58e   : > { %2190 = vmatpush.bf16.msra.mxu0 %v3881_v7  ;;  %v4100_v7 = vld [vmem:[%s5180_s10 + $0x14] sm:$0xf0] }
 0x590   : > { %v1817_v12 = vpop.f32.mrf.mxu0 }
 0x591   : > { %v1818_v13 = vadd.f32 %v4308_v63, %v1817_v12  ;;  %v3868_v63 = vld [vmem:[%s5180_s10 + $0xa0] sm:$0xf]  ;;  %v4115_v12 = vld [vmem:[%s5180_s10 + $0x8c] sm:$0xf0] }
 0x592   : > { %v3869_v2 = vor.u32 %v4119_v8, %v3868_v63  ;;  %v4102_v63 = vld [vmem:[%s5180_s10 + $0x2c] sm:$0xf]  ;;  %v3814_v8 = vld [vmem:[%s5180_s10 + $0x38] sm:$0xf0] }
 0x593   : > { %v1823_v50 = vadd.f32 %v4431_v31, %v1818_v13  ;;  %v4113_v13 = vld [vmem:[%s5180_s10 + $0x84] sm:$0xf] }
 0x594   : > { %2133 = vmatpush.bf16.msrb.mxu1 %v3869_v2  ;;  %v3817_v2 = vor.u32 %v4102_v63, %v3814_v8 }
 0x595   : > { %1832 = vadd.xlane.f32.xlu2 %v1823_v50 }
 0x5c5   : > { %v1827_v1 = vpop.xlane.xlu2 %1826 }
 0x5c6   : > { %v1841_v25 = vmul.f32 %v5501_v22, %v1827_v1  ;;  %v3865_v1 = vor.u32 %v4114_v19, %v3862_v21 }
 0x5c8   : > { %v5504_v26 = vsub.f32 %v1820_v3, %v1841_v25  ;;  %v3870_v3 = vld [vmem:[%s5180_s10 + $0xb0] sm:$0xf0]  ;;  %v3836_v25 = vld [vmem:[%s5180_s10 + $0x60] sm:$0xf]  ;;  %2191 = vmatpush.bf16.msra.mxu0 %v3865_v1 }
 0x5c9   : > { %v3873_v0 = vor.u32 %v4117_v51, %v3870_v3  ;;  %v3788_v51 = vld [vmem:[%s5180_s10] sm:$0xf]  ;;  %v4099_v3 = vld [vmem:[%s5180_s10 + $0xc] sm:$0xf0] }
 0x5ca   : > { %v1849_v62 = vmul.f32 %v5504_v26, %v5504_v26 }
 0x5cb   : > { %2152 = vmatpush.bf16.msra.mxu2 %v3873_v0 }
 0x5cc   : > { %1853 = vadd.xlane.f32.xlu0 %v1849_v62  ;;  %v4111_v62 = vld [vmem:[%s5180_s10 + $0x6c] sm:$0xf0] }
 0x5cd   : > { %v1829_v28 = vpop.xlane.xlu0 %1828 }
 0x5ce   : > { %v1842_v30 = vmul.f32 %v5501_v22, %v1829_v28  ;;  %v4109_v28 = vld [vmem:[%s5180_s10 + $0x64] sm:$0xf] }
 0x5d0   : > { %v5509_v59 = vsub.f32 %v1821_v6, %v1842_v30  ;;  %v3877_v6 = vor.u32 %v4120_v4, %v3876_v17  ;;  %v3837_v30 = vor.u32 %v4111_v62, %v3836_v25  ;;  %v4097_v17 = vld [vmem:[%s5180_s10 + $0x4] sm:$0xf]  ;;  %v3790_v4 = vld [vmem:[%s5180_s10 + $0x10] sm:$0xf0] }
 0x5d1   : > { %v3793_v29 = vor.u32 %v4097_v17, %v3790_v4 }
 0x5d2   : > { %v1850_v32 = vmul.f32 %v5509_v59, %v5509_v59  ;;  %2171 = vmatpush.bf16.msrb.mxu3 %v3877_v6  ;;  %v3789_v6 = vor.u32 %v4099_v3, %v3788_v51 }
 0x5d4   : > { %1855 = vadd.xlane.f32.xlu2 %v1850_v32  ;;  %v3838_v32 = vld [vmem:[%s5180_s10 + $0x70] sm:$0xf0] }
 0x5d6   : > { %2172 = vmatpush.bf16.msrb.mxu3 %v3861_v58 }
 0x600   : > { %v1831_v41 = vpop.xlane.xlu1 %1830 }
 0x601   : > { %v1843_v33 = vmul.f32 %v5501_v22, %v1831_v41  ;;  %v3844_v41 = vld [vmem:[%s5180_s10 + $0x68] sm:$0xf] }
 0x603   : > { %v5514_v48 = vsub.f32 %v1822_v11, %v1843_v33  ;;  %v3852_v11 = vld [vmem:[%s5180_s10 + $0x80] sm:$0xf]  ;;  %v4112_v33 = vld [vmem:[%s5180_s10 + $0x74] sm:$0xf0] }
 0x604   : > { %v3853_v31 = vor.u32 %v4115_v12, %v3852_v11  ;;  %v3797_v11 = vor.u32 %v4100_v7, %v3796_v53  ;;  %v4098_v12 = vld [vmem:[%s5180_s10 + $0xc] sm:$0xf] }
 0x605   : > { %v1851_v34 = vmul.f32 %v5514_v48, %v5514_v48 }
 0x606   : > { %2134 = vmatpush.bf16.msrb.mxu1 %v3853_v31 }
 0x607   : > { %1857 = vadd.xlane.f32.xlu0 %v1851_v34  ;;  %v3841_v34 = vor.u32 %v4109_v28, %v3838_v32 }
 0x608   : > { %v1833_v5 = vpop.xlane.xlu2 %1832 }
 0x609   : > { %v1844_v18 = vmul.f32 %v5501_v22, %v1833_v5  ;;  %v3845_v5 = vor.u32 %v4112_v33, %v3844_v41 }
 0x60a   : > { %2135 = vmatpush.bf16.msrb.mxu1 %v3837_v30 }
 0x60b   : > { %v5519_v35 = vsub.f32 %v1823_v50, %v1844_v18  ;;  %v3854_v50 = vld [vmem:[%s5180_s10 + $0x90] sm:$0xf0]  ;;  %v4110_v18 = vld [vmem:[%s5180_s10 + $0x6c] sm:$0xf]  ;;  %2173 = vmatpush.bf16.msrb.mxu3 %v3845_v5 }
 0x60c   : > { %v3857_v20 = vor.u32 %v4113_v13, %v3854_v50  ;;  %v3798_v13 = vld [vmem:[%s5180_s10 + $0x18] sm:$0xf0]  ;;  %v4309_v5 = vld [vmem:[%s663_s18] ss:$0 sm:$0xff] }
 0x60d   : > { %v1852_v36 = vmul.f32 %v5519_v35, %v5519_v35  ;;  %v3801_v31 = vor.u32 %v4098_v12, %v3798_v13 }
 0x60e   : > { %2153 = vmatpush.bf16.msra.mxu2 %v3857_v20  ;;  %2136 = vmatpush.bf16.msrb.mxu1 %v3821_v42 }
 0x60f   : > { %1859 = vadd.xlane.f32.xlu1 %v1852_v36  ;;  %v3846_v36 = vld [vmem:[%s5180_s10 + $0x78] sm:$0xf0]  ;;  %2174 = vmatpush.bf16.msrb.mxu3 %v3829_v27 }
 0x610   : > { %v3849_v37 = vor.u32 %v4110_v18, %v3846_v36 }
 0x612   : > { %2154 = vmatpush.bf16.msra.mxu2 %v3841_v34  ;;  %2192 = vmatpush.bf16.msra.mxu0 %v3849_v37 }
 0x613   : > { %2137 = vmatpush.bf16.msrb.mxu1 %v3805_v54  ;;  %2175 = vmatpush.bf16.msrb.mxu3 %v3813_v10 }
 0x616   : > { %2155 = vmatpush.bf16.msra.mxu2 %v3825_v49  ;;  %2193 = vmatpush.bf16.msra.mxu0 %v3833_v23 }
 0x617   : > { %2138 = vmatpush.bf16.msrb.mxu1 %v3789_v6  ;;  %2176 = vmatpush.bf16.msrb.mxu3 %v3797_v11 }
 0x61a   : > { %2156 = vmatpush.bf16.msra.mxu2 %v3809_v61  ;;  %2194 = vmatpush.bf16.msra.mxu0 %v3817_v2 }
 0x61e   : > { %2157 = vmatpush.bf16.msra.mxu2 %v3793_v29  ;;  %2195 = vmatpush.bf16.msra.mxu0 %v3801_v31 }
 0x63f   : > { %v1854_v38 = vpop.xlane.xlu0 %1853 }
 0x640   : > { %v1861_v60 = vmul.f32 %v1854_v38, %v5501_v22 }
 0x642   : > { %v1865_v0 = vadd.f32 1e-12, %v1861_v60 }
 0x644   : > { %4380 = vrsqrt.f32 %v1865_v0  ;;  %vm1875_vm6 = vweird.f32 %v1865_v0 }
 0x647   : > { %v1856_v50 = vpop.xlane.xlu2 %1855 }
 0x648   : > { %v1862_v14 = vmul.f32 %v1856_v50, %v5501_v22 }
 0x64a   : > { %v4381_v16 = vpop.eup %4380  ;;  %v1866_v20 = vadd.f32 1e-12, %v1862_v14 }
 0x64b   : > { %v1870_v58 = vmul.f32 %v4381_v16, %v1865_v0  ;;  %vm1876_vm5 = vweird.f32 %v4381_v16 }
 0x64c   : > { %4382 = vrsqrt.f32 %v1866_v20  ;;  %vm1877_vm7 = vmor %vm1875_vm6, %vm1876_vm5  ;;  %vm1885_vm9 = vweird.f32 %v1866_v20 }
 0x64d   : > { %v1871_v19 = vmul.f32 %v4381_v16, %v1870_v58 }
 0x64f   : > { %v1872_v21 = vmul.f32 0.5, %v1871_v19 }
 0x651   : > { %v1873_v1 = vsub.f32 1.5, %v1872_v21 }
 0x652   : > { %v4383_v25 = vpop.eup %4382 }
 0x653   : > { %v1874_v62 = vmul.f32 %v4381_v16, %v1873_v1  ;;  %v1880_v28 = vmul.f32 %v4383_v25, %v1866_v20  ;;  %vm1886_vm8 = vweird.f32 %v4383_v25 }
 0x654   : > { %vm1887_vm10 = vmor %vm1885_vm9, %vm1886_vm8 }
 0x655   : > { %v1881_v30 = vmul.f32 %v4383_v25, %v1880_v28  ;;  %v1878_v32 = vsel %vm1877_vm7, %v4381_v16, %v1874_v62 }
 0x656   : > { %v1909_v34 = vmul.f32 %v1878_v32, %v5504_v26 }
 0x657   : > { %v1882_v41 = vmul.f32 0.5, %v1881_v30 }
 0x658   : > { %v1916_v9 = vmul.f32 %v4309_v5, %v1909_v34 }
 0x659   : > { %v1883_v33 = vsub.f32 1.5, %v1882_v41 }
 0x65a   : > { %v5595_v42 = vadd.f32 %v4310_v39, %v1916_v9 }
 0x65b   : > { %v1884_v18 = vmul.f32 %v4383_v25, %v1883_v33 }
 0x65d   : > { %v1888_v36 = vsel %vm1887_vm10, %v4383_v25, %v1884_v18 }
 0x65e   : > { %v1910_v37 = vmul.f32 %v1888_v36, %v5509_v59 }
 0x660   : > { %v1917_v40 = vmul.f32 %v4309_v5, %v1910_v37 }
 0x662   : > { %v5597_v43 = vadd.f32 %v4310_v39, %v1917_v40 }
 0x664   : > { %v1927_v45 = vpack.c.bf16 %v5597_v43, %v5595_v42 }
 0x666   : > { %2139 = vmatmul.bf16.vlgmr.msrb.gmra.mxu1 %v1927_v45  ;;  %2158 = vmatmul.bf16.vlgmr.msra.gmra.mxu2 %v1927_v45 }
 0x667   : > { %2177 = vmatmul.bf16.vlgmr.msrb.gmra.mxu3 %v1927_v45  ;;  %2196 = vmatmul.bf16.vlgmr.msra.gmra.mxu0 %v1927_v45 }
 0x67a   : > { %v1858_v26 = vpop.xlane.xlu0 %1857 }
 0x67b   : > { %v1863_v46 = vmul.f32 %v1858_v26, %v5501_v22 }
 0x67d   : > { %v1867_v49 = vadd.f32 1e-12, %v1863_v46 }
 0x67f   : > { %4384 = vrsqrt.f32 %v1867_v49  ;;  %vm1895_vm12 = vweird.f32 %v1867_v49 }
 0x682   : > { %v1860_v59 = vpop.xlane.xlu1 %1859 }
 0x683   : > { %v1864_v27 = vmul.f32 %v1860_v59, %v5501_v22 }
 0x685   : > { %v4385_v55 = vpop.eup %4384  ;;  %v1868_v15 = vadd.f32 1e-12, %v1864_v27 }
 0x686   : > { %v1890_v23 = vmul.f32 %v4385_v55, %v1867_v49  ;;  %vm1896_vm11 = vweird.f32 %v4385_v55 }
 0x687   : > { %4386 = vrsqrt.f32 %v1868_v15  ;;  %vm1897_vm13 = vmor %vm1895_vm12, %vm1896_vm11  ;;  %vm1905_vm15 = vweird.f32 %v1868_v15 }
 0x688   : > { %v1891_v24 = vmul.f32 %v4385_v55, %v1890_v23 }
 0x68a   : > { %v1892_v47 = vmul.f32 0.5, %v1891_v24 }
 0x68c   : > { %v1893_v52 = vsub.f32 1.5, %v1892_v47 }
 0x68d   : > { %v4387_v38 = vpop.eup %4386 }
 0x68e   : > { %v1894_v54 = vmul.f32 %v4385_v55, %v1893_v52  ;;  %v1900_v56 = vmul.f32 %v4387_v38, %v1868_v15  ;;  %vm1906_vm14 = vweird.f32 %v4387_v38 }
 0x68f   : > { %vm1907_vm0 = vmor %vm1905_vm15, %vm1906_vm14 }
 0x690   : > { %v1901_v44 = vmul.f32 %v4387_v38, %v1900_v56  ;;  %v1898_v57 = vsel %vm1897_vm13, %v4385_v55, %v1894_v54 }
 0x691   : > { %v1911_v10 = vmul.f32 %v1898_v57, %v5514_v48  ;;  %v1961_v48 = vld [vmem:[%s5182_s16] sm:$0xf] }
 0x692   : > { %v1902_v60 = vmul.f32 0.5, %v1901_v44  ;;  %v5612_v6 = vperm.slane %v1961_v48, 0  ;;  %v5614_v29 = vperm.slane %v1961_v48, 3  ;;  %v5625_v13 = vperm.slane %v1961_v48, 1 }
 0x693   : > { %v1918_v2 = vmul.f32 %v4309_v5, %v1911_v10  ;;  %v5630_v50 = vperm.slane %v1961_v48, 2 }
 0x694   : > { %v1903_v61 = vsub.f32 1.5, %v1902_v60 }
 0x695   : > { %v5605_v17 = vadd.f32 %v4310_v39, %v1918_v2 }
 0x696   : > { %v1904_v63 = vmul.f32 %v4387_v38, %v1903_v61 }
 0x698   : > { %v1908_v8 = vsel %vm1907_vm0, %v4387_v38, %v1904_v63 }
 0x699   : > { %v1912_v51 = vmul.f32 %v1908_v8, %v5519_v35 }
 0x69b   : > { %v1919_v3 = vmul.f32 %v4309_v5, %v1912_v51 }
 0x69d   : > { %v5607_v4 = vadd.f32 %v4310_v39, %v1919_v3 }
 0x69f   : > { %v1928_v0 = vpack.c.bf16 %v5607_v4, %v5605_v17 }
 0x6a1   : > { %2144 = vmatmul.bf16.gmra.mxu1 %v1928_v0  ;;  %2163 = vmatmul.bf16.gmra.mxu2 %v1928_v0 }
 0x6a2   : > { %2182 = vmatmul.bf16.gmra.mxu3 %v1928_v0  ;;  %2201 = vmatmul.bf16.gmra.mxu0 %v1928_v0 }
 0x6e3   : > { %v2140_v53 = vpop.f32.mrf.mxu1 }
 0x6e4   : > { %v5617_v35 = vadd.f32 %v2140_v53, %v5612_v6  ;;  %v2197_v7 = vpop.f32.mrf.mxu0 }
 0x6e5   : > { %v5620_v11 = vadd.f32 %v2197_v7, %v5614_v29 }
 0x6e6   : > { %v5623_v12 = vmul.f32 0.70710677, %v5617_v35 }
 0x6e7   : > { %v5628_v31 = vmul.f32 0.70710677, %v5620_v11 }
 0x6e8   : > { %v2239_v14 = vmul.f32 %v5623_v12, %v5623_v12 }
 0x6e9   : > { %v2359_v16 = vmul.f32 %v5628_v31, %v5628_v31  ;;  %v2159_v20 = vpop.f32.mrf.mxu2 }
 0x6ea   : > { %v5636_v58 = vmin.f32 %v2239_v14, 16.0  ;;  %v5639_v19 = vadd.f32 %v2159_v20, %v5625_v13  ;;  %v2178_v21 = vpop.f32.mrf.mxu3 }
 0x6eb   : > { %v5641_v1 = vmin.f32 %v2359_v16, 16.0  ;;  %v5644_v25 = vadd.f32 %v2178_v21, %v5630_v50  ;;  %v2142_v9 = vpop.f32.mrf.mxu1 }
 0x6ec   : > { %v2241_v62 = vmul.f32 2.1237322e-06, %v5636_v58  ;;  %v2252_v28 = vmul.f32 3.8918573e-05, %v5636_v58  ;;  %v5651_v41 = vmul.f32 0.70710677, %v5639_v19  ;;  %v5666_v59 = vadd.f32 %v2142_v9, %v5612_v6  ;;  %v2199_v53 = vpop.f32.mrf.mxu0 }
 0x6ed   : > { %v2361_v30 = vmul.f32 2.1237322e-06, %v5641_v1  ;;  %v2372_v32 = vmul.f32 3.8918573e-05, %v5641_v1  ;;  %v5656_v37 = vmul.f32 0.70710677, %v5644_v25 }
 0x6ee   : > { %v2242_v33 = vadd.f32 0.00028619796, %v2241_v62  ;;  %v2253_v34 = vadd.f32 0.001143296, %v2252_v28  ;;  %v2279_v36 = vmul.f32 %v5651_v41, %v5651_v41  ;;  %v5676_v44 = vmul.f32 0.70710677, %v5666_v59 }
 0x6ef   : > { %v2362_v5 = vadd.f32 0.00028619796, %v2361_v30  ;;  %v2373_v18 = vadd.f32 0.001143296, %v2372_v32  ;;  %v2319_v46 = vmul.f32 %v5656_v37, %v5656_v37 }
 0x6f0   : > { %v2254_v39 = vmul.f32 %v2253_v34, %v5636_v58  ;;  %v2243_v40 = vmul.f32 %v2242_v33, %v5636_v58  ;;  %v5661_v26 = vmin.f32 %v2279_v36, 16.0  ;;  %v2399_v20 = vmul.f32 %v5676_v44, %v5676_v44 }
 0x6f1   : > { %v2374_v45 = vmul.f32 %v2373_v18, %v5641_v1  ;;  %v2363_v27 = vmul.f32 %v2362_v5, %v5641_v1  ;;  %v5672_v47 = vmin.f32 %v2319_v46, 16.0  ;;  %v2200_v34 = vadd.f32 %v2199_v53, %v5614_v29 }
 0x6f2   : > { %v2255_v49 = vadd.f32 0.014752088, %v2254_v39  ;;  %v2281_v15 = vmul.f32 2.1237322e-06, %v5661_v26  ;;  %v2292_v24 = vmul.f32 3.8918573e-05, %v5661_v26 }
 0x6f3   : > { %v2375_v55 = vadd.f32 0.014752088, %v2374_v45  ;;  %v2244_v52 = vadd.f32 0.0036580483, %v2243_v40  ;;  %v2364_v57 = vadd.f32 0.0036580483, %v2363_v27 }
 0x6f4   : > { %v2256_v23 = vmul.f32 %v2255_v49, %v5636_v58  ;;  %v2293_v56 = vadd.f32 0.001143296, %v2292_v24  ;;  %v2282_v61 = vadd.f32 0.00028619796, %v2281_v15  ;;  %v2321_v8 = vmul.f32 2.1237322e-06, %v5672_v47 }
 0x6f5   : > { %v2376_v38 = vmul.f32 %v2375_v55, %v5641_v1  ;;  %v2332_v51 = vmul.f32 3.8918573e-05, %v5672_v47  ;;  %v2245_v2 = vmul.f32 %v2244_v52, %v5636_v58  ;;  %v2365_v7 = vmul.f32 %v2364_v57, %v5641_v1 }
 0x6f6   : > { %v2257_v54 = vadd.f32 0.112945676, %v2256_v23  ;;  %v2294_v63 = vmul.f32 %v2293_v56, %v5661_v26  ;;  %v2283_v16 = vmul.f32 %v2282_v61, %v5661_v26  ;;  %v2322_v28 = vadd.f32 0.00028619796, %v2321_v8 }
 0x6f7   : > { %v2377_v60 = vadd.f32 0.112945676, %v2376_v38  ;;  %v2333_v30 = vadd.f32 0.001143296, %v2332_v51  ;;  %v2246_v32 = vadd.f32 0.05243302, %v2245_v2 }
 0x6f8   : > { %v2258_v10 = vmul.f32 %v2257_v54, %v5636_v58  ;;  %v2295_v48 = vadd.f32 0.014752088, %v2294_v63  ;;  %v2366_v18 = vadd.f32 0.05243302, %v2365_v7  ;;  %v5696_v39 = vmin.f32 %v2399_v20, 16.0 }
 0x6f9   : > { %v2378_v3 = vmul.f32 %v2377_v60, %v5641_v1  ;;  %v2284_v40 = vadd.f32 0.0036580483, %v2283_v16  ;;  %v2323_v45 = vmul.f32 %v2322_v28, %v5672_v47  ;;  %v2334_v46 = vmul.f32 %v2333_v30, %v5672_v47 }
 0x6fa   : > { %v2259_v0 = vadd.f32 0.4994258, %v2258_v10  ;;  %v2296_v62 = vmul.f32 %v2295_v48, %v5661_v26  ;;  %v2247_v49 = vmul.f32 %v2246_v32, %v5636_v58  ;;  %v5703_v27 = vmul.f32 0.70710677, %v2200_v34 }
 0x6fb   : > { %v2379_v14 = vadd.f32 0.4994258, %v2378_v3  ;;  %v2367_v55 = vmul.f32 %v2366_v18, %v5641_v1  ;;  %v2285_v23 = vmul.f32 %v2284_v40, %v5661_v26  ;;  %v2324_v24 = vadd.f32 0.0036580483, %v2323_v45  ;;  %v2161_v18 = vpop.f32.mrf.mxu2 }
 0x6fc   : > { %v2260_v21 = vmul.f32 %v2259_v0, %v5636_v58  ;;  %v2297_v9 = vadd.f32 0.112945676, %v2296_v62  ;;  %v2335_v52 = vadd.f32 0.014752088, %v2334_v46  ;;  %v2401_v38 = vmul.f32 2.1237322e-06, %v5696_v39 }
 0x6fd   : > { %v2380_v33 = vmul.f32 %v2379_v14, %v5641_v1  ;;  %v2248_v54 = vadd.f32 0.18741608, %v2247_v49  ;;  %v2519_v57 = vmul.f32 %v5703_v27, %v5703_v27  ;;  %v2412_v10 = vmul.f32 3.8918573e-05, %v5696_v39 }
 0x6fe   : > { %v5692_v5 = vadd.f32 1.0, %v2260_v21  ;;  %v2298_v15 = vmul.f32 %v2297_v9, %v5661_v26  ;;  %v2402_v61 = vadd.f32 0.00028619796, %v2401_v38  ;;  %v2368_v8 = vadd.f32 0.18741608, %v2367_v55 }
 0x6ff   : > { %v5694_v36 = vadd.f32 1.0, %v2380_v33  ;;  %v2286_v51 = vadd.f32 0.05243302, %v2285_v23  ;;  %v2325_v3 = vmul.f32 %v2324_v24, %v5672_v47  ;;  %v2336_v0 = vmul.f32 %v2335_v52, %v5672_v47 }
 0x700   : > { %4388 = vrcp.f32 %v5692_v5  ;;  %v2299_v56 = vadd.f32 0.4994258, %v2298_v15  ;;  %v2249_v48 = vmul.f32 %v2248_v54, %v5636_v58  ;;  %v5722_v7 = vmin.f32 %v2519_v57, 16.0 }
 0x701   : > { %4390 = vrcp.f32 %v5694_v36  ;;  %v2403_v16 = vmul.f32 %v2402_v61, %v5696_v39  ;;  %v2413_v20 = vadd.f32 0.001143296, %v2412_v10  ;;  %v5728_v21 = vmul.f32 0.5, %v5617_v35 }
 0x702   : > { %v2300_v2 = vmul.f32 %v2299_v56, %v5661_v26  ;;  %v5731_v62 = vmul.f32 0.5, %v5620_v11  ;;  %v2369_v28 = vmul.f32 %v2368_v8, %v5641_v1  ;;  %v2287_v58 = vmul.f32 %v2286_v51, %v5661_v26  ;;  %v2180_v51 = vpop.f32.mrf.mxu3 }
 0x703   : > { %v2326_v32 = vadd.f32 0.05243302, %v2325_v3  ;;  %v2337_v33 = vadd.f32 0.112945676, %v2336_v0  ;;  %v2250_v9 = vadd.f32 1.1283791, %v2249_v48  ;;  %v2414_v45 = vmul.f32 %v2413_v20, %v5696_v39 }
 0x704   : > { %v5735_v30 = vadd.f32 1.0, %v2300_v2  ;;  %v2521_v46 = vmul.f32 2.1237322e-06, %v5722_v7  ;;  %v5740_v49 = vmul.f32 0.5, %v5666_v59  ;;  %v2404_v11 = vadd.f32 0.0036580483, %v2403_v16 }
 0x705   : > { %v5742_v55 = vmul.f32 0.5, %v2200_v34  ;;  %v2271_v1 = vand.u32 2147483647, %v5692_v5  ;;  %v2370_v15 = vadd.f32 1.1283791, %v2369_v28  ;;  %v5746_v24 = vadd.f32 %v2161_v18, %v5625_v13 }
 0x706   : > { %v5711_v60 = vpop.eup %4388  ;;  %v2415_v23 = vadd.f32 0.014752088, %v2414_v45  ;;  %v2288_v52 = vadd.f32 0.18741608, %v2287_v58  ;;  %4392 = vrcp.f32 %v5735_v30  ;;  %v2327_v38 = vmul.f32 %v2326_v32, %v5672_v47  ;;  %v4136_v32 = vld [vmem:[%s5188_s12 + $0x38] sm:$0xff] }
 0x707   : > { %v5714_v63 = vpop.eup %4390  ;;  %v2263_v53 = vmul.f32 %v5711_v60, %v5692_v5  ;;  %v2338_v54 = vmul.f32 %v2337_v33, %v5672_v47  ;;  %v5752_v59 = vmul.f32 %v2250_v9, %v5623_v12  ;;  %v2522_v57 = vadd.f32 0.00028619796, %v2521_v46  ;;  %v4160_v33 = vld [vmem:[%s5188_s12 + $0xf8] sm:$0xff]  ;;  %3179 = vmatpush.bf16.msra.mxu1 %v4136_v32 }
 0x708   : > { %v2383_v14 = vmul.f32 %v5714_v63, %v5694_v36  ;;  %v2416_v56 = vmul.f32 %v2415_v23, %v5696_v39  ;;  %vm2267_vm1 = vweird.f32 %v5692_v5  ;;  %v2273_v61 = vand.u32 2147483648, %v5692_v5  ;;  %3236 = vmatpush.bf16.msrb.mxu0 %v4160_v33  ;;  %v4134_v33 = vld [vmem:[%s5188_s12 + $0x28] sm:$0xff]  ;;  %v4143_v5 = vld [vmem:[%s5188_s12 + $0x70] sm:$0xff] }
 0x709   : > { %v2264_v40 = vsub.f32 1.0, %v2263_v53  ;;  %v2405_v8 = vmul.f32 %v2404_v11, %v5696_v39  ;;  %vm5760_vm2 = vcmp.eq.f32.partialorder %v2271_v1, 8.507059e+37  ;;  %v5765_v12 = vmul.f32 %v2370_v15, %v5628_v31 }
 0x70a   : > { %v2384_v35 = vsub.f32 1.0, %v2383_v14  ;;  %vm2387_vm3 = vweird.f32 %v5694_v36  ;;  %v2532_v2 = vmul.f32 3.8918573e-05, %v5722_v7  ;;  %v2289_v3 = vmul.f32 %v2288_v52, %v5661_v26 }
 0x70b   : > { %v2265_v34 = vmul.f32 %v5711_v60, %v2264_v40  ;;  %v2328_v0 = vadd.f32 0.18741608, %v2327_v38  ;;  %v2339_v48 = vadd.f32 0.4994258, %v2338_v54  ;;  %v2417_v53 = vadd.f32 0.112945676, %v2416_v56 }
 0x70c   : > { %v2385_v10 = vmul.f32 %v5714_v63, %v2384_v35  ;;  %vm2268_vm4 = vweird.f32 %v5711_v60  ;;  %v2391_v16 = vand.u32 2147483647, %v5694_v36  ;;  %v2523_v31 = vmul.f32 %v2522_v57, %v5722_v7  ;;  %v5774_v20 = vpop.eup %4392  ;;  %v4135_v56 = vld [vmem:[%s5188_s12 + $0x30] sm:$0xff] }
 0x70d   : > { %v2266_v14 = vadd.f32 %v5711_v60, %v2265_v34  ;;  %vm2388_vm5 = vweird.f32 %v5714_v63  ;;  %v2406_v58 = vadd.f32 0.05243302, %v2405_v8  ;;  %v2418_v26 = vmul.f32 %v2417_v53, %v5696_v39  ;;  %vm5787_vm6 = vmor %vm2267_vm1, %vm2268_vm4  ;;  %v4159_v57 = vld [vmem:[%s5188_s12 + $0xf0] sm:$0xff]  ;;  %3180 = vmatpush.bf16.msra.mxu1 %v4135_v56  ;;  %v4152_v53 = vld [vmem:[%s5188_s12 + $0xb8] sm:$0xff] }
 0x70e   : > { %v2386_v28 = vadd.f32 %v5714_v63, %v2385_v10  ;;  %v2274_v18 = vor.u32 1.1754944e-38, %v2273_v61  ;;  %v2393_v9 = vand.u32 2147483648, %v5694_v36  ;;  %v2533_v40 = vadd.f32 0.001143296, %v2532_v2  ;;  %vm5800_vm7 = vmor %vm2387_vm3, %vm2388_vm5  ;;  %3237 = vmatpush.bf16.msrb.mxu0 %v4159_v57  ;;  %3217 = vmatpush.bf16.msra.mxu3 %v4152_v53  ;;  %v4150_v53 = vld [vmem:[%s5188_s12 + $0xa8] sm:$0xff] }
 0x70f   : > { %v5783_v45 = vmul.f32 0.70710677, %v5746_v24  ;;  %v2290_v35 = vadd.f32 1.1283791, %v2289_v3  ;;  %v2329_v11 = vmul.f32 %v2328_v0, %v5672_v47  ;;  %v2340_v1 = vmul.f32 %v2339_v48, %v5672_v47  ;;  %v4144_v48 = vld [vmem:[%s5188_s12 + $0x78] sm:$0xff] }
 0x710   : > { %v2419_v15 = vadd.f32 0.4994258, %v2418_v26  ;;  %v2270_v23 = vsel %vm5787_vm6, %v5711_v60, %v2266_v14  ;;  %v2303_v52 = vmul.f32 %v5774_v20, %v5735_v30  ;;  %v2524_v38 = vadd.f32 0.0036580483, %v2523_v31  ;;  %3198 = vmatpush.bf16.msrb.mxu2 %v4144_v48  ;;  %v4142_v48 = vld [vmem:[%s5188_s12 + $0x68] sm:$0xff] }
 0x711   : > { %v2534_v47 = vmul.f32 %v2533_v40, %v5722_v7  ;;  %v2390_v54 = vsel %vm5800_vm7, %v5714_v63, %v2386_v28  ;;  %v2407_v60 = vmul.f32 %v2406_v58, %v5696_v39  ;;  %v2439_v34 = vmul.f32 %v5783_v45, %v5783_v45  ;;  %3181 = vmatpush.bf16.msra.mxu1 %v4134_v33 }
 0x712   : > { %v2420_v36 = vmul.f32 %v2419_v15, %v5696_v39  ;;  %vm2392_vm8 = vcmp.eq.f32.partialorder %v2391_v16, 8.507059e+37  ;;  %v2394_v61 = vor.u32 1.1754944e-38, %v2393_v9  ;;  %v2313_v10 = vand.u32 2147483648, %v5735_v30 }
 0x713   : > { %v2535_v8 = vadd.f32 0.014752088, %v2534_v47  ;;  %v2275_v2 = vsel %vm5760_vm2, %v2274_v18, %v2270_v23  ;;  %v5819_v63 = vadd.f32 1.0, %v2340_v1  ;;  %v5823_v0 = vmin.f32 %v2439_v34, 16.0  ;;  %v4158_v18 = vld [vmem:[%s5188_s12 + $0xe8] sm:$0xff]  ;;  %v4157_v34 = vld [vmem:[%s5188_s12 + $0xe0] sm:$0xff] }
 0x714   : > { %v5821_v3 = vadd.f32 1.0, %v2420_v36  ;;  %v2395_v14 = vsel %vm2392_vm8, %v2394_v61, %v2390_v54  ;;  %v2304_v16 = vsub.f32 1.0, %v2303_v52  ;;  %v2525_v31 = vmul.f32 %v2524_v38, %v5722_v7  ;;  %3238 = vmatpush.bf16.msrb.mxu0 %v4158_v18  ;;  %v4151_v52 = vld [vmem:[%s5188_s12 + $0xb0] sm:$0xff]  ;;  %v4133_v36 = vld [vmem:[%s5188_s12 + $0x20] sm:$0xff]  ;;  %3199 = vmatpush.bf16.msrb.mxu2 %v4143_v5  ;;  %v4132_v18 = vld [vmem:[%s5188_s12 + $0x18] sm:$0xff] }
 0x715   : > { %v2536_v28 = vmul.f32 %v2535_v8, %v5722_v7  ;;  %v5830_v58 = vmul.f32 %v2290_v35, %v5651_v41  ;;  %v2330_v26 = vadd.f32 1.1283791, %v2329_v11  ;;  %v2408_v32 = vadd.f32 0.18741608, %v2407_v60  ;;  %3218 = vmatpush.bf16.msra.mxu3 %v4151_v52  ;;  %3182 = vmatpush.bf16.msra.mxu1 %v4133_v36 }
 0x716   : > { %4394 = vrcp.f32 %v5821_v3  ;;  %v2276_v9 = vmul.f32 %v2275_v2, %v5752_v59  ;;  %v2311_v40 = vand.u32 2147483647, %v5735_v30  ;;  %v5837_v46 = vor.u32 1.1754944e-38, %v2313_v10 }
 0x717   : > { %v2537_v1 = vadd.f32 0.112945676, %v2536_v28  ;;  %v5840_v41 = vmul.f32 %v2395_v14, %v5765_v12  ;;  %vm2307_vm9 = vweird.f32 %v5735_v30  ;;  %v2441_v35 = vmul.f32 2.1237322e-06, %v5823_v0  ;;  %v4131_v30 = vld [vmem:[%s5188_s12 + $0x10] sm:$0xff] }
 0x718   : > { %v2452_v11 = vmul.f32 3.8918573e-05, %v5823_v0  ;;  %v5846_v15 = vadd.f32 %v2180_v51, %v5630_v50  ;;  %v2305_v59 = vmul.f32 %v5774_v20, %v2304_v16  ;;  %4396 = vrcp.f32 %v5819_v63  ;;  %3239 = vmatpush.bf16.msrb.mxu0 %v4157_v34  ;;  %3200 = vmatpush.bf16.msrb.mxu2 %v4142_v48 }
 0x719   : > { %v2526_v23 = vadd.f32 0.05243302, %v2525_v31  ;;  %v2538_v12 = vmul.f32 %v2537_v1, %v5722_v7  ;;  %v5854_v38 = vmul.f32 %v2330_v26, %v5656_v37  ;;  %v2409_v47 = vmul.f32 %v2408_v32, %v5696_v39  ;;  %3219 = vmatpush.bf16.msra.mxu3 %v4150_v53  ;;  %3183 = vmatpush.bf16.msra.mxu1 %v4132_v18 }
 0x71a   : > { %v2442_v54 = vadd.f32 0.00028619796, %v2441_v35  ;;  %v2453_v60 = vadd.f32 0.001143296, %v2452_v11  ;;  %v3914_v56 = vclamps-f32 %v2276_v9, 1.0  ;;  %vm2308_vm10 = vweird.f32 %v5774_v20  ;;  %v4156_v9 = vld [vmem:[%s5188_s12 + $0xd8] sm:$0xff] }
 0x71b   : > { %v2351_v57 = vand.u32 2147483647, %v5819_v63  ;;  %v2539_v61 = vadd.f32 0.4994258, %v2538_v12  ;;  %v2353_v37 = vand.u32 2147483648, %v5819_v63  ;;  %v3917_v14 = vclamps-f32 %v5840_v41, 1.0  ;;  %vm5902_vm12 = vmor %vm2307_vm9, %vm2308_vm10 }
 0x71c   : > { %v5861_v10 = vpop.eup %4394  ;;  %v2443_v39 = vmul.f32 %v2442_v54, %v5823_v0  ;;  %v2454_v8 = vmul.f32 %v2453_v60, %v5823_v0  ;;  %v5867_v2 = vmul.f32 0.70710677, %v5846_v15  ;;  %v5873_v16 = vadd.f32 %v5774_v20, %v2305_v59  ;;  %3240 = vmatpush.bf16.msrb.mxu0 %v4156_v9  ;;  %v4149_v54 = vld [vmem:[%s5188_s12 + $0xa0] sm:$0xff] }
 0x71d   : > { %v2423_v31 = vmul.f32 %v5861_v10, %v5821_v3  ;;  %v2527_v28 = vmul.f32 %v2526_v23, %v5722_v7  ;;  %v2410_v51 = vadd.f32 1.1283791, %v2409_v47  ;;  %v2540_v26 = vmul.f32 %v2539_v61, %v5722_v7  ;;  %3220 = vmatpush.bf16.msra.mxu3 %v4149_v54  ;;  %3184 = vmatpush.bf16.msra.mxu1 %v4131_v30 }
 0x71e   : > { %v2455_v32 = vadd.f32 0.014752088, %v2454_v8  ;;  %v2479_v33 = vmul.f32 %v5867_v2, %v5867_v2  ;;  %v5883_v1 = vpop.eup %4396  ;;  %v2879_v41 = vadd.f32 1.0, %v3914_v56  ;;  %vm5885_vm11 = vcmp.eq.f32.partialorder %v2311_v40, 8.507059e+37  ;;  %v4141_v40 = vld [vmem:[%s5188_s12 + $0x60] sm:$0xff] }
 0x71f   : > { %v2424_v11 = vsub.f32 1.0, %v2423_v31  ;;  %v2431_v59 = vand.u32 2147483647, %v5821_v3  ;;  %v2444_v23 = vadd.f32 0.0036580483, %v2443_v39  ;;  %v2433_v12 = vand.u32 2147483648, %v5821_v3  ;;  %3201 = vmatpush.bf16.msrb.mxu2 %v4141_v40 }
 0x720   : > { %v5891_v5 = vadd.f32 1.0, %v2540_v26  ;;  %v2456_v52 = vmul.f32 %v2455_v32, %v5823_v0  ;;  %v5894_v47 = vmin.f32 %v2479_v33, 16.0  ;;  %v5906_v36 = vor.u32 1.1754944e-38, %v2353_v37  ;;  %v4155_v37 = vld [vmem:[%s5188_s12 + $0xd0] sm:$0xff]  ;;  %v4148_v26 = vld [vmem:[%s5188_s12 + $0x98] sm:$0xff] }
 0x721   : > { %v2425_v34 = vmul.f32 %v5861_v10, %v2424_v11  ;;  %vm2428_vm13 = vweird.f32 %v5861_v10  ;;  %v2528_v56 = vadd.f32 0.18741608, %v2527_v28  ;;  %v2310_v61 = vsel %vm5902_vm12, %v5774_v20, %v5873_v16  ;;  %3241 = vmatpush.bf16.msrb.mxu0 %v4155_v37  ;;  %v4140_v28 = vld [vmem:[%s5188_s12 + $0x58] sm:$0xff]  ;;  %3221 = vmatpush.bf16.msra.mxu3 %v4148_v26 }
 0x722   : > { %v2343_v39 = vmul.f32 %v5883_v1, %v5819_v63  ;;  %vm2427_vm14 = vweird.f32 %v5821_v3  ;;  %4398 = vrcp.f32 %v5891_v5  ;;  %v2445_v48 = vmul.f32 %v2444_v23, %v5823_v0  ;;  %v4130_v23 = vld [vmem:[%s5188_s12 + $0x8] sm:$0xff] }
 0x723   : > { %v2426_v8 = vadd.f32 %v5861_v10, %v2425_v34  ;;  %v2457_v53 = vadd.f32 0.112945676, %v2456_v52  ;;  %v2481_v31 = vmul.f32 2.1237322e-06, %v5894_v47  ;;  %v2411_v20 = vmul.f32 %v2410_v51, %v5676_v44  ;;  %vm2429_vm15 = vmor %vm2427_vm14, %vm2428_vm13  ;;  %3202 = vmatpush.bf16.msrb.mxu2 %v4140_v28  ;;  %3185 = vmatpush.bf16.msra.mxu1 %v4130_v23 }
 0x724   : > { %vm2432_vm0 = vcmp.eq.f32.partialorder %v2431_v59, 8.507059e+37  ;;  %v2434_v3 = vor.u32 1.1754944e-38, %v2433_v12  ;;  %v2492_v16 = vmul.f32 3.8918573e-05, %v5894_v47  ;;  %v2529_v33 = vmul.f32 %v2528_v56, %v5722_v7  ;;  %v4154_v12 = vld [vmem:[%s5188_s12 + $0xc8] sm:$0xff]  ;;  %v4139_v56 = vld [vmem:[%s5188_s12 + $0x50] sm:$0xff] }
 0x725   : > { %v2430_v32 = vsel %vm2429_vm15, %v5861_v10, %v2426_v8  ;;  %v2458_v18 = vmul.f32 %v2457_v53, %v5823_v0  ;;  %v2482_v44 = vadd.f32 0.00028619796, %v2481_v31  ;;  %v5932_v51 = vadd.f32 1.0, %v3917_v14  ;;  %3242 = vmatpush.bf16.msrb.mxu0 %v4154_v12  ;;  %v2202_v53 = vpop.f32.mrf.mxu0  ;;  %v4129_v31 = vld [vmem:[%s5188_s12] sm:$0xff] }
 0x726   : > { %v2344_v9 = vsub.f32 1.0, %v2343_v39  ;;  %v2435_v11 = vsel %vm2432_vm0, %v2434_v3, %v2430_v32  ;;  %v2493_v59 = vadd.f32 0.001143296, %v2492_v16  ;;  %v2446_v40 = vadd.f32 0.05243302, %v2445_v48  ;;  %v4147_v39 = vld [vmem:[%s5188_s12 + $0x90] sm:$0xff]  ;;  %v2145_v48 = vpop.f32.mrf.mxu1 }
 0x727   : > { %v2436_v52 = vmul.f32 %v2435_v11, %v2411_v20  ;;  %v2459_v54 = vadd.f32 0.4994258, %v2458_v18  ;;  %v2483_v60 = vmul.f32 %v2482_v44, %v5894_v47  ;;  %v2895_v10 = vmul.f32 %v2879_v41, %v5728_v21  ;;  %v4153_v20 = vld [vmem:[%s5188_s12 + $0xc0] sm:$0xff]  ;;  %3203 = vmatpush.bf16.msrb.mxu2 %v4139_v56  ;;  %3222 = vmatpush.bf16.msra.mxu3 %v4147_v39  ;;  %v4138_v44 = vld [vmem:[%s5188_s12 + $0x48] sm:$0xff] }
 0x728   : > { %v5937_v7 = vpop.eup %4398  ;;  %v2315_v14 = vsel %vm5885_vm11, %v5837_v46, %v2310_v61  ;;  %vm2348_vm1 = vweird.f32 %v5883_v1  ;;  %v2494_v34 = vmul.f32 %v2493_v59, %v5894_v47  ;;  %v2530_v37 = vadd.f32 1.1283791, %v2529_v33  ;;  %3186 = vmatpush.bf16.msra.mxu1 %v4129_v31  ;;  %v4137_v39 = vld [vmem:[%s5188_s12 + $0x40] sm:$0xff] }
 0x729   : > { %v3918_v30 = vclamps-f32 %v2436_v52, 1.0  ;;  %v2543_v8 = vmul.f32 %v5937_v7, %v5891_v5  ;;  %v2551_v21 = vand.u32 2147483647, %v5891_v5  ;;  %v2345_v41 = vmul.f32 %v5883_v1, %v2344_v9  ;;  %3243 = vmatpush.bf16.msrb.mxu0 %v4153_v20  ;;  %v4146_v9 = vld [vmem:[%s5188_s12 + $0x88] sm:$0xff] }
 0x72a   : > { %vm2347_vm2 = vweird.f32 %v5819_v63  ;;  %v2460_v46 = vmul.f32 %v2459_v54, %v5823_v0  ;;  %v2484_v35 = vadd.f32 0.0036580483, %v2483_v60  ;;  %v2495_v61 = vadd.f32 0.014752088, %v2494_v34 }
 0x72b   : > { %v2883_v3 = vadd.f32 1.0, %v3918_v30  ;;  %v2544_v16 = vsub.f32 1.0, %v2543_v8  ;;  %v2553_v28 = vand.u32 2147483648, %v5891_v5  ;;  %v2447_v26 = vmul.f32 %v2446_v40, %v5823_v0  ;;  %3204 = vmatpush.bf16.msrb.mxu2 %v4138_v44  ;;  %3223 = vmatpush.bf16.msra.mxu3 %v4146_v9  ;;  %vm6009_vm8 = vmor %vm2347_vm2, %vm2348_vm1 }
 0x72c   : > { %vm2548_vm3 = vweird.f32 %v5937_v7  ;;  %v5958_v32 = vadd.f32 1.0, %v2460_v46  ;;  %v2496_v33 = vmul.f32 %v2495_v61, %v5894_v47  ;;  %v5962_v18 = vadd.f32 %v2145_v48, %v5612_v6 }
 0x72d   : > { %v2899_v11 = vmul.f32 %v2883_v3, %v5740_v49  ;;  %v2545_v59 = vmul.f32 %v5937_v7, %v2544_v16  ;;  %v2485_v23 = vmul.f32 %v2484_v35, %v5894_v47  ;;  %v5970_v12 = vadd.f32 %v2202_v53, %v5614_v29 }
 0x72e   : > { %v5973_v52 = vmul.f32 %v2315_v14, %v5830_v58  ;;  %v2346_v40 = vadd.f32 %v5883_v1, %v2345_v41  ;;  %vm5978_vm4 = vcmp.eq.f32.partialorder %v2351_v57, 8.507059e+37  ;;  %vm2547_vm5 = vweird.f32 %v5891_v5  ;;  %v2164_v5 = vpop.f32.mrf.mxu2 }
 0x72f   : > { %4400 = vrcp.f32 %v5958_v32  ;;  %v2911_v49 = vpack.c.bf16 %v2899_v11, %v2895_v10  ;;  %v2546_v60 = vadd.f32 %v5937_v7, %v2545_v59  ;;  %v2448_v34 = vadd.f32 0.18741608, %v2447_v26  ;;  %vm2549_vm6 = vmor %vm2547_vm5, %vm2548_vm3  ;;  %3205 = vmatpush.bf16.msrb.mxu2 %v4137_v39 }
 0x730   : > { %v2497_v56 = vadd.f32 0.112945676, %v2496_v33  ;;  %v2531_v58 = vmul.f32 %v2530_v37, %v5703_v27  ;;  %vm2552_vm7 = vcmp.eq.f32.partialorder %v2551_v21, 8.507059e+37  ;;  %v2554_v57 = vor.u32 1.1754944e-38, %v2553_v28  ;;  %v2183_v27 = vpop.f32.mrf.mxu3  ;;  %v4145_v37 = vld [vmem:[%s5188_s12 + $0x80] sm:$0xff] }
 0x731   : > { %v5989_v14 = vmul.f32 0.70710677, %v5962_v18  ;;  %v2550_v10 = vsel %vm2549_vm6, %v5937_v7, %v2546_v60  ;;  %v2486_v30 = vadd.f32 0.05243302, %v2485_v23  ;;  %v5995_v41 = vmul.f32 0.70710677, %v5970_v12  ;;  %3187 = vmatmul.bf16.vlgmr.msra.gmra.mxu1 %v2911_v49  ;;  %3224 = vmatpush.bf16.msra.mxu3 %v4145_v37  ;;  %v2204_v7 = vpop.f32.mrf.mxu0 }
 0x732   : > { %v2498_v8 = vmul.f32 %v2497_v56, %v5894_v47  ;;  %v2898_v21 = vmul.f32 %v5932_v51, %v5731_v62  ;;  %v2555_v46 = vsel %vm2552_vm7, %v2554_v57, %v2550_v10  ;;  %v6003_v61 = vadd.f32 %v2164_v5, %v5625_v13  ;;  %v2147_v10 = vpop.f32.mrf.mxu1 }
 0x733   : > { %v2559_v35 = vmul.f32 %v5989_v14, %v5989_v14  ;;  %v2556_v48 = vmul.f32 %v2555_v46, %v2531_v58  ;;  %v2449_v53 = vmul.f32 %v2448_v34, %v5823_v0  ;;  %v2679_v62 = vmul.f32 %v5995_v41, %v5995_v41 }
 0x734   : > { %v2499_v31 = vadd.f32 0.4994258, %v2498_v8  ;;  %v2350_v20 = vsel %vm6009_vm8, %v5883_v1, %v2346_v40  ;;  %v6022_v63 = vmul.f32 0.70710677, %v6003_v61  ;;  %v6025_v16 = vadd.f32 %v2183_v27, %v5630_v50 }
 0x735   : > { %v4401_v51 = vpop.eup %4400  ;;  %v6019_v3 = vmin.f32 %v2559_v35, 16.0  ;;  %v3915_v0 = vclamps-f32 %v5973_v52, 1.0  ;;  %v3921_v28 = vclamps-f32 %v2556_v48, 1.0  ;;  %v2487_v33 = vmul.f32 %v2486_v30, %v5894_v47 }
 0x736   : > { %v2463_v26 = vmul.f32 %v4401_v51, %v5958_v32  ;;  %v2500_v44 = vmul.f32 %v2499_v31, %v5894_v47  ;;  %v6032_v1 = vmin.f32 %v2679_v62, 16.0  ;;  %v2599_v11 = vmul.f32 %v6022_v63, %v6022_v63 }
 0x737   : > { %v2561_v9 = vmul.f32 2.1237322e-06, %v6019_v3  ;;  %v2355_v59 = vsel %vm5978_vm4, %v5906_v36, %v2350_v20  ;;  %v2886_v23 = vadd.f32 1.0, %v3921_v28  ;;  %v2450_v52 = vadd.f32 1.1283791, %v2449_v53 }
 0x738   : > { %v2464_v40 = vsub.f32 1.0, %v2463_v26  ;;  %v2473_v49 = vand.u32 2147483648, %v5958_v32  ;;  %v6040_v60 = vadd.f32 1.0, %v2500_v44  ;;  %v6043_v56 = vmul.f32 0.70710677, %v6025_v16 }
 0x739   : > { %v2562_v34 = vadd.f32 0.00028619796, %v2561_v9  ;;  %v2902_v58 = vmul.f32 %v2886_v23, %v5742_v55  ;;  %vm2468_vm9 = vweird.f32 %v4401_v51  ;;  %v2471_v5 = vand.u32 2147483647, %v5958_v32 }
 0x73a   : > { %v2465_v57 = vmul.f32 %v4401_v51, %v2464_v40  ;;  %v2488_v39 = vadd.f32 0.18741608, %v2487_v33  ;;  %4402 = vrcp.f32 %v6040_v60  ;;  %v2681_v36 = vmul.f32 2.1237322e-06, %v6032_v1 }
 0x73b   : > { %v6049_v54 = vmin.f32 %v2599_v11, 16.0  ;;  %v2880_v30 = vadd.f32 1.0, %v3915_v0  ;;  %v2914_v8 = vpack.c.bf16 %v2902_v58, %v2898_v21  ;;  %vm2467_vm10 = vweird.f32 %v5958_v32 }
 0x73c   : > { %v2466_v27 = vadd.f32 %v4401_v51, %v2465_v57  ;;  %v2356_v37 = vmul.f32 %v2355_v59, %v5854_v38  ;;  %vm2469_vm11 = vmor %vm2467_vm10, %vm2468_vm9  ;;  %v2474_v55 = vor.u32 1.1754944e-38, %v2473_v49  ;;  %v2563_v46 = vmul.f32 %v2562_v34, %v6019_v3 }
 0x73d   : > { %v2639_v35 = vmul.f32 %v6043_v56, %v6043_v56  ;;  %v2451_v48 = vmul.f32 %v2450_v52, %v5783_v45  ;;  %vm2472_vm12 = vcmp.eq.f32.partialorder %v2471_v5, 8.507059e+37  ;;  %3244 = vmatmul.bf16.vlgmr.msrb.gmra.mxu0 %v2914_v8  ;;  %v6058_v21 = vadd.f32 %v2147_v10, %v5612_v6 }
 0x73e   : > { %v2470_v53 = vsel %vm2469_vm11, %v4401_v51, %v2466_v27  ;;  %v2489_v32 = vmul.f32 %v2488_v39, %v5894_v47  ;;  %v2682_v38 = vadd.f32 0.00028619796, %v2681_v36  ;;  %v2601_v62 = vmul.f32 2.1237322e-06, %v6049_v54 }
 0x73f   : > { %v2475_v31 = vsel %vm2472_vm12, %v2474_v55, %v2470_v53  ;;  %v2208_v20 = vmul.f32 0.5, %v5639_v19  ;;  %v6064_v28 = vadd.f32 %v2204_v7, %v5614_v29  ;;  %v2212_v45 = vmul.f32 0.5, %v5746_v24 }
 0x740   : > { %v2476_v0 = vmul.f32 %v2475_v31, %v2451_v48  ;;  %v4403_v26 = vpop.eup %4402  ;;  %v2564_v51 = vadd.f32 0.0036580483, %v2563_v46  ;;  %v6067_v33 = vmin.f32 %v2639_v35, 16.0  ;;  %v6070_v6 = vmul.f32 0.70710677, %v6058_v21 }
 0x741   : > { %v2896_v44 = vmul.f32 %v2880_v30, %v2208_v20  ;;  %v3916_v47 = vclamps-f32 %v2356_v37, 1.0  ;;  %v2503_v11 = vmul.f32 %v4403_v26, %v6040_v60  ;;  %v2490_v59 = vadd.f32 1.1283791, %v2489_v32  ;;  %v2166_v37 = vpop.f32.mrf.mxu2 }
 0x742   : > { %v3919_v9 = vclamps-f32 %v2476_v0, 1.0  ;;  %v2683_v19 = vmul.f32 %v2682_v38, %v6032_v1  ;;  %v2602_v23 = vadd.f32 0.00028619796, %v2601_v62  ;;  %v2719_v29 = vmul.f32 %v6070_v6, %v6070_v6 }
 0x743   : > { %v2504_v24 = vsub.f32 1.0, %v2503_v11  ;;  %v2513_v40 = vand.u32 2147483648, %v6040_v60  ;;  %v6078_v49 = vmul.f32 0.70710677, %v6064_v28  ;;  %v2511_v34 = vand.u32 2147483647, %v6040_v60  ;;  %v2185_v11 = vpop.f32.mrf.mxu3 }
 0x744   : > { %v2884_v52 = vadd.f32 1.0, %v3919_v9  ;;  %v2565_v58 = vmul.f32 %v2564_v51, %v6019_v3  ;;  %v2641_v57 = vmul.f32 2.1237322e-06, %v6067_v33  ;;  %v6083_v5 = vmin.f32 %v2719_v29, 16.0 }
 0x745   : > { %v2505_v36 = vmul.f32 %v4403_v26, %v2504_v24  ;;  %vm2508_vm13 = vweird.f32 %v4403_v26  ;;  %v2839_v10 = vmul.f32 %v6078_v49, %v6078_v49  ;;  %vm2507_vm14 = vweird.f32 %v6040_v60 }
 0x746   : > { %v2900_v39 = vmul.f32 %v2884_v52, %v2212_v45  ;;  %v2684_v30 = vadd.f32 0.0036580483, %v2683_v19  ;;  %v2603_v8 = vmul.f32 %v2602_v23, %v6049_v54  ;;  %v2721_v27 = vmul.f32 2.1237322e-06, %v6083_v5  ;;  %vm2509_vm15 = vmor %vm2507_vm14, %vm2508_vm13 }
 0x747   : > { %v2506_v46 = vadd.f32 %v4403_v26, %v2505_v36  ;;  %v2514_v35 = vor.u32 1.1754944e-38, %v2513_v40  ;;  %v6090_v7 = vmin.f32 %v2839_v10, 16.0  ;;  %v2491_v48 = vmul.f32 %v2490_v59, %v5867_v2 }
 0x748   : > { %v2912_v55 = vpack.c.bf16 %v2900_v39, %v2896_v44  ;;  %v2566_v53 = vadd.f32 0.05243302, %v2565_v58  ;;  %v2642_v31 = vadd.f32 0.00028619796, %v2641_v57  ;;  %v2722_v32 = vadd.f32 0.00028619796, %v2721_v27 }
 0x749   : > { %v2510_v38 = vsel %vm2509_vm15, %v4403_v26, %v2506_v46  ;;  %vm2512_vm0 = vcmp.eq.f32.partialorder %v2511_v34, 8.507059e+37  ;;  %v2841_v60 = vmul.f32 2.1237322e-06, %v6090_v7  ;;  %v6095_v62 = vadd.f32 %v2166_v37, %v5625_v13 }
 0x74a   : > { %3206 = vmatmul.bf16.vlgmr.msrb.gmra.mxu2 %v2912_v55  ;;  %v2881_v20 = vadd.f32 1.0, %v3916_v47  ;;  %v2515_v0 = vsel %vm2512_vm0, %v2514_v35, %v2510_v38  ;;  %v2685_v45 = vmul.f32 %v2684_v30, %v6032_v1  ;;  %v2604_v51 = vadd.f32 0.0036580483, %v2603_v8 }
 0x74b   : > { %v2516_v44 = vmul.f32 %v2515_v0, %v2491_v48  ;;  %v2723_v2 = vmul.f32 %v2722_v32, %v6083_v5  ;;  %v2842_v9 = vadd.f32 0.00028619796, %v2841_v60  ;;  %v2209_v59 = vmul.f32 0.5, %v5644_v25 }
 0x74c   : > { %v2213_v26 = vmul.f32 0.5, %v5846_v15  ;;  %v2567_v19 = vmul.f32 %v2566_v53, %v6019_v3  ;;  %v2643_v23 = vmul.f32 %v2642_v31, %v6067_v33  ;;  %v6105_v52 = vmul.f32 0.70710677, %v6095_v62 }
 0x74d   : > { %v3920_v13 = vclamps-f32 %v2516_v44, 1.0  ;;  %v2724_v29 = vadd.f32 0.0036580483, %v2723_v2  ;;  %v2843_v47 = vmul.f32 %v2842_v9, %v6090_v7  ;;  %v2897_v24 = vmul.f32 %v2881_v20, %v2209_v59 }
 0x74e   : > { %v2686_v40 = vadd.f32 0.05243302, %v2685_v45  ;;  %v2605_v34 = vmul.f32 %v2604_v51, %v6049_v54  ;;  %v6109_v58 = vadd.f32 %v2185_v11, %v5630_v50  ;;  %v2759_v39 = vmul.f32 %v6105_v52, %v6105_v52 }
 0x74f   : > { %v2885_v25 = vadd.f32 1.0, %v3920_v13  ;;  %v2725_v15 = vmul.f32 %v2724_v29, %v6083_v5  ;;  %v2844_v57 = vadd.f32 0.0036580483, %v2843_v47  ;;  %v6115_v36 = vmul.f32 0.5, %v5962_v18 }
 0x750   : > { %v6118_v10 = vmul.f32 0.5, %v5970_v12  ;;  %v2644_v30 = vadd.f32 0.0036580483, %v2643_v23  ;;  %v6121_v8 = vmul.f32 0.70710677, %v6109_v58  ;;  %v6124_v55 = vmin.f32 %v2759_v39, 16.0 }
 0x751   : > { %v2901_v27 = vmul.f32 %v2885_v25, %v2213_v26  ;;  %v2568_v50 = vadd.f32 0.18741608, %v2567_v19  ;;  %v2845_v37 = vmul.f32 %v2844_v57, %v6090_v7  ;;  %v2687_v46 = vmul.f32 %v2686_v40, %v6032_v1 }
 0x752   : > { %v2799_v35 = vmul.f32 %v6121_v8, %v6121_v8  ;;  %v2572_v18 = vmul.f32 3.8918573e-05, %v6019_v3  ;;  %v2732_v12 = vmul.f32 3.8918573e-05, %v6083_v5  ;;  %v2606_v53 = vadd.f32 0.05243302, %v2605_v34 }
 0x753   : > { %v2913_v48 = vpack.c.bf16 %v2901_v27, %v2897_v24  ;;  %v2726_v31 = vadd.f32 0.05243302, %v2725_v15  ;;  %v2761_v32 = vmul.f32 2.1237322e-06, %v6124_v55  ;;  %v2846_v38 = vadd.f32 0.05243302, %v2845_v37 }
 0x754   : > { %v2573_v60 = vadd.f32 0.001143296, %v2572_v18  ;;  %v2733_v20 = vadd.f32 0.001143296, %v2732_v12  ;;  %v6133_v0 = vmul.f32 0.5, %v6058_v21  ;;  %v6135_v51 = vmin.f32 %v2799_v35, 16.0 }
 0x755   : > { %3225 = vmatmul.bf16.vlgmr.msra.gmra.mxu3 %v2913_v48  ;;  %v2762_v45 = vadd.f32 0.00028619796, %v2761_v32  ;;  %v2692_v44 = vmul.f32 3.8918573e-05, %v6032_v1  ;;  %v2569_v2 = vmul.f32 %v2568_v50, %v6019_v3  ;;  %v2852_v59 = vmul.f32 3.8918573e-05, %v6090_v7 }
 0x756   : > { %v2574_v9 = vmul.f32 %v2573_v60, %v6019_v3  ;;  %v2734_v11 = vmul.f32 %v2733_v20, %v6083_v5  ;;  %v2688_v26 = vadd.f32 0.18741608, %v2687_v46  ;;  %v2607_v19 = vmul.f32 %v2606_v53, %v6049_v54 }
 0x757   : > { %v2763_v21 = vmul.f32 %v2762_v45, %v6124_v55  ;;  %v2693_v23 = vadd.f32 0.001143296, %v2692_v44  ;;  %v2645_v13 = vmul.f32 %v2644_v30, %v6067_v33  ;;  %v2727_v29 = vmul.f32 %v2726_v31, %v6083_v5 }
 0x758   : > { %v2575_v47 = vadd.f32 0.014752088, %v2574_v9  ;;  %v2735_v24 = vadd.f32 0.014752088, %v2734_v11  ;;  %v2847_v40 = vmul.f32 %v2846_v38, %v6090_v7  ;;  %v2801_v25 = vmul.f32 2.1237322e-06, %v6135_v51 }
 0x759   : > { %v2764_v34 = vadd.f32 0.0036580483, %v2763_v21  ;;  %v2694_v15 = vmul.f32 %v2693_v23, %v6032_v1  ;;  %v2570_v57 = vadd.f32 1.1283791, %v2569_v2  ;;  %v2853_v50 = vadd.f32 0.001143296, %v2852_v59 }
 0x75a   : > { %v2576_v39 = vmul.f32 %v2575_v47, %v6019_v3  ;;  %v2736_v27 = vmul.f32 %v2735_v24, %v6083_v5  ;;  %v2689_v37 = vmul.f32 %v2688_v26, %v6032_v1  ;;  %v2608_v30 = vadd.f32 0.18741608, %v2607_v19 }
 0x75b   : > { %v2765_v46 = vmul.f32 %v2764_v34, %v6124_v55  ;;  %v2695_v35 = vadd.f32 0.014752088, %v2694_v15  ;;  %v2728_v18 = vadd.f32 0.18741608, %v2727_v29  ;;  %v2854_v53 = vmul.f32 %v2853_v50, %v6090_v7 }
 0x75c   : > { %v2577_v12 = vadd.f32 0.112945676, %v2576_v39  ;;  %v2737_v48 = vadd.f32 0.112945676, %v2736_v27  ;;  %v2848_v31 = vadd.f32 0.18741608, %v2847_v40  ;;  %v2609_v9 = vmul.f32 %v2608_v30, %v6049_v54 }
 0x75d   : > { %v2802_v32 = vadd.f32 0.00028619796, %v2801_v25  ;;  %v2696_v38 = vmul.f32 %v2695_v35, %v6032_v1  ;;  %v2612_v60 = vmul.f32 3.8918573e-05, %v6049_v54  ;;  %v2766_v20 = vadd.f32 0.05243302, %v2765_v46 }
 0x75e   : > { %v2578_v45 = vmul.f32 %v2577_v12, %v6019_v3  ;;  %v2738_v44 = vmul.f32 %v2737_v48, %v6083_v5  ;;  %v2855_v2 = vadd.f32 0.014752088, %v2854_v53  ;;  %v2772_v26 = vmul.f32 3.8918573e-05, %v6124_v55 }
 0x75f   : > { %v2697_v11 = vadd.f32 0.112945676, %v2696_v38  ;;  %v2613_v59 = vadd.f32 0.001143296, %v2612_v60  ;;  %v2729_v19 = vmul.f32 %v2728_v18, %v6083_v5  ;;  %v2849_v47 = vmul.f32 %v2848_v31, %v6090_v7 }
 0x760   : > { %v2579_v21 = vadd.f32 0.4994258, %v2578_v45  ;;  %v2739_v23 = vadd.f32 0.4994258, %v2738_v44  ;;  %v2856_v29 = vmul.f32 %v2855_v2, %v6090_v7  ;;  %v2773_v34 = vadd.f32 0.001143296, %v2772_v26 }
 0x761   : > { %v2698_v24 = vmul.f32 %v2697_v11, %v6032_v1  ;;  %v2614_v40 = vmul.f32 %v2613_v59, %v6049_v54  ;;  %v2803_v25 = vmul.f32 %v2802_v32, %v6135_v51  ;;  %v2767_v50 = vmul.f32 %v2766_v20, %v6124_v55 }
 0x762   : > { %v2580_v15 = vmul.f32 %v2579_v21, %v6019_v3  ;;  %v2740_v39 = vmul.f32 %v2739_v23, %v6083_v5  ;;  %v2857_v27 = vadd.f32 0.112945676, %v2856_v29  ;;  %v2774_v35 = vmul.f32 %v2773_v34, %v6124_v55 }
 0x763   : > { %v2699_v30 = vadd.f32 0.4994258, %v2698_v24  ;;  %v2615_v46 = vadd.f32 0.014752088, %v2614_v40  ;;  %v2690_v18 = vadd.f32 1.1283791, %v2689_v37  ;;  %v6185_v2 = vmul.f32 %v2570_v57, %v5989_v14 }
 0x764   : > { %v2610_v12 = vadd.f32 1.1283791, %v2609_v9  ;;  %v6170_v48 = vadd.f32 1.0, %v2580_v15  ;;  %v6172_v53 = vadd.f32 1.0, %v2740_v39  ;;  %v2730_v31 = vadd.f32 1.1283791, %v2729_v19 }
 0x765   : > { %v2700_v32 = vmul.f32 %v2699_v30, %v6032_v1  ;;  %v2858_v3 = vmul.f32 %v2857_v27, %v6090_v7  ;;  %v2616_v5 = vmul.f32 %v2615_v46, %v6049_v54  ;;  %v2850_v38 = vadd.f32 1.1283791, %v2849_v47 }
 0x766   : > { %v2804_v60 = vadd.f32 0.0036580483, %v2803_v25  ;;  %4404 = vrcp.f32 %v6170_v48  ;;  %v2775_v20 = vadd.f32 0.014752088, %v2774_v35  ;;  %v6178_v45 = vadd.f32 0.05243302, %v2645_v13 }
 0x767   : > { %v6181_v37 = vmul.f32 0.5, %v6064_v28  ;;  %v2768_v44 = vadd.f32 0.18741608, %v2767_v50  ;;  %4406 = vrcp.f32 %v6172_v53  ;;  %v6188_v1 = vmul.f32 %v2690_v18, %v5995_v41 }
 0x768   : > { %v6191_v9 = vmul.f32 %v2610_v12, %v6022_v63  ;;  %v2591_v11 = vand.u32 2147483647, %v6170_v48  ;;  %v6195_v13 = vmul.f32 %v2730_v31, %v6070_v6  ;;  %v6197_v59 = vadd.f32 1.0, %v2700_v32 }
 0x769   : > { %v2859_v28 = vadd.f32 0.4994258, %v2858_v3  ;;  %v2617_v26 = vadd.f32 0.112945676, %v2616_v5  ;;  %v6200_v19 = vmul.f32 %v2850_v38, %v6078_v49  ;;  %v6203_v14 = vmul.f32 %v2804_v60, %v6135_v51 }
 0x76a   : > { %v2593_v41 = vand.u32 2147483648, %v6170_v48  ;;  %v2776_v63 = vmul.f32 %v2775_v20, %v6124_v55  ;;  %v6208_v57 = vmul.f32 %v2768_v44, %v6124_v55  ;;  %v2751_v6 = vand.u32 2147483647, %v6172_v53 }
 0x76b   : > { %v2753_v21 = vand.u32 2147483648, %v6172_v53  ;;  %4408 = vrcp.f32 %v6197_v59  ;;  %vm2587_vm1 = vweird.f32 %v6170_v48  ;;  %v2860_v49 = vmul.f32 %v2859_v28, %v6090_v7 }
 0x76c   : > { %v4405_v23 = vpop.eup %4404  ;;  %v2618_v29 = vmul.f32 %v2617_v26, %v6049_v54  ;;  %v2777_v47 = vadd.f32 0.112945676, %v2776_v63  ;;  %vm6217_vm2 = vcmp.eq.f32.partialorder %v2591_v11, 8.507059e+37  ;;  %vm2747_vm3 = vweird.f32 %v6172_v53 }
 0x76d   : > { %v4407_v24 = vpop.eup %4406  ;;  %v2583_v40 = vmul.f32 %v4405_v23, %v6170_v48  ;;  %v2652_v25 = vmul.f32 3.8918573e-05, %v6067_v33  ;;  %v2594_v15 = vor.u32 1.1754944e-38, %v2593_v41  ;;  %v6224_v27 = vadd.f32 1.0, %v2860_v49 }
 0x76e   : > { %v2743_v39 = vmul.f32 %v4407_v24, %v6172_v53  ;;  %v2619_v7 = vadd.f32 0.4994258, %v2618_v29  ;;  %vm6226_vm4 = vcmp.eq.f32.partialorder %v2751_v6, 8.507059e+37  ;;  %v2754_v46 = vor.u32 1.1754944e-38, %v2753_v21 }
 0x76f   : > { %v2584_v50 = vsub.f32 1.0, %v2583_v40  ;;  %v2778_v35 = vmul.f32 %v2777_v47, %v6124_v55  ;;  %vm2588_vm5 = vweird.f32 %v4405_v23  ;;  %v2711_v12 = vand.u32 2147483647, %v6197_v59 }
 0x770   : > { %v2744_v18 = vsub.f32 1.0, %v2743_v39  ;;  %4410 = vrcp.f32 %v6224_v27  ;;  %v2620_v3 = vmul.f32 %v2619_v7, %v6049_v54  ;;  %v2653_v38 = vadd.f32 0.001143296, %v2652_v25  ;;  %vm2589_vm8 = vmor %vm2587_vm1, %vm2588_vm5 }
 0x771   : > { %v4409_v31 = vpop.eup %4408  ;;  %v2585_v32 = vmul.f32 %v4405_v23, %v2584_v50  ;;  %v2779_v5 = vadd.f32 0.4994258, %v2778_v35  ;;  %vm2748_vm6 = vweird.f32 %v4407_v24  ;;  %v2812_v44 = vmul.f32 3.8918573e-05, %v6135_v51 }
 0x772   : > { %v2745_v60 = vmul.f32 %v4407_v24, %v2744_v18  ;;  %v2703_v20 = vmul.f32 %v4409_v31, %v6197_v59  ;;  %vm2707_vm7 = vweird.f32 %v6197_v59  ;;  %v2713_v28 = vand.u32 2147483648, %v6197_v59  ;;  %vm2749_vm11 = vmor %vm2747_vm3, %vm2748_vm6 }
 0x773   : > { %v2586_v11 = vadd.f32 %v4405_v23, %v2585_v32  ;;  %v6238_v26 = vadd.f32 1.0, %v2620_v3  ;;  %vm2708_vm9 = vweird.f32 %v4409_v31  ;;  %vm6243_vm10 = vcmp.eq.f32.partialorder %v2711_v12, 8.507059e+37 }
 0x774   : > { %v2746_v54 = vadd.f32 %v4407_v24, %v2745_v60  ;;  %v2704_v41 = vsub.f32 1.0, %v2703_v20  ;;  %v2780_v21 = vmul.f32 %v2779_v5, %v6124_v55  ;;  %v2654_v49 = vmul.f32 %v2653_v38, %v6067_v33  ;;  %vm2709_vm12 = vmor %vm2707_vm7, %vm2708_vm9 }
 0x775   : > { %v2590_v6 = vsel %vm2589_vm8, %v4405_v23, %v2586_v11  ;;  %4412 = vrcp.f32 %v6238_v26  ;;  %v2813_v25 = vadd.f32 0.001143296, %v2812_v44  ;;  %v2714_v53 = vor.u32 1.1754944e-38, %v2713_v28 }
 0x776   : > { %v4411_v29 = vpop.eup %4410  ;;  %v2595_v48 = vsel %vm6217_vm2, %v2594_v15, %v2590_v6  ;;  %v2750_v47 = vsel %vm2749_vm11, %v4407_v24, %v2746_v54  ;;  %v2705_v40 = vmul.f32 %v4409_v31, %v2704_v41  ;;  %v2871_v35 = vand.u32 2147483647, %v6224_v27 }
 0x777   : > { %v2596_v39 = vmul.f32 %v2595_v48, %v6185_v2  ;;  %v2755_v23 = vsel %vm6226_vm4, %v2754_v46, %v2750_v47  ;;  %v2863_v7 = vmul.f32 %v4411_v29, %v6224_v27  ;;  %v2873_v18 = vand.u32 2147483648, %v6224_v27 }
 0x778   : > { %v2756_v50 = vmul.f32 %v2755_v23, %v6195_v13  ;;  %v2706_v55 = vadd.f32 %v4409_v31, %v2705_v40  ;;  %vm2868_vm13 = vweird.f32 %v4411_v29  ;;  %v6264_v2 = vadd.f32 1.0, %v2780_v21 }
 0x779   : > { %v3922_v34 = vclamps-f32 %v2596_v39, 1.0  ;;  %v2864_v24 = vsub.f32 1.0, %v2863_v7  ;;  %v2655_v46 = vadd.f32 0.014752088, %v2654_v49  ;;  %v2814_v12 = vmul.f32 %v2813_v25, %v6135_v51 }
 0x77a   : > { %v3926_v15 = vclamps-f32 %v2756_v50, 1.0  ;;  %v2710_v30 = vsel %vm2709_vm12, %v4409_v31, %v2706_v55  ;;  %4414 = vrcp.f32 %v6264_v2  ;;  %vm2867_vm14 = vweird.f32 %v6224_v27 }
 0x77b   : > { %v4413_v13 = vpop.eup %4412  ;;  %v2887_v32 = vadd.f32 1.0, %v3922_v34  ;;  %v2715_v3 = vsel %vm6243_vm10, %v2714_v53, %v2710_v30  ;;  %v2865_v5 = vmul.f32 %v4411_v29, %v2864_v24  ;;  %vm2872_vm15 = vcmp.eq.f32.partialorder %v2871_v35, 8.507059e+37  ;;  %vm2869_vm0 = vmor %vm2867_vm14, %vm2868_vm13 }
 0x77c   : > { %v2891_v38 = vadd.f32 1.0, %v3926_v15  ;;  %v2716_v59 = vmul.f32 %v2715_v3, %v6188_v1  ;;  %v2623_v60 = vmul.f32 %v4413_v13, %v6238_v26  ;;  %v2874_v31 = vor.u32 1.1754944e-38, %v2873_v18 }
 0x77d   : > { %v2866_v20 = vadd.f32 %v4411_v29, %v2865_v5  ;;  %v2631_v44 = vand.u32 2147483647, %v6238_v26  ;;  %v2903_v11 = vmul.f32 %v2887_v32, %v6115_v36  ;;  %v2633_v41 = vand.u32 2147483648, %v6238_v26 }
 0x77e   : > { %v2907_v28 = vmul.f32 %v2891_v38, %v6133_v0  ;;  %v2624_v54 = vsub.f32 1.0, %v2623_v60  ;;  %v3925_v63 = vclamps-f32 %v2716_v59, 1.0  ;;  %v2656_v27 = vmul.f32 %v2655_v46, %v6067_v33 }
 0x77f   : > { %v2870_v1 = vsel %vm2869_vm0, %v4411_v29, %v2866_v20  ;;  %v2815_v6 = vadd.f32 0.014752088, %v2814_v12  ;;  %vm2628_vm1 = vweird.f32 %v4413_v13  ;;  %v2770_v40 = vadd.f32 1.1283791, %v6208_v57 }
 0x780   : > { %v2915_v21 = vpack.c.bf16 %v2907_v28, %v2903_v11  ;;  %v2875_v49 = vsel %vm2872_vm15, %v2874_v31, %v2870_v1  ;;  %v2625_v48 = vmul.f32 %v4413_v13, %v2624_v54  ;;  %v4415_v47 = vpop.eup %4414  ;;  %v2657_v0 = vadd.f32 0.112945676, %v2656_v27 }
 0x781   : > { %v2876_v36 = vmul.f32 %v2875_v49, %v6200_v19  ;;  %v2816_v25 = vmul.f32 %v2815_v6, %v6135_v51  ;;  %vm2627_vm2 = vweird.f32 %v6238_v26  ;;  %v2634_v29 = vor.u32 1.1754944e-38, %v2633_v41 }
 0x782   : > { %3192 = vmatmul.bf16.gmra.mxu1 %v2915_v21  ;;  %v2626_v39 = vadd.f32 %v4413_v13, %v2625_v48  ;;  %v2783_v23 = vmul.f32 %v4415_v47, %v6264_v2  ;;  %v2890_v7 = vadd.f32 1.0, %v3925_v63  ;;  %vm2629_vm3 = vmor %vm2627_vm2, %vm2628_vm1  ;;  %v2658_v50 = vmul.f32 %v2657_v0, %v6067_v33 }
 0x783   : > { %v3929_v53 = vclamps-f32 %v2876_v36, 1.0  ;;  %v2817_v55 = vadd.f32 0.112945676, %v2816_v25  ;;  %vm2632_vm4 = vcmp.eq.f32.partialorder %v2631_v44, 8.507059e+37  ;;  %v2793_v19 = vand.u32 2147483648, %v6264_v2 }
 0x784   : > { %v2630_v35 = vsel %vm2629_vm3, %v4413_v13, %v2626_v39  ;;  %v2784_v57 = vsub.f32 1.0, %v2783_v23  ;;  %v2659_v24 = vadd.f32 0.4994258, %v2658_v50  ;;  %vm2788_vm5 = vweird.f32 %v4415_v47 }
 0x785   : > { %v2894_v18 = vadd.f32 1.0, %v3929_v53  ;;  %v2635_v34 = vsel %vm2632_vm4, %v2634_v29, %v2630_v35  ;;  %v2818_v15 = vmul.f32 %v2817_v55, %v6135_v51  ;;  %v2791_v46 = vand.u32 2147483647, %v6264_v2 }
 0x786   : > { %v2636_v26 = vmul.f32 %v2635_v34, %v6191_v9  ;;  %v2785_v30 = vmul.f32 %v4415_v47, %v2784_v57  ;;  %v2906_v12 = vmul.f32 %v2890_v7, %v6118_v10  ;;  %v2660_v13 = vmul.f32 %v2659_v24, %v6067_v33 }
 0x787   : > { %v2910_v32 = vmul.f32 %v2894_v18, %v6181_v37  ;;  %v2819_v3 = vadd.f32 0.4994258, %v2818_v15  ;;  %v2647_v5 = vmul.f32 %v6178_v45, %v6067_v33  ;;  %v2806_v38 = vadd.f32 0.05243302, %v6203_v14 }
 0x788   : > { %v2786_v59 = vadd.f32 %v4415_v47, %v2785_v30  ;;  %vm2787_vm6 = vweird.f32 %v6264_v2  ;;  %v2794_v60 = vor.u32 1.1754944e-38, %v2793_v19  ;;  %v2661_v20 = vadd.f32 1.0, %v2660_v13 }
 0x789   : > { %v2918_v9 = vpack.c.bf16 %v2910_v32, %v2906_v12  ;;  %vm2789_vm7 = vmor %vm2787_vm6, %vm2788_vm5  ;;  %v2820_v31 = vmul.f32 %v2819_v3, %v6135_v51  ;;  %v2771_v10 = vmul.f32 %v2770_v40, %v6105_v52  ;;  %v3923_v37 = vclamps-f32 %v2636_v26, 1.0 }
 0x78a   : > { %v2790_v44 = vsel %vm2789_vm7, %v4415_v47, %v2786_v59  ;;  %vm2792_vm8 = vcmp.eq.f32.partialorder %v2791_v46, 8.507059e+37  ;;  %4416 = vrcp.f32 %v2661_v20  ;;  %v2807_v45 = vmul.f32 %v2806_v38, %v6135_v51 }
 0x78b   : > { %3249 = vmatmul.bf16.gmra.mxu0 %v2918_v9  ;;  %v2795_v11 = vsel %vm2792_vm8, %v2794_v60, %v2790_v44  ;;  %v2821_v28 = vadd.f32 1.0, %v2820_v31  ;;  %v2648_v54 = vadd.f32 0.18741608, %v2647_v5  ;;  %v2888_v41 = vadd.f32 1.0, %v3923_v37 }
 0x78c   : > { %v2796_v14 = vmul.f32 %v2795_v11, %v2771_v10  ;;  %v2216_v63 = vmul.f32 0.5, %v6003_v61  ;;  %v2220_v1 = vmul.f32 0.5, %v6095_v62  ;;  %v2808_v27 = vadd.f32 0.18741608, %v2807_v45 }
 0x78d   : > { %4418 = vrcp.f32 %v2821_v28  ;;  %v2649_v21 = vmul.f32 %v2648_v54, %v6067_v33  ;;  %v2673_v39 = vand.u32 2147483648, %v2661_v20  ;;  %v2671_v62 = vand.u32 2147483647, %v2661_v20 }
 0x78e   : > { %v3927_v2 = vclamps-f32 %v2796_v14, 1.0  ;;  %v2904_v49 = vmul.f32 %v2888_v41, %v2216_v63  ;;  %v2809_v36 = vmul.f32 %v2808_v27, %v6135_v51  ;;  %vm2667_vm10 = vweird.f32 %v2661_v20 }
 0x78f   : > { %v2650_v23 = vadd.f32 1.1283791, %v2649_v21  ;;  %v2833_v33 = vand.u32 2147483648, %v2821_v28  ;;  %v2674_v55 = vor.u32 1.1754944e-38, %v2673_v39  ;;  %v2831_v57 = vand.u32 2147483647, %v2821_v28 }
 0x790   : > { %v2892_v52 = vadd.f32 1.0, %v3927_v2  ;;  %v4417_v6 = vpop.eup %4416  ;;  %v2810_v7 = vadd.f32 1.1283791, %v2809_v36  ;;  %vm2672_vm13 = vcmp.eq.f32.partialorder %v2671_v62, 8.507059e+37  ;;  %vm2827_vm14 = vweird.f32 %v2821_v28 }
 0x791   : > { %v2663_v47 = vmul.f32 %v4417_v6, %v2661_v20  ;;  %vm2668_vm9 = vweird.f32 %v4417_v6  ;;  %v2651_v51 = vmul.f32 %v2650_v23, %v6043_v56  ;;  %v2834_v15 = vor.u32 1.1754944e-38, %v2833_v33 }
 0x792   : > { %v2908_v48 = vmul.f32 %v2892_v52, %v2220_v1  ;;  %vm2669_vm11 = vmor %vm2667_vm10, %vm2668_vm9  ;;  %v2811_v26 = vmul.f32 %v2810_v7, %v6121_v8  ;;  %vm2832_vm0 = vcmp.eq.f32.partialorder %v2831_v57, 8.507059e+37  ;;  %v2217_v56 = vmul.f32 0.5, %v6025_v16  ;;  %v4311_v8 = vld [vmem:[%s801_s1] ss:$0 sm:$0xff]  ;;  %s4834_s1 = smov 128  }
 0x793   : > { %v4419_v40 = vpop.eup %4418  ;;  %v2664_v25 = vsub.f32 1.0, %v2663_v47  ;;  %v2221_v5 = vmul.f32 0.5, %v6109_v58 }
 0x794   : > { %v2916_v0 = vpack.c.bf16 %v2908_v48, %v2904_v49  ;;  %v2823_v29 = vmul.f32 %v4419_v40, %v2821_v28  ;;  %vm2828_vm12 = vweird.f32 %v4419_v40 }
 0x795   : > { %v2665_v61 = vmul.f32 %v4417_v6, %v2664_v25  ;;  %vm2829_vm15 = vmor %vm2827_vm14, %vm2828_vm12 }
 0x796   : > { %3211 = vmatmul.bf16.gmra.mxu2 %v2916_v0  ;;  %v2824_v53 = vsub.f32 1.0, %v2823_v29 }
 0x797   : > { %v2666_v50 = vadd.f32 %v4417_v6, %v2665_v61 }
 0x798   : > { %v2825_v35 = vmul.f32 %v4419_v40, %v2824_v53 }
 0x799   : > { %v2670_v19 = vsel %vm2669_vm11, %v4417_v6, %v2666_v50 }
 0x79a   : > { %v2675_v18 = vsel %vm2672_vm13, %v2674_v55, %v2670_v19  ;;  %v2826_v34 = vadd.f32 %v4419_v40, %v2825_v35 }
 0x79b   : > { %v2676_v24 = vmul.f32 %v2675_v18, %v2651_v51 }
 0x79c   : > { %v2830_v30 = vsel %vm2829_vm15, %v4419_v40, %v2826_v34 }
 0x79d   : > { %v3924_v46 = vclamps-f32 %v2676_v24, 1.0  ;;  %v2835_v12 = vsel %vm2832_vm0, %v2834_v15, %v2830_v30 }
 0x79e   : > { %v2836_v32 = vmul.f32 %v2835_v12, %v2811_v26 }
 0x79f   : > { %v2889_v3 = vadd.f32 1.0, %v3924_v46 }
 0x7a0   : > { %v3928_v13 = vclamps-f32 %v2836_v32, 1.0 }
 0x7a1   : > { %v2905_v59 = vmul.f32 %v2889_v3, %v2217_v56 }
 0x7a2   : > { %v2893_v38 = vadd.f32 1.0, %v3928_v13 }
 0x7a4   : > { %v2909_v9 = vmul.f32 %v2893_v38, %v2221_v5 }
 0x7a6   : > { %v2917_v60 = vpack.c.bf16 %v2909_v9, %v2905_v59 }
 0x7a8   : > { %3230 = vmatmul.bf16.gmra.mxu3 %v2917_v60 }
 0x7ae   : > { %v3188_v20 = vpop.f32.mrf.mxu1 }
 0x7af   : > { %v3189_v10 = vadd.f32 %v4311_v8, %v3188_v20 }
 0x7b6   : > { %v3190_v44 = vpop.f32.mrf.mxu1 }
 0x7b7   : > { %v3191_v58 = vadd.f32 %v4311_v8, %v3190_v44 }
 0x7ba   : > { %v3245_v11 = vpop.f32.mrf.mxu0 }
 0x7c2   : > { %v3247_v1 = vpop.f32.mrf.mxu0 }
 0x7cd   : > { %v3207_v31 = vpop.f32.mrf.mxu2 }
 0x7ce   : > { %v3208_v37 = vadd.f32 %v3207_v31, %v3189_v10 }
 0x7d5   : > { %v3209_v14 = vpop.f32.mrf.mxu2 }
 0x7d6   : > { %v3210_v54 = vadd.f32 %v3209_v14, %v3191_v58 }
 0x7d8   : > { %v3226_v45 = vpop.f32.mrf.mxu3 }
 0x7d9   : > { %v3227_v16 = vadd.f32 %v3226_v45, %v3208_v37  ;;  %v4312_v37 = vld [vmem:[%s804_s25] ss:$0 sm:$0xff] }
 0x7da   : > { %v4313_v45 = vld [vmem:[%s711_s14] ss:$0 sm:$0xff]  ;;  %s3364_s14 = sshll.u32 %s4833_s28, 4  ;;  %s3365_s14 = int_to_ptr.vmem [resolvable:$true] %s3364_s14 }
 0x7db   : > { %v3246_v28 = vadd.f32 %v3245_v11, %v3227_v16 }
 0x7dd   : > { %v3255_v2 = vadd.f32 %v3246_v28, %v5595_v42 }
 0x7df   : > { %3261 = vadd.xlane.f32.xlu2 %v3255_v2 }
 0x7e0   : > { %v3228_v41 = vpop.f32.mrf.mxu3 }
 0x7e1   : > { %v3229_v63 = vadd.f32 %v3228_v41, %v3210_v54 }
 0x7e3   : > { %v3248_v27 = vadd.f32 %v3247_v1, %v3229_v63 }
 0x7e5   : > { %v3256_v52 = vadd.f32 %v3248_v27, %v5597_v43 }
 0x7e7   : > { %3263 = vadd.xlane.f32.xlu0 %v3256_v52 }
 0x7ff   : > { %v3193_v6 = vpop.f32.mrf.mxu1 }
 0x800   : > { %v3194_v49 = vadd.f32 %v4311_v8, %v3193_v6 }
 0x807   : > { %v3195_v47 = vpop.f32.mrf.mxu1 }
 0x808   : > { %v3250_v40 = vpop.f32.mrf.mxu0  ;;  %v3196_v39 = vadd.f32 %v4311_v8, %v3195_v47 }
 0x810   : > { %v3252_v53 = vpop.f32.mrf.mxu0 }
 0x819   : > { %v3212_v21 = vpop.f32.mrf.mxu2 }
 0x81a   : > { %v3213_v48 = vadd.f32 %v3212_v21, %v3194_v49 }
 0x821   : > { %v3214_v25 = vpop.f32.mrf.mxu2 }
 0x822   : > { %v3215_v42 = vadd.f32 %v3214_v25, %v3196_v39 }
 0x82b   : > { %v3231_v36 = vpop.f32.mrf.mxu3 }
 0x82c   : > { %v3232_v0 = vadd.f32 %v3231_v36, %v3213_v48 }
 0x82e   : > { %v3251_v29 = vadd.f32 %v3250_v40, %v3232_v0 }
 0x830   : > { %v3257_v23 = vadd.f32 %v3251_v29, %v5605_v17 }
 0x832   : > { %3265 = vadd.xlane.f32.xlu1 %v3257_v23 }
 0x833   : > { %v3233_v61 = vpop.f32.mrf.mxu3 }
 0x834   : > { %v3234_v62 = vadd.f32 %v3233_v61, %v3215_v42 }
 0x836   : > { %v3253_v43 = vadd.f32 %v3252_v53, %v3234_v62 }
 0x838   : > { %v3258_v7 = vadd.f32 %v3253_v43, %v5607_v4 }
 0x83a   : > { %3267 = vadd.xlane.f32.xlu2 %v3258_v7 }
 0x852   : > { %v3262_v50 = vpop.xlane.xlu2 %3261 }
 0x853   : > { %v3269_v33 = vmul.f32 %v3262_v50, %v5501_v22 }
 0x855   : > { %v3273_v55 = vsub.f32 %v3255_v2, %v3269_v33 }
 0x857   : > { %v3277_v35 = vmul.f32 %v3273_v55, %v3273_v55 }
 0x859   : > { %3281 = vadd.xlane.f32.xlu0 %v3277_v35 }
 0x85a   : > { %v3264_v57 = vpop.xlane.xlu0 %3263 }
 0x85b   : > { %v3270_v51 = vmul.f32 %v3264_v57, %v5501_v22 }
 0x85d   : > { %v3274_v19 = vsub.f32 %v3256_v52, %v3270_v51 }
 0x85f   : > { %v3278_v18 = vmul.f32 %v3274_v19, %v3274_v19 }
 0x861   : > { %3283 = vadd.xlane.f32.xlu1 %v3278_v18 }
 0x8a5   : > { %v3266_v17 = vpop.xlane.xlu1 %3265 }
 0x8a6   : > { %v3271_v34 = vmul.f32 %v3266_v17, %v5501_v22 }
 0x8a8   : > { %v6319_v24 = vsub.f32 %v3257_v23, %v3271_v34 }
 0x8aa   : > { %v3279_v4 = vmul.f32 %v6319_v24, %v6319_v24 }
 0x8ac   : > { %3285 = vadd.xlane.f32.xlu2 %v3279_v4 }
 0x8ad   : > { %v3268_v15 = vpop.xlane.xlu2 %3267 }
 0x8ae   : > { %v3272_v26 = vmul.f32 %v3268_v15, %v5501_v22 }
 0x8b0   : > { %v6324_v30 = vsub.f32 %v3258_v7, %v3272_v26 }
 0x8b2   : > { %v3280_v46 = vmul.f32 %v6324_v30, %v6324_v30 }
 0x8b4   : > { %3287 = vadd.xlane.f32.xlu0 %v3280_v46 }
 0x8cc   : > { %v3282_v12 = vpop.xlane.xlu0 %3281 }
 0x8cd   : > { %v3289_v32 = vmul.f32 %v3282_v12, %v5501_v22 }
 0x8cf   : > { %v3293_v13 = vadd.f32 1e-12, %v3289_v32 }
 0x8d1   : > { %4420 = vrsqrt.f32 %v3293_v13  ;;  %vm3303_vm2 = vweird.f32 %v3293_v13 }
 0x8d4   : > { %v3284_v3 = vpop.xlane.xlu1 %3283 }
 0x8d5   : > { %v3290_v56 = vmul.f32 %v3284_v3, %v5501_v22 }
 0x8d7   : > { %v4421_v5 = vpop.eup %4420  ;;  %v3294_v38 = vadd.f32 1e-12, %v3290_v56 }
 0x8d8   : > { %v3298_v59 = vmul.f32 %v4421_v5, %v3293_v13  ;;  %vm3304_vm1 = vweird.f32 %v4421_v5 }
 0x8d9   : > { %4422 = vrsqrt.f32 %v3294_v38  ;;  %vm3305_vm3 = vmor %vm3303_vm2, %vm3304_vm1  ;;  %vm3313_vm5 = vweird.f32 %v3294_v38 }
 0x8da   : > { %v3299_v9 = vmul.f32 %v4421_v5, %v3298_v59 }
 0x8dc   : > { %v3300_v60 = vmul.f32 0.5, %v3299_v9 }
 0x8de   : > { %v3301_v20 = vsub.f32 1.5, %v3300_v60 }
 0x8df   : > { %v4423_v8 = vpop.eup %4422 }
 0x8e0   : > { %v3302_v31 = vmul.f32 %v4421_v5, %v3301_v20  ;;  %v3308_v10 = vmul.f32 %v4423_v8, %v3294_v38  ;;  %vm3314_vm4 = vweird.f32 %v4423_v8 }
 0x8e1   : > { %vm3315_vm6 = vmor %vm3313_vm5, %vm3314_vm4 }
 0x8e2   : > { %v3306_v44 = vsel %vm3305_vm3, %v4421_v5, %v3302_v31  ;;  %v3309_v11 = vmul.f32 %v4423_v8, %v3308_v10 }
 0x8e3   : > { %v3337_v16 = vmul.f32 %v3306_v44, %v3273_v55 }
 0x8e4   : > { %v3310_v14 = vmul.f32 0.5, %v3309_v11 }
 0x8e5   : > { %v3344_v58 = vmul.f32 %v4312_v37, %v3337_v16 }
 0x8e6   : > { %v3311_v28 = vsub.f32 1.5, %v3310_v14 }
 0x8e7   : > { %v3351_v54 = vadd.f32 %v4313_v45, %v3344_v58 }
 0x8e8   : > { %v3312_v2 = vmul.f32 %v4423_v8, %v3311_v28 }
 0x8e9   : > { %3355 = vst [vmem:[#allocation19] sm:$0xff] %v3351_v54 }
 0x8ea   : > { %v3316_v41 = vsel %vm3315_vm6, %v4423_v8, %v3312_v2 }
 0x8eb   : > { %v3338_v63 = vmul.f32 %v3316_v41, %v3274_v19 }
 0x8ed   : > { %v3345_v1 = vmul.f32 %v4312_v37, %v3338_v63 }
 0x8ef   : > { %v3352_v27 = vadd.f32 %v4313_v45, %v3345_v1 }
 0x8f1   : > { %3356 = vst [vmem:[#allocation19 + $0x8] sm:$0xff] %v3352_v27 }
 0x91f   : > { %v3286_v52 = vpop.xlane.xlu2 %3285 }
 0x920   : > { %v3291_v6 = vmul.f32 %v3286_v52, %v5501_v22 }
 0x922   : > { %v3295_v21 = vadd.f32 1e-12, %v3291_v6 }
 0x924   : > { %4424 = vrsqrt.f32 %v3295_v21  ;;  %vm3323_vm8 = vweird.f32 %v3295_v21 }
 0x927   : > { %v3288_v49 = vpop.xlane.xlu0 %3287 }
 0x928   : > { %v3292_v48 = vmul.f32 %v3288_v49, %v5501_v22 }
 0x92a   : > { %v4425_v47 = vpop.eup %4424  ;;  %v3296_v40 = vadd.f32 1e-12, %v3292_v48 }
 0x92b   : > { %v3318_v36 = vmul.f32 %v4425_v47, %v3295_v21  ;;  %vm3324_vm7 = vweird.f32 %v4425_v47 }
 0x92c   : > { %4426 = vrsqrt.f32 %v3296_v40  ;;  %vm3325_vm9 = vmor %vm3323_vm8, %vm3324_vm7  ;;  %vm3333_vm11 = vweird.f32 %v3296_v40 }
 0x92d   : > { %v3319_v0 = vmul.f32 %v4425_v47, %v3318_v36 }
 0x92f   : > { %v3320_v25 = vmul.f32 0.5, %v3319_v0 }
 0x931   : > { %v3321_v39 = vsub.f32 1.5, %v3320_v25 }
 0x932   : > { %v4427_v29 = vpop.eup %4426 }
 0x933   : > { %v3322_v42 = vmul.f32 %v4425_v47, %v3321_v39  ;;  %v3328_v23 = vmul.f32 %v4427_v29, %v3296_v40  ;;  %vm3334_vm10 = vweird.f32 %v4427_v29 }
 0x934   : > { %vm3335_vm12 = vmor %vm3333_vm11, %vm3334_vm10 }
 0x935   : > { %v3326_v61 = vsel %vm3325_vm9, %v4425_v47, %v3322_v42  ;;  %v3329_v62 = vmul.f32 %v4427_v29, %v3328_v23 }
 0x936   : > { %v3339_v53 = vmul.f32 %v3326_v61, %v6319_v24 }
 0x937   : > { %v3330_v43 = vmul.f32 0.5, %v3329_v62 }
 0x938   : > { %v3346_v22 = vmul.f32 %v4312_v37, %v3339_v53 }
 0x939   : > { %v3331_v7 = vsub.f32 1.5, %v3330_v43 }
 0x93a   : > { %v3353_v50 = vadd.f32 %v4313_v45, %v3346_v22 }
 0x93b   : > { %v3332_v33 = vmul.f32 %v4427_v29, %v3331_v7 }
 0x93c   : > { %3357 = vst [vmem:[#allocation19 + $0x10] sm:$0xff] %v3353_v50 }
 0x93d   : > { %v3336_v55 = vsel %vm3335_vm12, %v4427_v29, %v3332_v33 }
 0x93e   : > { %v3340_v35 = vmul.f32 %v3336_v55, %v6324_v30 }
 0x940   : > { %v3347_v57 = vmul.f32 %v4312_v37, %v3340_v35 }
 0x942   : > { %v3354_v51 = vadd.f32 %v4313_v45, %v3347_v57 }
 0x944   : > { %3358 = vst [vmem:[#allocation19 + $0x18] sm:$0xff] %v3354_v51 }
 0x945   : > { %4190 = dma.vmem_to_hbm [thread:$0]  (%p4228_p7), %s3365_s14, 512, %s3367_s23, [#allocation4], %s4834_s1, %s4834_s1, %s4835_s11  }
 0x946   : > { %4801 = dma.done.wait (%p4228_p7), [#allocation4], 512  }
 0x947   : > { %4803 = vsyncadd (%p4228_p7), [#allocation4], 4294966784 }
 0x948 PF: > { %s6436_s28 = sld [smem:[#allocation28_spill]]  ;;  %s6439_s25 = smov %s4810_s26 }
 0x949   : > { %s6437_s27 = sld [smem:[#allocation27_spill]] }
 0x94a   : > { %s6438_s24 = sld [smem:[#allocation29_spill]] }
 0x94e   : > { %p37_p12 = scmp.ge.s32.totalorder %s6436_s28, 5  }
 0x94f   : > { %s6440_s26 = smov %s6437_s27 }
 0x950   : > { %s6441_s27 = smov %s6438_s24  ;;  %39 = sbr.rel (!%p37_p12) target bundleno = 23 (0x17), region = 223 }
 0x955   :  { %3383 = vsyncpa [#allocation3], 1 }
 0x956   :  { %3385 = vsyncpa [#allocation3 + $0x1], 1 }
 0x957   :  { %3386 = vsyncpa [#allocation6], 1 }
 0x958   :  { %3388 = vsyncpa [#allocation6 + $0x1], 1 }
 0x959   :  { %3389 = vsyncpa [#allocation9], 1 }
 0x95a   :  { %3391 = vsyncpa [#allocation9 + $0x1], 1 }
 0x95b   :  { %3392 = vsyncpa [#allocation12], 1 }
 0x95c   :  { %3394 = vsyncpa [#allocation12 + $0x1], 1 }
 0x95d   :  { %3395 = vsyncpa [#allocation15], 1 }
 0x95e   :  { %3397 = vsyncpa [#allocation15 + $0x1], 1 }
 0x95f   :  { %3398 = vsyncpa [#allocation18], 1 }
 0x960   :  { %3400 = vsyncpa [#allocation18 + $0x1], 1 }
 0x961   :  { %3401 = vsyncpa [#allocation4], 1 }
 0x962   :  { %3403 = vsyncpa [#allocation4 + $0x1], 1 }

</bundles_post_ra>
